<compile_context>
chip_gen: v7x
topology: tpu7x:2x2x1
jax: 0.10.0
libtpu: 0.0.40
codegen_flags: <defaults>
</compile_context>

<pallas_src>
import functools

import numpy as np
import jax
import jax.numpy as jnp
from jax import lax
from jax.experimental import pallas as pl
from jax.experimental.pallas import tpu as pltpu


# ---------------------------------------------------------------------------
# Pallas kernel: one grid step = one batch element, (C, N) tiles in VMEM
# ---------------------------------------------------------------------------
def _cross_trans_kernel(num_heads, key_dim, d,
                        x_ref, xs_ref,
                        wq_ref, bq_ref, wk_ref, bk_ref, wv_ref, bv_ref,
                        wp1_ref, bp1_ref, wp2_ref, bp2_ref,
                        out_ref):
    f32 = jnp.float32
    x_all = x_ref[0]                                   # (dim,   N)
    x_s = xs_ref[0]                                    # (dim_s, N) last channel quarter
    N = x_all.shape[-1]

    # Folded 1x1 conv + BN == (out,in) matmul + per-channel bias, in (C, N) layout
    q = jnp.dot(wq_ref[...], x_s,   preferred_element_type=f32) + bq_ref[...]  # (nh*kd, N)
    k = jnp.dot(wk_ref[...], x_all, preferred_element_type=f32) + bk_ref[...]  # (nh*kd, N)
    v = jnp.dot(wv_ref[...], x_all, preferred_element_type=f32) + bv_ref[...]  # (nh*d,  N)

    # Head-major channel layout -> (heads, per-head channels, tokens)
    qh = q.reshape(num_heads, key_dim, N)
    kh = k.reshape(num_heads, key_dim, N)
    vh = v.reshape(num_heads, d, N)

    # Batched-head scores: s[h,i,j] = sum_c q[h,c,i] * k[h,c,j]
    # (reference forward applies NO 1/sqrt(key_dim) scale)
    s = lax.dot_general(qh, kh, (((1,), (1,)), ((0,), (0,))),
                        preferred_element_type=f32)                            # (nh, N, N)

    # Softmax over keys (f32); divide -> EUP approx-reciprocal multiply
    s = s - jnp.max(s, axis=-1, keepdims=True)
    e = jnp.exp(s)
    denom = jnp.sum(e, axis=-1, keepdims=True)
    p = e * pl.reciprocal(denom, approx=True)

    # o[h,c,i] = sum_j v[h,c,j] * p[h,i,j]  -> head-major channels, tokens on lanes
    o = lax.dot_general(vh, p, (((2,), (2,)), ((0,), (0,))),
                        preferred_element_type=f32)                            # (nh, d, N)
    o = o.reshape(num_heads * d, N)                                            # (dh, N)

    # attn.proj = ReLU -> Conv1x1_BN(dh -> dim_s)
    o = jnp.maximum(o, 0.0)
    y1 = jnp.dot(wp1_ref[...], o, preferred_element_type=f32) + bp1_ref[...]   # (dim_s, N)

    # residual, then CrossTrans.proj = Conv1x1_BN(dim_s -> dim) -> ReLU
    xr = x_s.astype(f32) + y1
    y = jnp.dot(wp2_ref[...], xr, preferred_element_type=f32) + bp2_ref[...]   # (dim, N)
    y = jnp.maximum(y, 0.0)

    out_ref[0] = y.astype(out_ref.dtype)


# ---------------------------------------------------------------------------
# Wrapper: NCHW array used directly (free reshape, no transposes)
# ---------------------------------------------------------------------------
def cross_trans_forward(xx_nchw, params, *, num_heads, key_dim, attn_ratio):
    B, dim, H, W = xx_nchw.shape
    assert dim % 4 == 0, "CrossTrans requires dim % 4 == 0"
    dim_s = dim // 4
    assert dim_s % 8 == 0, "dim_s must be sublane-aligned (multiple of 8)"
    d = int(attn_ratio * key_dim)
    N = H * W

    x = xx_nchw.reshape(B, dim, N)   # contiguous view: channels on sublanes, tokens on lanes

    plist = [params["wq"], params["bq"], params["wk"], params["bk"],
             params["wv"], params["bv"], params["wp1"], params["bp1"],
             params["wp2"], params["bp2"]]

    kernel = functools.partial(_cross_trans_kernel, num_heads, key_dim, d)

    out = pl.pallas_call(
        kernel,
        out_shape=jax.ShapeDtypeStruct((B, dim, N), xx_nchw.dtype),
        grid_spec=pltpu.PrefetchScalarGridSpec(
            num_scalar_prefetch=0,
            grid=(B,),
            in_specs=[
                # full channel block (all of xx) ...
                pl.BlockSpec((1, dim, N), lambda b: (b, 0, 0)),
                # ... and the last channel quarter delivered as its own block
                pl.BlockSpec((1, dim_s, N), lambda b: (b, 3, 0)),
            ] + [pl.BlockSpec(p.shape, lambda b: (0, 0)) for p in plist],
            out_specs=pl.BlockSpec((1, dim, N), lambda b: (b, 0, 0)),
        ),
        compiler_params=pltpu.CompilerParams(
            dimension_semantics=("parallel",),      # shard batch across TCs (megacore)
            vmem_limit_bytes=32 * 1024 * 1024,
        ),
    )(x, x, *plist)

    return out.reshape(B, dim, H, W)


# ---------------------------------------------------------------------------
# Pure-JAX reference (mirrors the PyTorch forward, same (C, N) math)
# ---------------------------------------------------------------------------
def cross_trans_reference(xx_nchw, params, *, num_heads, key_dim, attn_ratio):
    B, dim, H, W = xx_nchw.shape
    dim_s = dim // 4
    d = int(attn_ratio * key_dim)
    N = H * W
    x = xx_nchw.reshape(B, dim, N)
    x_s = x[:, 3 * dim_s:, :]

    q = jnp.einsum('oc,bcn->bon', params["wq"], x_s) + params["bq"]
    k = jnp.einsum('oc,bcn->bon', params["wk"], x) + params["bk"]
    v = jnp.einsum('oc,bcn->bon', params["wv"], x) + params["bv"]
    qh = q.reshape(B, num_heads, key_dim, N)
    kh = k.reshape(B, num_heads, key_dim, N)
    vh = v.reshape(B, num_heads, d, N)

    s = jnp.einsum('bhci,bhcj->bhij', qh, kh)          # no scale, as in the module
    p = jax.nn.softmax(s, axis=-1)
    o = jnp.einsum('bhcj,bhij->bhci', vh, p).reshape(B, num_heads * d, N)

    o = jnp.maximum(o, 0.0)
    y1 = jnp.einsum('oc,bcn->bon', params["wp1"], o) + params["bp1"]
    xr = x_s + y1
    y = jnp.maximum(jnp.einsum('oc,bcn->bon', params["wp2"], xr) + params["bp2"], 0.0)
    return y.reshape(B, dim, H, W)


# ---------------------------------------------------------------------------
# Deterministic parameter construction (folded conv1x1 + BN -> (out,in) W, bias)
# ---------------------------------------------------------------------------
def make_params(key, dim, *, num_heads, key_dim, attn_ratio):
    dim_s = dim // 4
    nh_kd = num_heads * key_dim
    dh = int(attn_ratio * key_dim) * num_heads
    keys = jax.random.split(key, 10)

    def w(k, cout, cin):
        return jax.random.normal(k, (cout, cin), jnp.float32) * 0.1

    def b(k, cout):
        return jax.random.normal(k, (cout, 1), jnp.float32) * 0.1

    return {
        "wq":  w(keys[0], nh_kd, dim_s), "bq":  b(keys[1], nh_kd),
        "wk":  w(keys[2], nh_kd, dim),   "bk":  b(keys[3], nh_kd),
        "wv":  w(keys[4], dh, dim),      "bv":  b(keys[5], dh),
        "wp1": w(keys[6], dim_s, dh),    "bp1": b(keys[7], dim_s),
        "wp2": w(keys[8], dim, dim_s),   "bp2": b(keys[9], dim),
    }


if __name__ == "__main__":
    # Small synthetic config (module defaults scaled down): dim=32 -> dim_s=8.
    # Spatial 16x16 so N = H*W = 256 (multiple of 128 -> lane-dense stores).
    B, dim, H, W = 2, 32, 16, 16
    num_heads, key_dim, attn_ratio = 2, 8, 2.0

    root = jax.random.PRNGKey(0)
    k_x, k_p = jax.random.split(root)
    xx = jax.random.normal(k_x, (B, dim, H, W), jnp.float32)   # NCHW like PyTorch
    params = make_params(k_p, dim, num_heads=num_heads, key_dim=key_dim,
                         attn_ratio=attn_ratio)

    out = cross_trans_forward(xx, params, num_heads=num_heads,
                              key_dim=key_dim, attn_ratio=attn_ratio)
    out = jax.block_until_ready(out)

    ref = cross_trans_reference(xx, params, num_heads=num_heads,
                                key_dim=key_dim, attn_ratio=attn_ratio)
    # Tolerance accounts for the approx (EUP) reciprocal used in the softmax.
    np.testing.assert_allclose(np.asarray(out), np.asarray(ref),
                               rtol=2e-3, atol=2e-3)

    print("KERNEL_OK")
</pallas_src>

<mosaic_0001>
module attributes {stable_mosaic.version = 11 : i64} {
  func.func @_cross_trans_kernel(%arg0: i32, %arg1: memref<1x32x256xf32, #tpu.memory_space<vmem>>, %arg2: memref<1x8x256xf32, #tpu.memory_space<vmem>>, %arg3: memref<16x8xf32, #tpu.memory_space<vmem>>, %arg4: memref<16x1xf32, #tpu.memory_space<vmem>>, %arg5: memref<16x32xf32, #tpu.memory_space<vmem>>, %arg6: memref<16x1xf32, #tpu.memory_space<vmem>>, %arg7: memref<32x32xf32, #tpu.memory_space<vmem>>, %arg8: memref<32x1xf32, #tpu.memory_space<vmem>>, %arg9: memref<8x32xf32, #tpu.memory_space<vmem>>, %arg10: memref<8x1xf32, #tpu.memory_space<vmem>>, %arg11: memref<32x8xf32, #tpu.memory_space<vmem>>, %arg12: memref<32x1xf32, #tpu.memory_space<vmem>>, %arg13: memref<1x32x256xf32, #tpu.memory_space<vmem>>) attributes {dimension_semantics = [#tpu.dimension_semantics<parallel>], iteration_bounds = array<i64: 2>, scalar_prefetch = 0 : i64, scratch_operands = 0 : i64, tpu.core_type = #tpu.core_type<tc>, window_params = [{transform_indices = @transform_0, window_bounds = array<i64: 1, 32, 256>}, {transform_indices = @transform_1, window_bounds = array<i64: 1, 8, 256>}, {pipeline_mode = #tpu.pipeline_mode<synchronous>, transform_indices = @transform_2, window_bounds = array<i64: 16, 8>}, {pipeline_mode = #tpu.pipeline_mode<synchronous>, transform_indices = @transform_3, window_bounds = array<i64: 16, 1>}, {pipeline_mode = #tpu.pipeline_mode<synchronous>, transform_indices = @transform_4, window_bounds = array<i64: 16, 32>}, {pipeline_mode = #tpu.pipeline_mode<synchronous>, transform_indices = @transform_5, window_bounds = array<i64: 16, 1>}, {pipeline_mode = #tpu.pipeline_mode<synchronous>, transform_indices = @transform_6, window_bounds = array<i64: 32, 32>}, {pipeline_mode = #tpu.pipeline_mode<synchronous>, transform_indices = @transform_7, window_bounds = array<i64: 32, 1>}, {pipeline_mode = #tpu.pipeline_mode<synchronous>, transform_indices = @transform_8, window_bounds = array<i64: 8, 32>}, {pipeline_mode = #tpu.pipeline_mode<synchronous>, transform_indices = @transform_9, window_bounds = array<i64: 8, 1>}, {pipeline_mode = #tpu.pipeline_mode<synchronous>, transform_indices = @transform_10, window_bounds = array<i64: 32, 8>}, {pipeline_mode = #tpu.pipeline_mode<synchronous>, transform_indices = @transform_11, window_bounds = array<i64: 32, 1>}, {transform_indices = @transform_12, window_bounds = array<i64: 1, 32, 256>}]} {
    %c0 = arith.constant 0 : index
    %c0_0 = arith.constant 0 : index
    %c0_1 = arith.constant 0 : index
    %0 = vector.load %arg1[%c0, %c0_0, %c0_1] : memref<1x32x256xf32, #tpu.memory_space<vmem>>, vector<1x32x256xf32>
    %1 = vector.shape_cast %0 : vector<1x32x256xf32> to vector<32x256xf32>
    %c0_2 = arith.constant 0 : index
    %c0_3 = arith.constant 0 : index
    %c0_4 = arith.constant 0 : index
    %2 = vector.load %arg2[%c0_2, %c0_3, %c0_4] : memref<1x8x256xf32, #tpu.memory_space<vmem>>, vector<1x8x256xf32>
    %3 = vector.shape_cast %2 : vector<1x8x256xf32> to vector<8x256xf32>
    %c0_5 = arith.constant 0 : index
    %c0_6 = arith.constant 0 : index
    %4 = vector.load %arg3[%c0_5, %c0_6] : memref<16x8xf32, #tpu.memory_space<vmem>>, vector<16x8xf32>
    %cst = arith.constant dense<0.000000e+00> : vector<16x256xf32>
    %5 = tpu.matmul %4, %3, %cst {dimension_numbers = #tpu.dot_dimension_numbers<[1], [0], [0], [1], [0, 0, 1, 1], [], []>} : vector<16x8xf32>, vector<8x256xf32>, vector<16x256xf32> -> vector<16x256xf32>
    %c0_7 = arith.constant 0 : index
    %c0_8 = arith.constant 0 : index
    %6 = vector.load %arg4[%c0_7, %c0_8] : memref<16x1xf32, #tpu.memory_space<vmem>>, vector<16x1xf32>
    %7 = vector.broadcast %6 : vector<16x1xf32> to vector<16x256xf32>
    %8 = arith.addf %5, %7 : vector<16x256xf32>
    %c0_9 = arith.constant 0 : index
    %c0_10 = arith.constant 0 : index
    %9 = vector.load %arg5[%c0_9, %c0_10] : memref<16x32xf32, #tpu.memory_space<vmem>>, vector<16x32xf32>
    %cst_11 = arith.constant dense<0.000000e+00> : vector<16x256xf32>
    %10 = tpu.matmul %9, %1, %cst_11 {dimension_numbers = #tpu.dot_dimension_numbers<[1], [0], [0], [1], [0, 0, 1, 1], [], []>} : vector<16x32xf32>, vector<32x256xf32>, vector<16x256xf32> -> vector<16x256xf32>
    %c0_12 = arith.constant 0 : index
    %c0_13 = arith.constant 0 : index
    %11 = vector.load %arg6[%c0_12, %c0_13] : memref<16x1xf32, #tpu.memory_space<vmem>>, vector<16x1xf32>
    %12 = vector.broadcast %11 : vector<16x1xf32> to vector<16x256xf32>
    %13 = arith.addf %10, %12 : vector<16x256xf32>
    %c0_14 = arith.constant 0 : index
    %c0_15 = arith.constant 0 : index
    %14 = vector.load %arg7[%c0_14, %c0_15] : memref<32x32xf32, #tpu.memory_space<vmem>>, vector<32x32xf32>
    %cst_16 = arith.constant dense<0.000000e+00> : vector<32x256xf32>
    %15 = tpu.matmul %14, %1, %cst_16 {dimension_numbers = #tpu.dot_dimension_numbers<[1], [0], [0], [1], [0, 0, 1, 1], [], []>} : vector<32x32xf32>, vector<32x256xf32>, vector<32x256xf32> -> vector<32x256xf32>
    %c0_17 = arith.constant 0 : index
    %c0_18 = arith.constant 0 : index
    %16 = vector.load %arg8[%c0_17, %c0_18] : memref<32x1xf32, #tpu.memory_space<vmem>>, vector<32x1xf32>
    %17 = vector.broadcast %16 : vector<32x1xf32> to vector<32x256xf32>
    %18 = arith.addf %15, %17 : vector<32x256xf32>
    %19 = vector.shape_cast %8 : vector<16x256xf32> to vector<2x8x256xf32>
    %20 = vector.shape_cast %13 : vector<16x256xf32> to vector<2x8x256xf32>
    %21 = vector.shape_cast %18 : vector<32x256xf32> to vector<2x16x256xf32>
    %cst_19 = arith.constant dense<0.000000e+00> : vector<2x256x256xf32>
    %22 = tpu.matmul %19, %20, %cst_19 {dimension_numbers = #tpu.dot_dimension_numbers<[1], [1], [2], [2], [0, 0, 0, 2, 1, 2], [0], [0]>} : vector<2x8x256xf32>, vector<2x8x256xf32>, vector<2x256x256xf32> -> vector<2x256x256xf32>
    %cst_20 = arith.constant dense<0xFF800000> : vector<2x256xf32>
    %23 = vector.multi_reduction <maximumf>, %22, %cst_20 [2] : vector<2x256x256xf32> to vector<2x256xf32>
    %24 = vector.shape_cast %23 : vector<2x256xf32> to vector<2x256x1xf32>
    %25 = vector.broadcast %24 : vector<2x256x1xf32> to vector<2x256x256xf32>
    %26 = arith.subf %22, %25 : vector<2x256x256xf32>
    %27 = math.exp %26 : vector<2x256x256xf32>
    %cst_21 = arith.constant dense<0.000000e+00> : vector<2x256xf32>
    %28 = vector.multi_reduction <add>, %27, %cst_21 [2] : vector<2x256x256xf32> to vector<2x256xf32>
    %29 = vector.shape_cast %28 : vector<2x256xf32> to vector<2x256x1xf32>
    %30 = tpu.reciprocal %29 {approx = true} : vector<2x256x1xf32> -> vector<2x256x1xf32>
    %31 = vector.broadcast %30 : vector<2x256x1xf32> to vector<2x256x256xf32>
    %32 = arith.mulf %27, %31 : vector<2x256x256xf32>
    %cst_22 = arith.constant dense<0.000000e+00> : vector<2x16x256xf32>
    %33 = tpu.matmul %21, %32, %cst_22 {dimension_numbers = #tpu.dot_dimension_numbers<[2], [2], [1], [1], [0, 0, 0, 1, 1, 1], [0], [0]>} : vector<2x16x256xf32>, vector<2x256x256xf32>, vector<2x16x256xf32> -> vector<2x16x256xf32>
    %34 = vector.shape_cast %33 : vector<2x16x256xf32> to vector<32x256xf32>
    %cst_23 = arith.constant 0.000000e+00 : f32
    %35 = vector.broadcast %cst_23 : f32 to vector<32x256xf32>
    %36 = arith.maximumf %34, %35 : vector<32x256xf32>
    %c0_24 = arith.constant 0 : index
    %c0_25 = arith.constant 0 : index
    %37 = vector.load %arg9[%c0_24, %c0_25] : memref<8x32xf32, #tpu.memory_space<vmem>>, vector<8x32xf32>
    %cst_26 = arith.constant dense<0.000000e+00> : vector<8x256xf32>
    %38 = tpu.matmul %37, %36, %cst_26 {dimension_numbers = #tpu.dot_dimension_numbers<[1], [0], [0], [1], [0, 0, 1, 1], [], []>} : vector<8x32xf32>, vector<32x256xf32>, vector<8x256xf32> -> vector<8x256xf32>
    %c0_27 = arith.constant 0 : index
    %c0_28 = arith.constant 0 : index
    %39 = vector.load %arg10[%c0_27, %c0_28] : memref<8x1xf32, #tpu.memory_space<vmem>>, vector<8x1xf32>
    %40 = vector.broadcast %39 : vector<8x1xf32> to vector<8x256xf32>
    %41 = arith.addf %38, %40 : vector<8x256xf32>
    %42 = arith.addf %3, %41 : vector<8x256xf32>
    %c0_29 = arith.constant 0 : index
    %c0_30 = arith.constant 0 : index
    %43 = vector.load %arg11[%c0_29, %c0_30] : memref<32x8xf32, #tpu.memory_space<vmem>>, vector<32x8xf32>
    %cst_31 = arith.constant dense<0.000000e+00> : vector<32x256xf32>
    %44 = tpu.matmul %43, %42, %cst_31 {dimension_numbers = #tpu.dot_dimension_numbers<[1], [0], [0], [1], [0, 0, 1, 1], [], []>} : vector<32x8xf32>, vector<8x256xf32>, vector<32x256xf32> -> vector<32x256xf32>
    %c0_32 = arith.constant 0 : index
    %c0_33 = arith.constant 0 : index
    %45 = vector.load %arg12[%c0_32, %c0_33] : memref<32x1xf32, #tpu.memory_space<vmem>>, vector<32x1xf32>
    %46 = vector.broadcast %45 : vector<32x1xf32> to vector<32x256xf32>
    %47 = arith.addf %44, %46 : vector<32x256xf32>
    %cst_34 = arith.constant 0.000000e+00 : f32
    %48 = vector.broadcast %cst_34 : f32 to vector<32x256xf32>
    %49 = arith.maximumf %47, %48 : vector<32x256xf32>
    %c0_35 = arith.constant 0 : index
    %c0_36 = arith.constant 0 : index
    %c0_37 = arith.constant 0 : index
    %50 = vector.load %arg13[%c0_35, %c0_36, %c0_37] : memref<1x32x256xf32, #tpu.memory_space<vmem>>, vector<1x32x256xf32>
    %51 = vector.shape_cast %50 : vector<1x32x256xf32> to vector<32x256xf32>
    %52 = vector.shape_cast %49 : vector<32x256xf32> to vector<1x32x256xf32>
    tpu.vector_store %arg13[%c0_35, %c0_36, %c0_37], %52 {strides = array<i32>} : memref<1x32x256xf32, #tpu.memory_space<vmem>>, vector<1x32x256xf32>,
    return
  }
  func.func @transform_0(%arg0: i32) -> (i32, i32, i32) {
    %c0_i32 = arith.constant 0 : i32
    %c0_i32_0 = arith.constant 0 : i32
    %c0_i32_1 = arith.constant 0 : i32
    return %arg0, %c0_i32, %c0_i32_0 : i32, i32, i32
  }
  func.func @transform_1(%arg0: i32) -> (i32, i32, i32) {
    %c3_i32 = arith.constant 3 : i32
    %c0_i32 = arith.constant 0 : i32
    %c0_i32_0 = arith.constant 0 : i32
    return %arg0, %c3_i32, %c0_i32 : i32, i32, i32
  }
  func.func @transform_2(%arg0: i32) -> (i32, i32) {
    %c0_i32 = arith.constant 0 : i32
    %c0_i32_0 = arith.constant 0 : i32
    %c0_i32_1 = arith.constant 0 : i32
    return %c0_i32, %c0_i32_0 : i32, i32
  }
  func.func @transform_3(%arg0: i32) -> (i32, i32) {
    %c0_i32 = arith.constant 0 : i32
    %c0_i32_0 = arith.constant 0 : i32
    %c0_i32_1 = arith.constant 0 : i32
    return %c0_i32, %c0_i32_0 : i32, i32
  }
  func.func @transform_4(%arg0: i32) -> (i32, i32) {
    %c0_i32 = arith.constant 0 : i32
    %c0_i32_0 = arith.constant 0 : i32
    %c0_i32_1 = arith.constant 0 : i32
    return %c0_i32, %c0_i32_0 : i32, i32
  }
  func.func @transform_5(%arg0: i32) -> (i32, i32) {
    %c0_i32 = arith.constant 0 : i32
    %c0_i32_0 = arith.constant 0 : i32
    %c0_i32_1 = arith.constant 0 : i32
    return %c0_i32, %c0_i32_0 : i32, i32
  }
  func.func @transform_6(%arg0: i32) -> (i32, i32) {
    %c0_i32 = arith.constant 0 : i32
    %c0_i32_0 = arith.constant 0 : i32
    %c0_i32_1 = arith.constant 0 : i32
    return %c0_i32, %c0_i32_0 : i32, i32
  }
  func.func @transform_7(%arg0: i32) -> (i32, i32) {
    %c0_i32 = arith.constant 0 : i32
    %c0_i32_0 = arith.constant 0 : i32
    %c0_i32_1 = arith.constant 0 : i32
    return %c0_i32, %c0_i32_0 : i32, i32
  }
  func.func @transform_8(%arg0: i32) -> (i32, i32) {
    %c0_i32 = arith.constant 0 : i32
    %c0_i32_0 = arith.constant 0 : i32
    %c0_i32_1 = arith.constant 0 : i32
    return %c0_i32, %c0_i32_0 : i32, i32
  }
  func.func @transform_9(%arg0: i32) -> (i32, i32) {
    %c0_i32 = arith.constant 0 : i32
    %c0_i32_0 = arith.constant 0 : i32
    %c0_i32_1 = arith.constant 0 : i32
    return %c0_i32, %c0_i32_0 : i32, i32
  }
  func.func @transform_10(%arg0: i32) -> (i32, i32) {
    %c0_i32 = arith.constant 0 : i32
    %c0_i32_0 = arith.constant 0 : i32
    %c0_i32_1 = arith.constant 0 : i32
    return %c0_i32, %c0_i32_0 : i32, i32
  }
  func.func @transform_11(%arg0: i32) -> (i32, i32) {
    %c0_i32 = arith.constant 0 : i32
    %c0_i32_0 = arith.constant 0 : i32
    %c0_i32_1 = arith.constant 0 : i32
    return %c0_i32, %c0_i32_0 : i32, i32
  }
  func.func @transform_12(%arg0: i32) -> (i32, i32, i32) {
    %c0_i32 = arith.constant 0 : i32
    %c0_i32_0 = arith.constant 0 : i32
    %c0_i32_1 = arith.constant 0 : i32
    return %arg0, %c0_i32, %c0_i32_0 : i32, i32, i32
  }
}

</mosaic_0001>

<bundles_post_ra>
// kernel: tpu_custom_call.1
= control target key start
LH: loop header
LB: loop body
LE: loop exit
PB: predicated region body
PF: predicated region fallthrough
CT: control target
= control target key end

     0   :  { %17 = vsyncpa [#allocation3], 0  ;;  %s5396_s0 = inlined_call_operand.vmem [shape: f32[2,32,256], index: 0, kind: input, shape index: {}]   ;;  %s5397_s1 = inlined_call_operand.hbm [shape: f32[2,32,256], index: 1, kind: input, shape index: {}]   ;;  %s5398_s2 = inlined_call_operand.vmem [shape: f32[16,8], index: 2, kind: input, shape index: {}]   ;;  %s5399_s3 = inlined_call_operand.vmem [shape: f32[16,1], index: 3, kind: input, shape index: {}]   ;;  %s5400_s4 = inlined_call_operand.vmem [shape: f32[16,32], index: 4, kind: input, shape index: {}]   ;;  %s5401_s5 = inlined_call_operand.vmem [shape: f32[16,1], index: 5, kind: input, shape index: {}]   ;;  %s5402_s6 = inlined_call_operand.vmem [shape: f32[32,32], index: 6, kind: input, shape index: {}]   ;;  %s5403_s7 = inlined_call_operand.vmem [shape: f32[32,1], index: 7, kind: input, shape index: {}]   ;;  %s5404_s8 = inlined_call_operand.vmem [shape: f32[8,32], index: 8, kind: input, shape index: {}]   ;;  %s5405_s9 = inlined_call_operand.vmem [shape: f32[8,1], index: 9, kind: input, shape index: {}]   ;;  %s5406_s10 = inlined_call_operand.vmem [shape: f32[32,8], index: 10, kind: input, shape index: {}]   ;;  %s5407_s11 = inlined_call_operand.vmem [shape: f32[32,1], index: 11, kind: input, shape index: {}]   ;;  %s5408_s12 = inlined_call_operand.hbm [shape: f32[2,32,256], index: 12, kind: output, shape index: {}]  }
   0x1   :  { %19 = vsyncpa [#allocation3 + $0x1], 0 }
   0x2   :  { %20 = vsyncpa [#allocation4], 0 }
   0x3   :  { %22 = vsyncpa [#allocation4 + $0x1], 0  ;;  %s3927_s21 = smov 0   ;;  %s3929_s22 = smov 0  }
   0x4   :  { %s3931_s23 = smov 0   ;;  %s3933_s24 = smov 0  }
   0x5 LB: > { %5575 = sst [smem:[#allocation8_spill]] %s3842_s21  ;;  %s3948_s25 = sadd.s32 4294967295, %s3854_s24   ;;  %s3854_s24 = sphi %s3933_s24, %s5923_s24   ;;  %s3850_s23 = sphi %s3931_s23, %s5925_s23   ;;  %s3846_s22 = sphi %s3929_s22, %s5927_s22   ;;  %s3842_s21 = sphi %s3927_s21, %s5926_s21  }
   0x6   : > { %5576 = sst [smem:[#allocation9_spill]] %s3850_s23  ;;  %s3071_s26 = sadd.s32 4294967294, %s3854_s24  }
   0x7   : > { %s3952_s27 = sadd.s32 1, %s3854_s24   ;;  %s61_s28 = sadd.s32 1, %s3850_s23 }
   0x8   : > { %5577 = sst [smem:[#allocation10_spill]] %s3952_s27  ;;  %s58_s29 = ssub.s32 %s3854_s24, %s3952_s27 }
   0x9   : > { %p68_p0 = scmp.ne.s32.totalorder %s3850_s23, %s3846_s22  ;;  %p59_p1 = scmp.eq.s32.totalorder %s58_s29, 0 }
   0xa   : > { %p69_p2 = scmp.eq.s32.totalorder %s3854_s24, 0  ;;  %p74_p3 = scmp.ne.s32.totalorder %s3846_s22, %s3842_s21 }
   0xb   : > { %p75_p4 = scmp.eq.s32.totalorder %s3948_s25, 0  ;;  %p308_p7 = scmp.eq.s32.totalorder %s3948_s25, 1 }
   0xc   : > { %s3964_s30 = scalar_select %p59_p1, %s3850_s23, %s61_s28  }
   0xd   : > { %p3966_p5 = por %p69_p2, %p68_p0  ;;  %p3970_p6 = por %p75_p4, %p74_p3 }
   0xe   : > { %5578 = sst [smem:[#allocation11_spill]] %s3964_s30  ;;  %p314_p8 = scmp.eq.s32.totalorder %s3071_s26, 1 }
   0xf   : > { %p3331_p10 = scmp.lt.s32.totalorder %s3854_s24, 2  ;;  %p3977_p11 = por %p308_p7, %p68_p0 }
  0x10   : > { %p3981_p12 = por %p314_p8, %p74_p3  ;;  %s372_s17 = sand.u32 1, %s3850_s23  }
  0x11   : > { %s5581_s15 = scalar_select %p3977_p11, 1, 0 }
  0x12   : > { %s5582_s16 = scalar_select %p3981_p12, 1, 0 }
  0x13   : > { %s3164_s18 = sshll.u32 %s3854_s24, 10  ;;  %s3074_s19 = sshll.u32 %s372_s17, 4 }
  0x14   : > { %s3018_s29 = scalar_lea.hbm %s5397_s1, %s3164_s18  ;;  %s376_s26 = scalar_lea.vmem [#allocation2], %s3074_s19 }
  0x15   : > { %s3990_s30 = scalar_lea.hbm %s3018_s29, 768  ;;  %s385_s27 = sshll.u32 %s376_s26, 4  ;;  %s3992_s27 = int_to_ptr.vmem [resolvable:$true] %s385_s27 }
  0x16   : > { %p3996_p13 = pnand %p3331_p10, %p3966_p5  ;;  %s373_s20 = scalar_lea.sflag [#allocation3], %s372_s17 }
  0x17   : > { %s3787_s18 = scalar_lea.hbm %s3018_s29, 1024  ;;  %s3762_s13 = scalar_lea.hbm %s5397_s1, 2048 }
  0x18   : > { %p3758_p2 = scmp.ne.s32.totalorder %s3990_s30, %s3787_s18  ;;  %p3759_p3 = pneg %p3996_p13 }
  0x19   : > { %p3763_p5 = scmp.lt.u32.totalorder %s3990_s30, %s5397_s1  ;;  %p3764_p8 = scmp.lt.u32.totalorder %s3762_s13, %s3787_s18 }
  0x1a   : > { %p3760_p4 = pnand %p3759_p3, %p3758_p2  ;;  %p3766_p9 = scmp.lt.u32.totalorder %s3787_s18, %s3990_s30 }
  0x1b   : > { %p3765_p10 = por %p3764_p8, %p3763_p5 }
  0x1c   : > { %p3761_p7 = pneg %p3760_p4 }
  0x1d   : > { %p3767_p0 = por %p3766_p9, %p3765_p10 }
  0x1f   : > { %p3768_p1 = pnand %p3767_p0, %p3761_p7 }
  0x21   : > { %3771 = shalt.err (!%p3768_p1)
}
  0x22   : > { %s3772_s17 = scalar_lea.vmem %s3992_s27, 256  ;;  %s3856_s29 = smov [#allocation2]  }
  0x23   : > { %p3773_p2 = scmp.ne.s32.totalorder %s3992_s27, %s3772_s17  ;;  %s3777_s19 = sshll.u32 %s3856_s29, 4  ;;  %s3778_s19 = int_to_ptr.vmem [resolvable:$false] %s3777_s19 }
  0x24   : > { %s3779_s23 = scalar_lea.vmem %s3778_s19, 512  ;;  %p3780_p11 = scmp.lt.s32.totalorder %s3992_s27, %s3778_s19 }
  0x25   : > { %p3775_p4 = pnand %p3773_p2, %p3759_p3  ;;  %p3781_p5 = scmp.lt.s32.totalorder %s3779_s23, %s3772_s17 }
  0x27   : > { %p3776_p12 = pneg %p3775_p4  ;;  %p3782_p8 = por %p3781_p5, %p3780_p11 }
  0x29   : > { %p3783_p9 = pnand %p3782_p8, %p3776_p12 }
  0x2b   : > { %3786 = shalt.err (!%p3783_p9)
}
  0x2c   : > { %3326 = dma.hbm_to_vmem [thread:$0]  (!%p3996_p13), %s3990_s30, 256, %s3992_s27, %s373_s20  }
  0x2d   : > { %p5584_p0 = scmp.lt.s32.totalorder %s3854_s24, 3  ;;  %p5585_p1 = scmp.ge.s32.totalorder %s3854_s24, 1 }
  0x2f   : > { %p391_p3 = pnand %p5585_p1, %p5584_p0 }
  0x31   : > { %394 = sbr.rel (%p391_p3) target bundleno = 1768 (0x6e8), region = 68 }
  0x38   : > { %s4031_s18 = sand.u32 1, %s3846_s22  }
  0x39   : > { %s3078_s28 = sshll.u32 %s4031_s18, 4  ;;  %s397_s13 = scalar_lea.sflag [#allocation3], %s4031_s18 }
  0x3a   : > { %s4035_s26 = scalar_lea.vmem [#allocation2], %s3078_s28 }
  0x3b   : > { %3833 = dma.done.wait (%p3970_p6), %s397_s13, 256  }
  0x3c   : > { %3835 = vsyncadd (%p3970_p6), %s397_s13, 4294967040  ;;  %p446_p11 = scmp.lt.s32.totalorder %s3948_s25, 1  ;;  %v5414_v0 = vmov 0.0   ;;  %v3858_v1 = vmov 0   ;;  %v460_v2 = vld [vmem:[%s4035_s26 + $0x8] sm:$0xff]  ;;  %v459_v3 = vld [vmem:[%s4035_s26] sm:$0xff] }
  0x3d   : > { %546 = vmatprep.mubr.f32.mxu0 %v5414_v0  ;;  %3369 = vset.pattern.permute.xlu0 %v3858_v1  ;;  %v461_v4 = vld [vmem:[%s5398_s2] sm:$0xff]  ;;  %vm475_vm0 = vcmask 64512   ;;  %v462_v15 = vld [vmem:[%s5398_s2 + $0x8] sm:$0xff]  ;;  %vm573_vm1 = vcmask 261120   ;;  %v659_v26 = vld [vmem:[%s5402_s6 + $0x10] sm:$0xff]  ;;  %s3166_s17 = sshll.u32 %s3948_s25, 10 }
  0x3e   : > { %s447_s21 = scalar_select %p446_p11, %s3948_s25, 1  ;;  %644 = vmatprep.mubr.f32.mxu1 %v5414_v0  ;;  %3370 = vset.pattern.permute.xlu1 %v3858_v1  ;;  %v463_v13 = vld [vmem:[%s5399_s3] sm:$0xff]  ;;  %v464_v20 = vld [vmem:[%s5399_s3 + $0x8] sm:$0xff]  ;;  %v660_v31 = vld [vmem:[%s5402_s6 + $0x18] sm:$0xff] }
  0x3f   : > { %482 = vmatprep.subr.mxu0 %v460_v2  ;;  %467 = vperm.xlu0 %3369, %v463_v13   ;;  %v561_v19 = vld [vmem:[%s5401_s5] sm:$0xff]  ;;  %v562_v21 = vld [vmem:[%s5401_s5 + $0x8] sm:$0xff]  ;;  %s5350_s19 = scalar_lea.hbm %s5408_s12, %s3166_s17  ;;  %s2971_s25 = scalar_lea.sflag [#allocation4], %s4031_s18 }
  0x40   : > { %s3165_s27 = sshll.u32 %s447_s21, 6  ;;  %483 = vmatpush1.msra.mxu0 %v459_v3  ;;  %565 = vperm.xlu1 %3370, %v561_v19   ;;  %v559_v22 = vld [vmem:[%s5400_s4] sm:$0xff]  ;;  %v560_v23 = vld [vmem:[%s5400_s4 + $0x8] sm:$0xff]  ;;  %p5919_p12 = scmp.ne.s32.totalorder %s5581_s15, 0 }
  0x41   : > { %s450_s14 = scalar_lea.vmem %s5396_s0, %s3165_s27  ;;  %3082 = vmatmul.mubr.msk.f32.vlgmr.msra.gmra.mrb[0].mxu0 %vm475_vm0, %v461_v4  ;;  %v657_v24 = vld [vmem:[%s5402_s6] sm:$0xff]  ;;  %v658_v25 = vld [vmem:[%s5402_s6 + $0x8] sm:$0xff]  ;;  %s3079_s27 = sshll.u32 %s4031_s18, 6 }
  0x42   : > { %v452_v5 = vld [vmem:[%s450_s14 + $0x8] sm:$0xff]  ;;  %v454_v6 = vld [vmem:[%s450_s14 + $0x18] sm:$0xff]  ;;  %v451_v8 = vld [vmem:[%s450_s14] sm:$0xff]  ;;  %552 = vmatprep.mubr.f32.mxu0 %v5414_v0  ;;  %s5335_s30 = scalar_lea.vmem [#allocation5], %s3079_s27 }
  0x43   : > { %v3167_v7 = vpack.c.bf16 %v454_v6, %v452_v5  ;;  %v453_v9 = vld [vmem:[%s450_s14 + $0x10] sm:$0xff]  ;;  %v456_v10 = vld [vmem:[%s450_s14 + $0x28] sm:$0xff]  ;;  %v458_v12 = vld [vmem:[%s450_s14 + $0x38] sm:$0xff]  ;;  %472 = vperm.xlu0 %3369, %v464_v20   ;;  %s2984_s20 = sshll.u32 %s5335_s30, 4  ;;  %s5344_s20 = int_to_ptr.vmem [resolvable:$true] %s2984_s20 }
  0x44   : > { %v3169_v11 = vpack.c.bf16 %v453_v9, %v451_v8  ;;  %v455_v14 = vld [vmem:[%s450_s14 + $0x20] sm:$0xff]  ;;  %v3171_v16 = vpack.c.bf16 %v458_v12, %v456_v10  ;;  %v457_v17 = vld [vmem:[%s450_s14 + $0x30] sm:$0xff]  ;;  %570 = vperm.xlu1 %3370, %v562_v21   ;;  %s3788_s23 = scalar_lea.vmem %s5344_s20, 1024 }
  0x45   : > { %3168 = vmatprep.subr.bf16.mxu1 %v3167_v7  ;;  %v3173_v18 = vpack.c.bf16 %v457_v17, %v455_v14  ;;  %3083 = vmatmul.mubr.msk.f32.gmra.mrb[2].mxu0 %vm475_vm0, %v462_v15  ;;  %v661_v62 = vld [vmem:[%s5403_s7] sm:$0xff]  ;;  %p3789_p6 = scmp.ne.s32.totalorder %s5344_s20, %s3788_s23 }
  0x46   : > { %3170 = vmatpush1.bf16.msra.mxu1 %v3169_v11  ;;  %3176 = vmatprep.subr.bf16.mxu0 %v3167_v7 }
  0x47   : > { %3172 = vmatprep.subr.bf16.mxu1 %v3171_v16  ;;  %3178 = vmatpush1.bf16.msra.mxu0 %v3169_v11  ;;  %p3790_p13 = pnand %p3789_p6, %p5919_p12 }
  0x48   : > { %761 = vmatprep.mubr.f32.mxu0 %v5414_v0  ;;  %3180 = vmatprep.subr.bf16.mxu0 %v3171_v16 }
  0x49   : > { %p3791_p7 = pneg %p3790_p13 }
  0x4a   : > { %3174 = vmatpush1.bf16.msra.mxu1 %v3173_v18 }
  0x4b   : > { %3182 = vmatpush1.bf16.msra.mxu0 %v3173_v18 }
  0x4d   : > { %3084 = vmatmul.mubr.msk.f32.vlgmr.msra.gmra.mrb[0].mxu1 %vm573_vm1, %v559_v22 }
  0x4e   : > { %650 = vmatprep.mubr.f32.mxu1 %v5414_v0  ;;  %3086 = vmatmul.mubr.msk.f32.vlgmr.msra.gmra.mrb[4].mxu0 %vm573_vm1, %v657_v24 }
  0x4f   : > { %767 = vmatprep.mubr.f32.mxu0 %v5414_v0 }
  0x51   : > { %3085 = vmatmul.mubr.msk.f32.gmra.mrb[2].mxu1 %vm573_vm1, %v560_v23 }
  0x52   : > { %1010 = vmatprep.mubr.f32.mxu1 %v5414_v0  ;;  %3087 = vmatmul.mubr.msk.f32.gmra.mrb[6].mxu0 %vm573_vm1, %v658_v25 }
  0x53   : > { %773 = vmatprep.mubr.f32.mxu0 %v5414_v0 }
  0x56   : > { %3088 = vmatmul.mubr.msk.f32.gmra.mrb[8].mxu0 %vm573_vm1, %v659_v26 }
  0x57   : > { %779 = vmatprep.mubr.f32.mxu0 %v5414_v0 }
  0x5a   : > { %3089 = vmatmul.mubr.msk.f32.gmra.mrb[10].mxu0 %vm573_vm1, %v660_v31 }
  0x5b   : > { %1427 = vmatprep.mubr.f32.mxu0 %v5414_v0 }
  0xbe   : > { %v468_v27 = vpop.permute.xlu0 %467 }
  0xbf   : > { %v566_v36 = vpop.permute.xlu1 %565 }
  0xc2   : > { %v473_v32 = vpop.permute.xlu0 %472 }
  0xc3   : > { %v571_v41 = vpop.permute.xlu1 %570 }
 0x114   : > { %v548_v28 = vpop.f32.mrb[0].mxu0 }
 0x115   : > { %v549_v29 = vadd.f32 %v548_v28, %v468_v27  ;;  %v550_v30 = vpop.f32.mrb[1].mxu0 }
 0x116   : > { %v551_v46 = vadd.f32 %v550_v30, %v468_v27 }
 0x117   : > { %786 = vxpose.xlu0.b32.start.end [1/1] (short) %v549_v29, 128 }
 0x118   : > { %v554_v33 = vpop.f32.mrb[2].mxu0 }
 0x119   : > { %v555_v34 = vadd.f32 %v554_v33, %v473_v32  ;;  %v556_v35 = vpop.f32.mrb[3].mxu0 }
 0x11a   : > { %v557_v47 = vadd.f32 %v556_v35, %v473_v32 }
 0x11b   : > { %1203 = vxpose.xlu1.b32.start.end [1/1] (short) %v555_v34, 128 }
 0x120   : > { %v646_v37 = vpop.f32.mrb[0].mxu1 }
 0x121   : > { %v647_v38 = vadd.f32 %v646_v37, %v566_v36  ;;  %v648_v39 = vpop.f32.mrb[1].mxu1  ;;  %v4122_v59 = vpop.f32.mrb[4].mxu0 }
 0x122   : > { %v649_v40 = vadd.f32 %v648_v39, %v566_v36  ;;  %5586 = vst [vmem:[#allocation12_spill] sm:$0xff] %v4122_v59  ;;  %v4133_v63 = vpop.f32.mrb[5].mxu0 }
 0x124   : > { %v652_v42 = vpop.f32.mrb[2].mxu1  ;;  %946 = vmatprep.subr.mxu1 %v649_v40 }
 0x125   : > { %v653_v43 = vadd.f32 %v652_v42, %v571_v41  ;;  %v654_v44 = vpop.f32.mrb[3].mxu1  ;;  %947 = vmatpush1.msra.mxu1 %v647_v38  ;;  %v4137_v3 = vpop.f32.mrb[6].mxu0 }
 0x126   : > { %v655_v45 = vadd.f32 %v654_v44, %v571_v41  ;;  %5587 = vst [vmem:[#allocation13_spill] sm:$0xff] %v4137_v3  ;;  %v4141_v4 = vpop.f32.mrb[7].mxu0 }
 0x127   : > { %5588 = vst [vmem:[#allocation14_spill] sm:$0xff] %v4141_v4 }
 0x128   : > { %1363 = vmatprep.subr.mxu0 %v655_v45 }
 0x129   : > { %1364 = vmatpush1.msra.mxu0 %v653_v43  ;;  %v4143_v5 = vpop.f32.mrb[8].mxu0 }
 0x12a   : > { %5589 = vst [vmem:[#allocation15_spill] sm:$0xff] %v4143_v5  ;;  %v4147_v8 = vpop.f32.mrb[9].mxu0 }
 0x12b   : > { %5590 = vst [vmem:[#allocation16_spill] sm:$0xff] %v4147_v8 }
 0x12d   : > { %v4199_v33 = vpop.f32.mrb[10].mxu0 }
 0x12e   : > { %5591 = vst [vmem:[#allocation17_spill] sm:$0xff] %v4199_v33  ;;  %v4203_v36 = vpop.f32.mrb[11].mxu0 }
 0x12f   : > { %5592 = vst [vmem:[#allocation18_spill] sm:$0xff] %v4203_v36 }
 0x154   : > { %818 = vxpose.xlu0.b32.start.end [1/1] (short) %v551_v46, 128 }
 0x158   : > { %1235 = vxpose.xlu1.b32.start.end [1/1] (short) %v557_v47, 128 }
 0x197   : > { %v802_v48 = vpop.trf.xlu0 }
 0x198   : > { %3090 = vmatmul.mubr.msk.f32.vlgmr.msra.gmra.mrb[4].mxu1 %vm475_vm0, %v802_v48 }
 0x199   : > { %1016 = vmatprep.mubr.f32.mxu1 %v5414_v0 }
 0x19b   : > { %v1219_v49 = vpop.trf.xlu1  ;;  %v803_v50 = vpop.trf.xlu0 }
 0x19c   : > { %3091 = vmatmul.mubr.msk.f32.gmra.mrb[6].mxu1 %vm475_vm0, %v803_v50  ;;  %3122 = vmatmul.mubr.msk.f32.vlgmr.msra.gmra.mrb[12].mxu0 %vm475_vm0, %v1219_v49 }
 0x19d   : > { %1022 = vmatprep.mubr.f32.mxu1 %v5414_v0  ;;  %1433 = vmatprep.mubr.f32.mxu0 %v5414_v0 }
 0x19f   : > { %v1220_v51 = vpop.trf.xlu1  ;;  %v804_v52 = vpop.trf.xlu0 }
 0x1a0   : > { %3092 = vmatmul.mubr.msk.f32.gmra.mrb[8].mxu1 %vm475_vm0, %v804_v52  ;;  %3123 = vmatmul.mubr.msk.f32.gmra.mrb[14].mxu0 %vm475_vm0, %v1220_v51 }
 0x1a1   : > { %1028 = vmatprep.mubr.f32.mxu1 %v5414_v0  ;;  %1439 = vmatprep.mubr.f32.mxu0 %v5414_v0 }
 0x1a3   : > { %v1221_v53 = vpop.trf.xlu1  ;;  %v805_v54 = vpop.trf.xlu0 }
 0x1a4   : > { %3093 = vmatmul.mubr.msk.f32.gmra.mrb[10].mxu1 %vm475_vm0, %v805_v54  ;;  %3124 = vmatmul.mubr.msk.f32.gmra.mrb[16].mxu0 %vm475_vm0, %v1221_v53 }
 0x1a5   : > { %1034 = vmatprep.mubr.f32.mxu1 %v5414_v0  ;;  %1445 = vmatprep.mubr.f32.mxu0 %v5414_v0 }
 0x1a7   : > { %v1222_v55 = vpop.trf.xlu1  ;;  %v806_v56 = vpop.trf.xlu0 }
 0x1a8   : > { %3094 = vmatmul.mubr.msk.f32.gmra.mrb[12].mxu1 %vm475_vm0, %v806_v56  ;;  %3125 = vmatmul.mubr.msk.f32.gmra.mrb[18].mxu0 %vm475_vm0, %v1222_v55 }
 0x1a9   : > { %1040 = vmatprep.mubr.f32.mxu1 %v5414_v0  ;;  %1451 = vmatprep.mubr.f32.mxu0 %v5414_v0 }
 0x1ab   : > { %v1223_v57 = vpop.trf.xlu1  ;;  %v807_v58 = vpop.trf.xlu0 }
 0x1ac   : > { %3095 = vmatmul.mubr.msk.f32.gmra.mrb[14].mxu1 %vm475_vm0, %v807_v58  ;;  %3126 = vmatmul.mubr.msk.f32.gmra.mrb[20].mxu0 %vm475_vm0, %v1223_v57 }
 0x1ad   : > { %1046 = vmatprep.mubr.f32.mxu1 %v5414_v0  ;;  %1457 = vmatprep.mubr.f32.mxu0 %v5414_v0 }
 0x1af   : > { %v1224_v60 = vpop.trf.xlu1  ;;  %v808_v61 = vpop.trf.xlu0 }
 0x1b0   : > { %3096 = vmatmul.mubr.msk.f32.gmra.mrb[16].mxu1 %vm475_vm0, %v808_v61  ;;  %3127 = vmatmul.mubr.msk.f32.gmra.mrb[22].mxu0 %vm475_vm0, %v1224_v60 }
 0x1b1   : > { %1052 = vmatprep.mubr.f32.mxu1 %v5414_v0  ;;  %1463 = vmatprep.mubr.f32.mxu0 %v5414_v0 }
 0x1b2   : > { %667 = vperm.xlu1 %3370, %v661_v62  }
 0x1b3   : > { %v1225_v1 = vpop.trf.xlu1  ;;  %v809_v2 = vpop.trf.xlu0 }
 0x1b4   : > { %3097 = vmatmul.mubr.msk.f32.gmra.mrb[18].mxu1 %vm475_vm0, %v809_v2  ;;  %3128 = vmatmul.mubr.msk.f32.gmra.mrb[24].mxu0 %vm475_vm0, %v1225_v1 }
 0x1b5   : > { %1058 = vmatprep.mubr.f32.mxu1 %v5414_v0  ;;  %1469 = vmatprep.mubr.f32.mxu0 %v5414_v0 }
 0x1b7   : > { %v1226_v6 = vpop.trf.xlu1  ;;  %v810_v7 = vpop.trf.xlu0 }
 0x1b8   : > { %3098 = vmatmul.mubr.msk.f32.gmra.mrb[20].mxu1 %vm475_vm0, %v810_v7  ;;  %3129 = vmatmul.mubr.msk.f32.gmra.mrb[26].mxu0 %vm475_vm0, %v1226_v6 }
 0x1b9   : > { %1064 = vmatprep.mubr.f32.mxu1 %v5414_v0  ;;  %1475 = vmatprep.mubr.f32.mxu0 %v5414_v0 }
 0x1bb   : > { %v1227_v9 = vpop.trf.xlu1  ;;  %v811_v10 = vpop.trf.xlu0 }
 0x1bc   : > { %3099 = vmatmul.mubr.msk.f32.gmra.mrb[22].mxu1 %vm475_vm0, %v811_v10  ;;  %3130 = vmatmul.mubr.msk.f32.gmra.mrb[28].mxu0 %vm475_vm0, %v1227_v9 }
 0x1bd   : > { %1070 = vmatprep.mubr.f32.mxu1 %v5414_v0  ;;  %1481 = vmatprep.mubr.f32.mxu0 %v5414_v0 }
 0x1bf   : > { %v1228_v11 = vpop.trf.xlu1  ;;  %v812_v12 = vpop.trf.xlu0 }
 0x1c0   : > { %3100 = vmatmul.mubr.msk.f32.gmra.mrb[24].mxu1 %vm475_vm0, %v812_v12  ;;  %3131 = vmatmul.mubr.msk.f32.gmra.mrb[30].mxu0 %vm475_vm0, %v1228_v11 }
 0x1c1   : > { %1076 = vmatprep.mubr.f32.mxu1 %v5414_v0  ;;  %1487 = vmatprep.mubr.f32.mxu0 %v5414_v0 }
 0x1c3   : > { %v1229_v13 = vpop.trf.xlu1  ;;  %v813_v14 = vpop.trf.xlu0 }
 0x1c4   : > { %3101 = vmatmul.mubr.msk.f32.gmra.mrb[26].mxu1 %vm475_vm0, %v813_v14  ;;  %3132 = vmatmul.mubr.msk.f32.gmra.mrb[32].mxu0 %vm475_vm0, %v1229_v13 }
 0x1c5   : > { %1082 = vmatprep.mubr.f32.mxu1 %v5414_v0  ;;  %1493 = vmatprep.mubr.f32.mxu0 %v5414_v0 }
 0x1c7   : > { %v1230_v15 = vpop.trf.xlu1  ;;  %v814_v16 = vpop.trf.xlu0 }
 0x1c8   : > { %3102 = vmatmul.mubr.msk.f32.gmra.mrb[28].mxu1 %vm475_vm0, %v814_v16  ;;  %3133 = vmatmul.mubr.msk.f32.gmra.mrb[34].mxu0 %vm475_vm0, %v1230_v15 }
 0x1c9   : > { %1088 = vmatprep.mubr.f32.mxu1 %v5414_v0  ;;  %1499 = vmatprep.mubr.f32.mxu0 %v5414_v0 }
 0x1cb   : > { %v1231_v17 = vpop.trf.xlu1  ;;  %v815_v18 = vpop.trf.xlu0 }
 0x1cc   : > { %3103 = vmatmul.mubr.msk.f32.gmra.mrb[30].mxu1 %vm475_vm0, %v815_v18  ;;  %3134 = vmatmul.mubr.msk.f32.gmra.mrb[36].mxu0 %vm475_vm0, %v1231_v17 }
 0x1cd   : > { %1094 = vmatprep.mubr.f32.mxu1 %v5414_v0  ;;  %1505 = vmatprep.mubr.f32.mxu0 %v5414_v0 }
 0x1cf   : > { %v1232_v19 = vpop.trf.xlu1  ;;  %v816_v20 = vpop.trf.xlu0 }
 0x1d0   : > { %3104 = vmatmul.mubr.msk.f32.gmra.mrb[32].mxu1 %vm475_vm0, %v816_v20  ;;  %3135 = vmatmul.mubr.msk.f32.gmra.mrb[38].mxu0 %vm475_vm0, %v1232_v19 }
 0x1d1   : > { %1100 = vmatprep.mubr.f32.mxu1 %v5414_v0  ;;  %1511 = vmatprep.mubr.f32.mxu0 %v5414_v0 }
 0x1d3   : > { %v1233_v21 = vpop.trf.xlu1  ;;  %v817_v22 = vpop.trf.xlu0 }
 0x1d4   : > { %3105 = vmatmul.mubr.msk.f32.gmra.mrb[34].mxu1 %vm475_vm0, %v817_v22  ;;  %3136 = vmatmul.mubr.msk.f32.gmra.mrb[40].mxu0 %vm475_vm0, %v1233_v21 }
 0x1d5   : > { %1106 = vmatprep.mubr.f32.mxu1 %v5414_v0  ;;  %1517 = vmatprep.mubr.f32.mxu0 %v5414_v0 }
 0x1d7   : > { %v1234_v23 = vpop.trf.xlu1  ;;  %v834_v24 = vpop.trf.xlu0 }
 0x1d8   : > { %3106 = vmatmul.mubr.msk.f32.gmra.mrb[36].mxu1 %vm475_vm0, %v834_v24  ;;  %3137 = vmatmul.mubr.msk.f32.gmra.mrb[42].mxu0 %vm475_vm0, %v1234_v23 }
 0x1d9   : > { %1112 = vmatprep.mubr.f32.mxu1 %v5414_v0  ;;  %1523 = vmatprep.mubr.f32.mxu0 %v5414_v0 }
 0x1db   : > { %v1251_v25 = vpop.trf.xlu1  ;;  %v835_v26 = vpop.trf.xlu0 }
 0x1dc   : > { %3107 = vmatmul.mubr.msk.f32.gmra.mrb[38].mxu1 %vm475_vm0, %v835_v26  ;;  %3138 = vmatmul.mubr.msk.f32.gmra.mrb[44].mxu0 %vm475_vm0, %v1251_v25 }
 0x1dd   : > { %1118 = vmatprep.mubr.f32.mxu1 %v5414_v0  ;;  %1529 = vmatprep.mubr.f32.mxu0 %v5414_v0 }
 0x1df   : > { %v1252_v27 = vpop.trf.xlu1  ;;  %v836_v28 = vpop.trf.xlu0 }
 0x1e0   : > { %3108 = vmatmul.mubr.msk.f32.gmra.mrb[40].mxu1 %vm475_vm0, %v836_v28  ;;  %3139 = vmatmul.mubr.msk.f32.gmra.mrb[46].mxu0 %vm475_vm0, %v1252_v27 }
 0x1e1   : > { %1124 = vmatprep.mubr.f32.mxu1 %v5414_v0  ;;  %1535 = vmatprep.mubr.f32.mxu0 %v5414_v0 }
 0x1e3   : > { %v1253_v29 = vpop.trf.xlu1  ;;  %v837_v30 = vpop.trf.xlu0 }
 0x1e4   : > { %3109 = vmatmul.mubr.msk.f32.gmra.mrb[42].mxu1 %vm475_vm0, %v837_v30  ;;  %3140 = vmatmul.mubr.msk.f32.gmra.mrb[48].mxu0 %vm475_vm0, %v1253_v29 }
 0x1e5   : > { %1130 = vmatprep.mubr.f32.mxu1 %v5414_v0  ;;  %1541 = vmatprep.mubr.f32.mxu0 %v5414_v0 }
 0x1e7   : > { %v1254_v31 = vpop.trf.xlu1  ;;  %v838_v32 = vpop.trf.xlu0 }
 0x1e8   : > { %3110 = vmatmul.mubr.msk.f32.gmra.mrb[44].mxu1 %vm475_vm0, %v838_v32  ;;  %3141 = vmatmul.mubr.msk.f32.gmra.mrb[50].mxu0 %vm475_vm0, %v1254_v31 }
 0x1e9   : > { %1136 = vmatprep.mubr.f32.mxu1 %v5414_v0  ;;  %1547 = vmatprep.mubr.f32.mxu0 %v5414_v0 }
 0x1eb   : > { %v1255_v34 = vpop.trf.xlu1  ;;  %v839_v35 = vpop.trf.xlu0 }
 0x1ec   : > { %3111 = vmatmul.mubr.msk.f32.gmra.mrb[46].mxu1 %vm475_vm0, %v839_v35  ;;  %3142 = vmatmul.mubr.msk.f32.gmra.mrb[52].mxu0 %vm475_vm0, %v1255_v34 }
 0x1ed   : > { %1142 = vmatprep.mubr.f32.mxu1 %v5414_v0  ;;  %1553 = vmatprep.mubr.f32.mxu0 %v5414_v0 }
 0x1ef   : > { %v1256_v37 = vpop.trf.xlu1  ;;  %v840_v38 = vpop.trf.xlu0 }
 0x1f0   : > { %3112 = vmatmul.mubr.msk.f32.gmra.mrb[48].mxu1 %vm475_vm0, %v840_v38  ;;  %3143 = vmatmul.mubr.msk.f32.gmra.mrb[54].mxu0 %vm475_vm0, %v1256_v37 }
 0x1f1   : > { %1148 = vmatprep.mubr.f32.mxu1 %v5414_v0  ;;  %1559 = vmatprep.mubr.f32.mxu0 %v5414_v0 }
 0x1f3   : > { %v1257_v39 = vpop.trf.xlu1  ;;  %v841_v40 = vpop.trf.xlu0 }
 0x1f4   : > { %3113 = vmatmul.mubr.msk.f32.gmra.mrb[50].mxu1 %vm475_vm0, %v841_v40  ;;  %3144 = vmatmul.mubr.msk.f32.gmra.mrb[56].mxu0 %vm475_vm0, %v1257_v39 }
 0x1f5   : > { %1154 = vmatprep.mubr.f32.mxu1 %v5414_v0  ;;  %1565 = vmatprep.mubr.f32.mxu0 %v5414_v0 }
 0x1f7   : > { %v1258_v41 = vpop.trf.xlu1  ;;  %v842_v42 = vpop.trf.xlu0 }
 0x1f8   : > { %3114 = vmatmul.mubr.msk.f32.gmra.mrb[52].mxu1 %vm475_vm0, %v842_v42  ;;  %3145 = vmatmul.mubr.msk.f32.gmra.mrb[58].mxu0 %vm475_vm0, %v1258_v41 }
 0x1f9   : > { %1160 = vmatprep.mubr.f32.mxu1 %v5414_v0  ;;  %1571 = vmatprep.mubr.f32.mxu0 %v5414_v0 }
 0x1fb   : > { %v1259_v43 = vpop.trf.xlu1  ;;  %v843_v44 = vpop.trf.xlu0 }
 0x1fc   : > { %3115 = vmatmul.mubr.msk.f32.gmra.mrb[54].mxu1 %vm475_vm0, %v843_v44  ;;  %3146 = vmatmul.mubr.msk.f32.gmra.mrb[60].mxu0 %vm475_vm0, %v1259_v43 }
 0x1fd   : > { %1166 = vmatprep.mubr.f32.mxu1 %v5414_v0  ;;  %1577 = vmatprep.mubr.f32.mxu0 %v5414_v0 }
 0x1ff   : > { %v1260_v45 = vpop.trf.xlu1  ;;  %v844_v46 = vpop.trf.xlu0 }
 0x200   : > { %3116 = vmatmul.mubr.msk.f32.gmra.mrb[56].mxu1 %vm475_vm0, %v844_v46  ;;  %3147 = vmatmul.mubr.msk.f32.gmra.mrb[62].mxu0 %vm475_vm0, %v1260_v45 }
 0x201   : > { %1172 = vmatprep.mubr.f32.mxu1 %v5414_v0  ;;  %1583 = vmatprep.mubr.f32.mxu0 %v5414_v0 }
 0x203   : > { %v1261_v47 = vpop.trf.xlu1  ;;  %v845_v48 = vpop.trf.xlu0 }
 0x204   : > { %3117 = vmatmul.mubr.msk.f32.gmra.mrb[58].mxu1 %vm475_vm0, %v845_v48  ;;  %3148 = vmatmul.mubr.msk.f32.gmra.mrb[64].mxu0 %vm475_vm0, %v1261_v47 }
 0x205   : > { %1178 = vmatprep.mubr.f32.mxu1 %v5414_v0  ;;  %1589 = vmatprep.mubr.f32.mxu0 %v5414_v0 }
 0x207   : > { %v1262_v49 = vpop.trf.xlu1  ;;  %v846_v50 = vpop.trf.xlu0 }
 0x208   : > { %3118 = vmatmul.mubr.msk.f32.gmra.mrb[60].mxu1 %vm475_vm0, %v846_v50  ;;  %3149 = vmatmul.mubr.msk.f32.gmra.mrb[66].mxu0 %vm475_vm0, %v1262_v49 }
 0x209   : > { %1184 = vmatprep.mubr.f32.mxu1 %v5414_v0  ;;  %1595 = vmatprep.mubr.f32.mxu0 %v5414_v0 }
 0x20b   : > { %v1263_v51 = vpop.trf.xlu1  ;;  %v847_v52 = vpop.trf.xlu0 }
 0x20c   : > { %3119 = vmatmul.mubr.msk.f32.gmra.mrb[62].mxu1 %vm475_vm0, %v847_v52  ;;  %3150 = vmatmul.mubr.msk.f32.gmra.mrb[68].mxu0 %vm475_vm0, %v1263_v51 }
 0x20d   : > { %1190 = vmatprep.mubr.f32.mxu1 %v5414_v0  ;;  %1601 = vmatprep.mubr.f32.mxu0 %v5414_v0 }
 0x20f   : > { %v1264_v53 = vpop.trf.xlu1  ;;  %v848_v54 = vpop.trf.xlu0 }
 0x210   : > { %3120 = vmatmul.mubr.msk.f32.gmra.mrb[64].mxu1 %vm475_vm0, %v848_v54  ;;  %3151 = vmatmul.mubr.msk.f32.gmra.mrb[70].mxu0 %vm475_vm0, %v1264_v53 }
 0x211   : > { %1196 = vmatprep.mubr.f32.mxu1 %v5414_v0  ;;  %1607 = vmatprep.mubr.f32.mxu0 %v5414_v0 }
 0x213   : > { %v1265_v55 = vpop.trf.xlu1  ;;  %v849_v56 = vpop.trf.xlu0 }
 0x214   : > { %3121 = vmatmul.mubr.msk.f32.gmra.mrb[66].mxu1 %vm475_vm0, %v849_v56  ;;  %3152 = vmatmul.mubr.msk.f32.gmra.mrb[72].mxu0 %vm475_vm0, %v1265_v55 }
 0x215   : > { %1613 = vmatprep.mubr.f32.mxu0 %v5414_v0 }
 0x217   : > { %v1266_v57 = vpop.trf.xlu1 }
 0x218   : > { %3153 = vmatmul.mubr.msk.f32.gmra.mrb[74].mxu0 %vm475_vm0, %v1266_v57 }
 0x231   : > { %v4247_v58 = vpop.permute.xlu1 %667 }
 0x232   : > { %5593 = vst [vmem:[#allocation19_spill] sm:$0xff] %v4247_v58  ;;  %v766_v60 = vadd.f32 %v4133_v63, %v4247_v58 }
 0x234   : > { %2644 = vmatprep.mubr.f32.mxu1 %v766_v60 }
 0x26b   : > { %v4251_v61 = vpop.f32.mrb[4].mxu1 }
 0x26c   : > { %v4253_v62 = vpop.f32.mrb[5].mxu1 }
 0x26d   : > { %v1620_v1 = vmax.f32 %v4251_v61, %v4253_v62 }
 0x26f   : > { %v4257_v2 = vpop.f32.mrb[12].mxu0  ;;  %1621 = vmax.xlane.f32.xlu0 %v1620_v1  ;;  %v4259_v6 = vpop.f32.mrb[6].mxu1 }
 0x270   : > { %v4261_v7 = vpop.f32.mrb[7].mxu1  ;;  %v4263_v9 = vpop.f32.mrb[13].mxu0 }
 0x271   : > { %v1716_v63 = vmax.f32 %v4257_v2, %v4263_v9  ;;  %v1623_v10 = vmax.f32 %v4259_v6, %v4261_v7 }
 0x273   : > { %v4269_v11 = vpop.f32.mrb[14].mxu0  ;;  %1717 = vmax.xlane.f32.xlu0 %v1716_v63  ;;  %1624 = vmax.xlane.f32.xlu1 %v1623_v10  ;;  %v4271_v12 = vpop.f32.mrb[8].mxu1 }
 0x274   : > { %v4273_v13 = vpop.f32.mrb[9].mxu1  ;;  %v4275_v14 = vpop.f32.mrb[15].mxu0 }
 0x275   : > { %v1719_v15 = vmax.f32 %v4269_v11, %v4275_v14  ;;  %v1626_v16 = vmax.f32 %v4271_v12, %v4273_v13 }
 0x277   : > { %v4281_v17 = vpop.f32.mrb[16].mxu0  ;;  %1720 = vmax.xlane.f32.xlu0 %v1719_v15  ;;  %1627 = vmax.xlane.f32.xlu1 %v1626_v16  ;;  %v4283_v18 = vpop.f32.mrb[10].mxu1 }
 0x278   : > { %v4285_v19 = vpop.f32.mrb[11].mxu1  ;;  %v4287_v20 = vpop.f32.mrb[17].mxu0 }
 0x279   : > { %v1722_v21 = vmax.f32 %v4281_v17, %v4287_v20  ;;  %v1629_v22 = vmax.f32 %v4283_v18, %v4285_v19 }
 0x27b   : > { %v4293_v23 = vpop.f32.mrb[18].mxu0  ;;  %1723 = vmax.xlane.f32.xlu1 %v1722_v21  ;;  %1630 = vmax.xlane.f32.xlu0 %v1629_v22  ;;  %v4295_v24 = vpop.f32.mrb[12].mxu1 }
 0x27c   : > { %v4297_v25 = vpop.f32.mrb[13].mxu1  ;;  %v4299_v26 = vpop.f32.mrb[19].mxu0 }
 0x27d   : > { %v1725_v27 = vmax.f32 %v4293_v23, %v4299_v26  ;;  %v1632_v28 = vmax.f32 %v4295_v24, %v4297_v25 }
 0x27f   : > { %v4305_v29 = vpop.f32.mrb[20].mxu0  ;;  %1726 = vmax.xlane.f32.xlu0 %v1725_v27  ;;  %1633 = vmax.xlane.f32.xlu1 %v1632_v28  ;;  %v4307_v30 = vpop.f32.mrb[14].mxu1 }
 0x280   : > { %v4309_v31 = vpop.f32.mrb[15].mxu1  ;;  %v4311_v32 = vpop.f32.mrb[21].mxu0 }
 0x281   : > { %v1728_v34 = vmax.f32 %v4305_v29, %v4311_v32  ;;  %v1635_v35 = vmax.f32 %v4307_v30, %v4309_v31 }
 0x283   : > { %v4317_v37 = vpop.f32.mrb[22].mxu0  ;;  %1729 = vmax.xlane.f32.xlu1 %v1728_v34  ;;  %1636 = vmax.xlane.f32.xlu0 %v1635_v35  ;;  %v4319_v38 = vpop.f32.mrb[16].mxu1 }
 0x284   : > { %v4321_v39 = vpop.f32.mrb[17].mxu1  ;;  %v4323_v40 = vpop.f32.mrb[23].mxu0 }
 0x285   : > { %v1731_v41 = vmax.f32 %v4317_v37, %v4323_v40  ;;  %v1638_v42 = vmax.f32 %v4319_v38, %v4321_v39 }
 0x287   : > { %v4329_v43 = vpop.f32.mrb[24].mxu0  ;;  %1732 = vmax.xlane.f32.xlu0 %v1731_v41  ;;  %1639 = vmax.xlane.f32.xlu1 %v1638_v42  ;;  %v4331_v44 = vpop.f32.mrb[18].mxu1 }
 0x288   : > { %v4333_v45 = vpop.f32.mrb[19].mxu1  ;;  %v4335_v46 = vpop.f32.mrb[25].mxu0 }
 0x289   : > { %v1734_v47 = vmax.f32 %v4329_v43, %v4335_v46  ;;  %v1641_v48 = vmax.f32 %v4331_v44, %v4333_v45 }
 0x28b   : > { %v4341_v49 = vpop.f32.mrb[26].mxu0  ;;  %1735 = vmax.xlane.f32.xlu1 %v1734_v47  ;;  %1642 = vmax.xlane.f32.xlu0 %v1641_v48  ;;  %v4343_v50 = vpop.f32.mrb[20].mxu1 }
 0x28c   : > { %v4345_v51 = vpop.f32.mrb[21].mxu1  ;;  %v4347_v52 = vpop.f32.mrb[27].mxu0 }
 0x28d   : > { %v1737_v53 = vmax.f32 %v4341_v49, %v4347_v52  ;;  %v1644_v54 = vmax.f32 %v4343_v50, %v4345_v51 }
 0x28f   : > { %v4353_v55 = vpop.f32.mrb[28].mxu0  ;;  %1738 = vmax.xlane.f32.xlu0 %v1737_v53  ;;  %1645 = vmax.xlane.f32.xlu1 %v1644_v54  ;;  %v4355_v56 = vpop.f32.mrb[22].mxu1 }
 0x290   : > { %v4357_v57 = vpop.f32.mrb[23].mxu1  ;;  %v4359_v60 = vpop.f32.mrb[29].mxu0 }
 0x291   : > { %v1740_v1 = vmax.f32 %v4353_v55, %v4359_v60  ;;  %v1647_v63 = vmax.f32 %v4355_v56, %v4357_v57 }
 0x293   : > { %v4365_v10 = vpop.f32.mrb[30].mxu0  ;;  %1741 = vmax.xlane.f32.xlu1 %v1740_v1  ;;  %1648 = vmax.xlane.f32.xlu0 %v1647_v63  ;;  %v4367_v15 = vpop.f32.mrb[24].mxu1 }
 0x294   : > { %v4369_v16 = vpop.f32.mrb[25].mxu1  ;;  %v4371_v21 = vpop.f32.mrb[31].mxu0 }
 0x295   : > { %v1743_v22 = vmax.f32 %v4365_v10, %v4371_v21  ;;  %v1650_v27 = vmax.f32 %v4367_v15, %v4369_v16 }
 0x297   : > { %v4377_v28 = vpop.f32.mrb[32].mxu0  ;;  %1744 = vmax.xlane.f32.xlu0 %v1743_v22  ;;  %1651 = vmax.xlane.f32.xlu1 %v1650_v27  ;;  %v4379_v34 = vpop.f32.mrb[26].mxu1 }
 0x298   : > { %v4381_v35 = vpop.f32.mrb[27].mxu1  ;;  %v4383_v41 = vpop.f32.mrb[33].mxu0 }
 0x299   : > { %v1746_v42 = vmax.f32 %v4377_v28, %v4383_v41  ;;  %v1653_v47 = vmax.f32 %v4379_v34, %v4381_v35 }
 0x29b   : > { %v4389_v48 = vpop.f32.mrb[34].mxu0  ;;  %1747 = vmax.xlane.f32.xlu1 %v1746_v42  ;;  %1654 = vmax.xlane.f32.xlu0 %v1653_v47  ;;  %v4391_v53 = vpop.f32.mrb[28].mxu1 }
 0x29c   : > { %v4393_v54 = vpop.f32.mrb[29].mxu1  ;;  %v4395_v1 = vpop.f32.mrb[35].mxu0 }
 0x29d   : > { %5594 = vst [vmem:[#allocation20_spill] sm:$0xff] %v4393_v54  ;;  %v1749_v63 = vmax.f32 %v4389_v48, %v4395_v1  ;;  %v1656_v22 = vmax.f32 %v4391_v53, %v4393_v54 }
 0x29f   : > { %v4401_v27 = vpop.f32.mrb[36].mxu0  ;;  %1750 = vmax.xlane.f32.xlu0 %v1749_v63  ;;  %1657 = vmax.xlane.f32.xlu1 %v1656_v22  ;;  %v4403_v0 = vpop.f32.mrb[30].mxu1 }
 0x2a0   : > { %5595 = vst [vmem:[#allocation21_spill] sm:$0xff] %v4401_v27  ;;  %5596 = vst [vmem:[#allocation22_spill] sm:$0xff] %v4403_v0  ;;  %v4405_v42 = vpop.f32.mrb[31].mxu1  ;;  %v4407_v47 = vpop.f32.mrb[37].mxu0 }
 0x2a1   : > { %5597 = vst [vmem:[#allocation23_spill] sm:$0xff] %v4405_v42  ;;  %5598 = vst [vmem:[#allocation24_spill] sm:$0xff] %v4407_v47  ;;  %v1752_v33 = vmax.f32 %v4401_v27, %v4407_v47  ;;  %v1659_v36 = vmax.f32 %v4403_v0, %v4405_v42 }
 0x2a3   : > { %v4413_v3 = vpop.f32.mrb[38].mxu0  ;;  %1753 = vmax.xlane.f32.xlu1 %v1752_v33  ;;  %1660 = vmax.xlane.f32.xlu0 %v1659_v36  ;;  %v4415_v5 = vpop.f32.mrb[32].mxu1 }
 0x2a4   : > { %5599 = vst [vmem:[#allocation25_spill] sm:$0xff] %v4413_v3  ;;  %5600 = vst [vmem:[#allocation26_spill] sm:$0xff] %v4415_v5  ;;  %v4417_v63 = vpop.f32.mrb[33].mxu1  ;;  %v4419_v22 = vpop.f32.mrb[39].mxu0 }
 0x2a5   : > { %5601 = vst [vmem:[#allocation27_spill] sm:$0xff] %v4417_v63  ;;  %5602 = vst [vmem:[#allocation28_spill] sm:$0xff] %v4419_v22  ;;  %v1755_v4 = vmax.f32 %v4413_v3, %v4419_v22  ;;  %v1662_v59 = vmax.f32 %v4415_v5, %v4417_v63 }
 0x2a7   : > { %v4425_v58 = vpop.f32.mrb[40].mxu0  ;;  %1756 = vmax.xlane.f32.xlu0 %v1755_v4  ;;  %1663 = vmax.xlane.f32.xlu1 %v1662_v59  ;;  %v4427_v8 = vpop.f32.mrb[34].mxu1 }
 0x2a8   : > { %5603 = vst [vmem:[#allocation29_spill] sm:$0xff] %v4425_v58  ;;  %5604 = vst [vmem:[#allocation30_spill] sm:$0xff] %v4427_v8  ;;  %v4429_v33 = vpop.f32.mrb[35].mxu1  ;;  %v4431_v36 = vpop.f32.mrb[41].mxu0 }
 0x2a9   : > { %5605 = vst [vmem:[#allocation31_spill] sm:$0xff] %v4429_v33  ;;  %5606 = vst [vmem:[#allocation32_spill] sm:$0xff] %v4431_v36  ;;  %v1665_v42 = vmax.f32 %v4427_v8, %v4429_v33  ;;  %v1758_v0 = vmax.f32 %v4425_v58, %v4431_v36 }
 0x2ab   : > { %v4437_v22 = vpop.f32.mrb[42].mxu0  ;;  %1759 = vmax.xlane.f32.xlu1 %v1758_v0  ;;  %1666 = vmax.xlane.f32.xlu0 %v1665_v42  ;;  %v4439_v63 = vpop.f32.mrb[36].mxu1 }
 0x2ac   : > { %5607 = vst [vmem:[#allocation33_spill] sm:$0xff] %v4437_v22  ;;  %5608 = vst [vmem:[#allocation34_spill] sm:$0xff] %v4439_v63  ;;  %v4441_v4 = vpop.f32.mrb[37].mxu1  ;;  %v4443_v59 = vpop.f32.mrb[43].mxu0 }
 0x2ad   : > { %5609 = vst [vmem:[#allocation35_spill] sm:$0xff] %v4441_v4  ;;  %5610 = vst [vmem:[#allocation36_spill] sm:$0xff] %v4443_v59  ;;  %v1668_v5 = vmax.f32 %v4439_v63, %v4441_v4  ;;  %v1761_v3 = vmax.f32 %v4437_v22, %v4443_v59 }
 0x2af   : > { %v4449_v33 = vpop.f32.mrb[44].mxu0  ;;  %1762 = vmax.xlane.f32.xlu0 %v1761_v3  ;;  %1669 = vmax.xlane.f32.xlu1 %v1668_v5  ;;  %v4451_v8 = vpop.f32.mrb[38].mxu1 }
 0x2b0   : > { %5611 = vst [vmem:[#allocation37_spill] sm:$0xff] %v4449_v33  ;;  %5612 = vst [vmem:[#allocation38_spill] sm:$0xff] %v4451_v8  ;;  %v4453_v0 = vpop.f32.mrb[39].mxu1  ;;  %v4455_v42 = vpop.f32.mrb[45].mxu0 }
 0x2b1   : > { %5613 = vst [vmem:[#allocation39_spill] sm:$0xff] %v4453_v0  ;;  %5614 = vst [vmem:[#allocation40_spill] sm:$0xff] %v4455_v42  ;;  %v1671_v36 = vmax.f32 %v4451_v8, %v4453_v0  ;;  %v1764_v58 = vmax.f32 %v4449_v33, %v4455_v42 }
 0x2b3   : > { %v4461_v4 = vpop.f32.mrb[46].mxu0  ;;  %1765 = vmax.xlane.f32.xlu1 %v1764_v58  ;;  %1672 = vmax.xlane.f32.xlu0 %v1671_v36  ;;  %v4463_v63 = vpop.f32.mrb[40].mxu1 }
 0x2b4   : > { %5615 = vst [vmem:[#allocation41_spill] sm:$0xff] %v4461_v4  ;;  %5616 = vst [vmem:[#allocation42_spill] sm:$0xff] %v4463_v63  ;;  %v4465_v3 = vpop.f32.mrb[41].mxu1  ;;  %v4467_v5 = vpop.f32.mrb[47].mxu0 }
 0x2b5   : > { %5617 = vst [vmem:[#allocation43_spill] sm:$0xff] %v4465_v3  ;;  %5618 = vst [vmem:[#allocation44_spill] sm:$0xff] %v4467_v5  ;;  %v1674_v59 = vmax.f32 %v4463_v63, %v4465_v3  ;;  %v1767_v22 = vmax.f32 %v4461_v4, %v4467_v5 }
 0x2b7   : > { %v4473_v0 = vpop.f32.mrb[48].mxu0  ;;  %1768 = vmax.xlane.f32.xlu0 %v1767_v22  ;;  %1675 = vmax.xlane.f32.xlu1 %v1674_v59  ;;  %v4475_v8 = vpop.f32.mrb[42].mxu1 }
 0x2b8   : > { %5619 = vst [vmem:[#allocation45_spill] sm:$0xff] %v4473_v0  ;;  %5620 = vst [vmem:[#allocation46_spill] sm:$0xff] %v4475_v8  ;;  %v4477_v58 = vpop.f32.mrb[43].mxu1  ;;  %v4479_v36 = vpop.f32.mrb[49].mxu0 }
 0x2b9   : > { %5621 = vst [vmem:[#allocation47_spill] sm:$0xff] %v4477_v58  ;;  %5622 = vst [vmem:[#allocation48_spill] sm:$0xff] %v4479_v36  ;;  %v1677_v42 = vmax.f32 %v4475_v8, %v4477_v58  ;;  %v1770_v33 = vmax.f32 %v4473_v0, %v4479_v36 }
 0x2bb   : > { %v4485_v3 = vpop.f32.mrb[50].mxu0  ;;  %1771 = vmax.xlane.f32.xlu1 %v1770_v33  ;;  %1678 = vmax.xlane.f32.xlu0 %v1677_v42  ;;  %v4487_v63 = vpop.f32.mrb[44].mxu1 }
 0x2bc   : > { %5623 = vst [vmem:[#allocation49_spill] sm:$0xff] %v4485_v3  ;;  %5624 = vst [vmem:[#allocation50_spill] sm:$0xff] %v4487_v63  ;;  %v4489_v22 = vpop.f32.mrb[45].mxu1  ;;  %v4491_v59 = vpop.f32.mrb[51].mxu0 }
 0x2bd   : > { %5625 = vst [vmem:[#allocation51_spill] sm:$0xff] %v4489_v22  ;;  %5626 = vst [vmem:[#allocation52_spill] sm:$0xff] %v4491_v59  ;;  %v1680_v5 = vmax.f32 %v4487_v63, %v4489_v22  ;;  %v1773_v4 = vmax.f32 %v4485_v3, %v4491_v59 }
 0x2bf   : > { %v4497_v58 = vpop.f32.mrb[52].mxu0  ;;  %1774 = vmax.xlane.f32.xlu0 %v1773_v4  ;;  %1681 = vmax.xlane.f32.xlu1 %v1680_v5  ;;  %v4499_v8 = vpop.f32.mrb[46].mxu1 }
 0x2c0   : > { %5627 = vst [vmem:[#allocation53_spill] sm:$0xff] %v4497_v58  ;;  %5628 = vst [vmem:[#allocation54_spill] sm:$0xff] %v4499_v8  ;;  %v4501_v33 = vpop.f32.mrb[47].mxu1  ;;  %v4503_v42 = vpop.f32.mrb[53].mxu0 }
 0x2c1   : > { %5629 = vst [vmem:[#allocation55_spill] sm:$0xff] %v4501_v33  ;;  %5630 = vst [vmem:[#allocation56_spill] sm:$0xff] %v4503_v42  ;;  %v1683_v36 = vmax.f32 %v4499_v8, %v4501_v33  ;;  %v1776_v0 = vmax.f32 %v4497_v58, %v4503_v42 }
 0x2c3   : > { %v4509_v22 = vpop.f32.mrb[54].mxu0  ;;  %1777 = vmax.xlane.f32.xlu1 %v1776_v0  ;;  %1684 = vmax.xlane.f32.xlu0 %v1683_v36  ;;  %v4511_v63 = vpop.f32.mrb[48].mxu1 }
 0x2c4   : > { %5631 = vst [vmem:[#allocation57_spill] sm:$0xff] %v4509_v22  ;;  %5632 = vst [vmem:[#allocation58_spill] sm:$0xff] %v4511_v63  ;;  %v4513_v4 = vpop.f32.mrb[49].mxu1  ;;  %v4515_v5 = vpop.f32.mrb[55].mxu0 }
 0x2c5   : > { %5633 = vst [vmem:[#allocation59_spill] sm:$0xff] %v4513_v4  ;;  %5634 = vst [vmem:[#allocation60_spill] sm:$0xff] %v4515_v5  ;;  %v1686_v59 = vmax.f32 %v4511_v63, %v4513_v4  ;;  %v1779_v3 = vmax.f32 %v4509_v22, %v4515_v5 }
 0x2c7   : > { %v4521_v33 = vpop.f32.mrb[56].mxu0  ;;  %1780 = vmax.xlane.f32.xlu0 %v1779_v3  ;;  %1687 = vmax.xlane.f32.xlu1 %v1686_v59  ;;  %v4523_v8 = vpop.f32.mrb[50].mxu1 }
 0x2c8   : > { %5635 = vst [vmem:[#allocation61_spill] sm:$0xff] %v4521_v33  ;;  %5636 = vst [vmem:[#allocation62_spill] sm:$0xff] %v4523_v8  ;;  %v4525_v0 = vpop.f32.mrb[51].mxu1  ;;  %v4527_v36 = vpop.f32.mrb[57].mxu0 }
 0x2c9   : > { %5637 = vst [vmem:[#allocation63_spill] sm:$0xff] %v4525_v0  ;;  %5638 = vst [vmem:[#allocation64_spill] sm:$0xff] %v4527_v36  ;;  %v1689_v42 = vmax.f32 %v4523_v8, %v4525_v0  ;;  %v1782_v58 = vmax.f32 %v4521_v33, %v4527_v36 }
 0x2cb   : > { %v4533_v4 = vpop.f32.mrb[58].mxu0  ;;  %1783 = vmax.xlane.f32.xlu1 %v1782_v58  ;;  %1690 = vmax.xlane.f32.xlu0 %v1689_v42  ;;  %v4535_v63 = vpop.f32.mrb[52].mxu1 }
 0x2cc   : > { %5639 = vst [vmem:[#allocation65_spill] sm:$0xff] %v4533_v4  ;;  %5640 = vst [vmem:[#allocation66_spill] sm:$0xff] %v4535_v63  ;;  %v4537_v3 = vpop.f32.mrb[53].mxu1  ;;  %v4539_v59 = vpop.f32.mrb[59].mxu0 }
 0x2cd   : > { %5641 = vst [vmem:[#allocation67_spill] sm:$0xff] %v4537_v3  ;;  %5642 = vst [vmem:[#allocation68_spill] sm:$0xff] %v4539_v59  ;;  %v1692_v5 = vmax.f32 %v4535_v63, %v4537_v3  ;;  %v1785_v22 = vmax.f32 %v4533_v4, %v4539_v59 }
 0x2cf   : > { %v4545_v0 = vpop.f32.mrb[60].mxu0  ;;  %1786 = vmax.xlane.f32.xlu0 %v1785_v22  ;;  %1693 = vmax.xlane.f32.xlu1 %v1692_v5  ;;  %v4547_v8 = vpop.f32.mrb[54].mxu1 }
 0x2d0   : > { %5643 = vst [vmem:[#allocation69_spill] sm:$0xff] %v4545_v0  ;;  %5644 = vst [vmem:[#allocation70_spill] sm:$0xff] %v4547_v8  ;;  %v4549_v58 = vpop.f32.mrb[55].mxu1  ;;  %v4551_v42 = vpop.f32.mrb[61].mxu0 }
 0x2d1   : > { %5645 = vst [vmem:[#allocation71_spill] sm:$0xff] %v4549_v58  ;;  %5646 = vst [vmem:[#allocation72_spill] sm:$0xff] %v4551_v42  ;;  %v1695_v36 = vmax.f32 %v4547_v8, %v4549_v58  ;;  %v1788_v33 = vmax.f32 %v4545_v0, %v4551_v42 }
 0x2d3   : > { %v4557_v3 = vpop.f32.mrb[62].mxu0  ;;  %1789 = vmax.xlane.f32.xlu1 %v1788_v33  ;;  %1696 = vmax.xlane.f32.xlu0 %v1695_v36  ;;  %v4559_v63 = vpop.f32.mrb[56].mxu1 }
 0x2d4   : > { %5647 = vst [vmem:[#allocation73_spill] sm:$0xff] %v4557_v3  ;;  %5648 = vst [vmem:[#allocation74_spill] sm:$0xff] %v4559_v63  ;;  %v4561_v22 = vpop.f32.mrb[57].mxu1  ;;  %v4563_v5 = vpop.f32.mrb[63].mxu0 }
 0x2d5   : > { %5649 = vst [vmem:[#allocation75_spill] sm:$0xff] %v4561_v22  ;;  %5650 = vst [vmem:[#allocation76_spill] sm:$0xff] %v4563_v5  ;;  %v1698_v59 = vmax.f32 %v4559_v63, %v4561_v22  ;;  %v1791_v4 = vmax.f32 %v4557_v3, %v4563_v5 }
 0x2d7   : > { %v4569_v58 = vpop.f32.mrb[64].mxu0  ;;  %1792 = vmax.xlane.f32.xlu0 %v1791_v4  ;;  %1699 = vmax.xlane.f32.xlu1 %v1698_v59  ;;  %v4571_v8 = vpop.f32.mrb[58].mxu1 }
 0x2d8   : > { %5651 = vst [vmem:[#allocation77_spill] sm:$0xff] %v4569_v58  ;;  %5652 = vst [vmem:[#allocation78_spill] sm:$0xff] %v4571_v8  ;;  %v4573_v33 = vpop.f32.mrb[59].mxu1  ;;  %v4575_v36 = vpop.f32.mrb[65].mxu0 }
 0x2d9   : > { %5653 = vst [vmem:[#allocation79_spill] sm:$0xff] %v4573_v33  ;;  %5654 = vst [vmem:[#allocation80_spill] sm:$0xff] %v4575_v36  ;;  %v1701_v42 = vmax.f32 %v4571_v8, %v4573_v33  ;;  %v1794_v0 = vmax.f32 %v4569_v58, %v4575_v36 }
 0x2db   : > { %v4581_v22 = vpop.f32.mrb[66].mxu0  ;;  %1795 = vmax.xlane.f32.xlu1 %v1794_v0  ;;  %1702 = vmax.xlane.f32.xlu0 %v1701_v42  ;;  %v4583_v63 = vpop.f32.mrb[60].mxu1 }
 0x2dc   : > { %5655 = vst [vmem:[#allocation81_spill] sm:$0xff] %v4581_v22  ;;  %5656 = vst [vmem:[#allocation82_spill] sm:$0xff] %v4583_v63  ;;  %v4585_v4 = vpop.f32.mrb[61].mxu1  ;;  %v4587_v59 = vpop.f32.mrb[67].mxu0 }
 0x2dd   : > { %5657 = vst [vmem:[#allocation83_spill] sm:$0xff] %v4585_v4  ;;  %5658 = vst [vmem:[#allocation84_spill] sm:$0xff] %v4587_v59  ;;  %v1704_v5 = vmax.f32 %v4583_v63, %v4585_v4  ;;  %v1797_v3 = vmax.f32 %v4581_v22, %v4587_v59 }
 0x2df   : > { %v4593_v33 = vpop.f32.mrb[68].mxu0  ;;  %1798 = vmax.xlane.f32.xlu0 %v1797_v3  ;;  %1705 = vmax.xlane.f32.xlu1 %v1704_v5  ;;  %v4595_v8 = vpop.f32.mrb[62].mxu1 }
 0x2e0   : > { %5659 = vst [vmem:[#allocation85_spill] sm:$0xff] %v4593_v33  ;;  %5660 = vst [vmem:[#allocation86_spill] sm:$0xff] %v4595_v8  ;;  %v4597_v0 = vpop.f32.mrb[63].mxu1  ;;  %v4599_v42 = vpop.f32.mrb[69].mxu0 }
 0x2e1   : > { %5661 = vst [vmem:[#allocation87_spill] sm:$0xff] %v4597_v0  ;;  %5662 = vst [vmem:[#allocation88_spill] sm:$0xff] %v4599_v42  ;;  %v1707_v36 = vmax.f32 %v4595_v8, %v4597_v0  ;;  %v1800_v58 = vmax.f32 %v4593_v33, %v4599_v42 }
 0x2e3   : > { %v4605_v4 = vpop.f32.mrb[70].mxu0  ;;  %1801 = vmax.xlane.f32.xlu1 %v1800_v58  ;;  %1708 = vmax.xlane.f32.xlu0 %v1707_v36  ;;  %v4607_v63 = vpop.f32.mrb[64].mxu1 }
 0x2e4   : > { %5663 = vst [vmem:[#allocation89_spill] sm:$0xff] %v4605_v4  ;;  %5664 = vst [vmem:[#allocation90_spill] sm:$0xff] %v4607_v63  ;;  %v4609_v3 = vpop.f32.mrb[65].mxu1  ;;  %v4611_v5 = vpop.f32.mrb[71].mxu0 }
 0x2e5   : > { %5665 = vst [vmem:[#allocation91_spill] sm:$0xff] %v4609_v3  ;;  %5666 = vst [vmem:[#allocation92_spill] sm:$0xff] %v4611_v5  ;;  %v1710_v59 = vmax.f32 %v4607_v63, %v4609_v3  ;;  %v1803_v22 = vmax.f32 %v4605_v4, %v4611_v5 }
 0x2e7   : > { %v4617_v0 = vpop.f32.mrb[72].mxu0  ;;  %1804 = vmax.xlane.f32.xlu0 %v1803_v22  ;;  %1711 = vmax.xlane.f32.xlu1 %v1710_v59  ;;  %v4619_v8 = vpop.f32.mrb[66].mxu1 }
 0x2e8   : > { %5667 = vst [vmem:[#allocation93_spill] sm:$0xff] %v4617_v0  ;;  %5668 = vst [vmem:[#allocation94_spill] sm:$0xff] %v4619_v8  ;;  %v4621_v58 = vpop.f32.mrb[67].mxu1  ;;  %v4623_v36 = vpop.f32.mrb[73].mxu0 }
 0x2e9   : > { %5669 = vst [vmem:[#allocation95_spill] sm:$0xff] %v4621_v58  ;;  %5670 = vst [vmem:[#allocation96_spill] sm:$0xff] %v4623_v36  ;;  %v1713_v42 = vmax.f32 %v4619_v8, %v4621_v58  ;;  %v1806_v33 = vmax.f32 %v4617_v0, %v4623_v36 }
 0x2eb   : > { %v4629_v3 = vpop.f32.mrb[74].mxu0  ;;  %1807 = vmax.xlane.f32.xlu1 %v1806_v33  ;;  %1714 = vmax.xlane.f32.xlu0 %v1713_v42 }
 0x2ec   : > { %5671 = vst [vmem:[#allocation97_spill] sm:$0xff] %v4629_v3  ;;  %v4631_v63 = vpop.f32.mrb[75].mxu0 }
 0x2ed   : > { %5672 = vst [vmem:[#allocation98_spill] sm:$0xff] %v4631_v63  ;;  %v1809_v22 = vmax.f32 %v4629_v3, %v4631_v63 }
 0x2ef   : > { %1810 = vmax.xlane.f32.xlu0 %v1809_v22 }
 0x2fc   : > { %v1622_v59 = vpop.xlane.xlu0 %1621 }
 0x2fd   : > { %v1812_v5 = vsub.f32 %v4251_v61, %v1622_v59  ;;  %v1813_v4 = vsub.f32 %v4253_v62, %v1622_v59 }
 0x2ff   : > { %v1940_v47 = vmul.f32 1.442695, %v1812_v5  ;;  %v1942_v58 = vmul.f32 1.442695, %v1813_v4 }
 0x300   : > { %v1718_v8 = vpop.xlane.xlu0 %1717  ;;  %v1625_v27 = vpop.xlane.xlu1 %1624 }
 0x301   : > { %3371 = vpow2.f32 %v1940_v47  ;;  %v1876_v36 = vsub.f32 %v4257_v2, %v1718_v8  ;;  %v1877_v33 = vsub.f32 %v4263_v9, %v1718_v8  ;;  %v1814_v42 = vsub.f32 %v4259_v6, %v1625_v27 }
 0x302   : > { %3373 = vpow2.f32 %v1942_v58  ;;  %v1815_v63 = vsub.f32 %v4261_v7, %v1625_v27 }
 0x303   : > { %v2068_v22 = vmul.f32 1.442695, %v1876_v36  ;;  %v2070_v3 = vmul.f32 1.442695, %v1877_v33  ;;  %v1944_v0 = vmul.f32 1.442695, %v1814_v42 }
 0x304   : > { %v1946_v61 = vmul.f32 1.442695, %v1815_v63  ;;  %v1721_v54 = vpop.xlane.xlu0 %1720  ;;  %v1628_v62 = vpop.xlane.xlu1 %1627 }
 0x305   : > { %3375 = vpow2.f32 %v2068_v22  ;;  %v1878_v4 = vsub.f32 %v4269_v11, %v1721_v54  ;;  %v1879_v47 = vsub.f32 %v4275_v14, %v1721_v54  ;;  %v1816_v2 = vsub.f32 %v4271_v12, %v1628_v62 }
 0x306   : > { %3377 = vpow2.f32 %v2070_v3  ;;  %v1817_v8 = vsub.f32 %v4273_v13, %v1628_v62 }
 0x307   : > { %3379 = vpow2.f32 %v1944_v0  ;;  %v2072_v6 = vmul.f32 1.442695, %v1878_v4  ;;  %v2074_v9 = vmul.f32 1.442695, %v1879_v47  ;;  %v1948_v7 = vmul.f32 1.442695, %v1816_v2 }
 0x308   : > { %3381 = vpow2.f32 %v1946_v61  ;;  %v1950_v27 = vmul.f32 1.442695, %v1817_v8  ;;  %v1724_v5 = vpop.xlane.xlu1 %1723  ;;  %v1631_v63 = vpop.xlane.xlu0 %1630 }
 0x309   : > { %3383 = vpow2.f32 %v2072_v6  ;;  %v1880_v58 = vsub.f32 %v4281_v17, %v1724_v5  ;;  %v1881_v11 = vsub.f32 %v4287_v20, %v1724_v5  ;;  %v1818_v14 = vsub.f32 %v4283_v18, %v1631_v63 }
 0x30a   : > { %3385 = vpow2.f32 %v2074_v9  ;;  %v1819_v12 = vsub.f32 %v4285_v19, %v1631_v63 }
 0x30b   : > { %v4649_v54 = vpop.eup %3371  ;;  %3387 = vpow2.f32 %v1948_v7  ;;  %v2076_v13 = vmul.f32 1.442695, %v1880_v58  ;;  %v2078_v0 = vmul.f32 1.442695, %v1881_v11  ;;  %v1952_v3 = vmul.f32 1.442695, %v1818_v14 }
 0x30c   : > { %v4651_v36 = vpop.eup %3373  ;;  %3389 = vpow2.f32 %v1950_v27  ;;  %v1954_v59 = vmul.f32 1.442695, %v1819_v12  ;;  %v1727_v33 = vpop.xlane.xlu0 %1726 }
 0x30d   : > { %v1634_v42 = vpop.xlane.xlu1 %1633  ;;  %3391 = vpow2.f32 %v2076_v13  ;;  %v1882_v17 = vsub.f32 %v4293_v23, %v1727_v33  ;;  %v1883_v18 = vsub.f32 %v4299_v26, %v1727_v33  ;;  %v2196_v22 = vadd.f32 %v4651_v36, %v4649_v54 }
 0x30e   : > { %v1820_v20 = vsub.f32 %v4295_v24, %v1634_v42  ;;  %3393 = vpow2.f32 %v2078_v0  ;;  %v1821_v19 = vsub.f32 %v4297_v25, %v1634_v42 }
 0x30f   : > { %v4659_v61 = vpop.eup %3375  ;;  %3395 = vpow2.f32 %v1952_v3  ;;  %v2080_v62 = vmul.f32 1.442695, %v1882_v17  ;;  %v2082_v4 = vmul.f32 1.442695, %v1883_v18  ;;  %2197 = vadd.xlane.f32.xlu1 %v2196_v22 }
 0x310   : > { %v1956_v47 = vmul.f32 1.442695, %v1820_v20  ;;  %v4661_v2 = vpop.eup %3377  ;;  %3397 = vpow2.f32 %v1954_v59  ;;  %v1958_v23 = vmul.f32 1.442695, %v1821_v19  ;;  %v1637_v8 = vpop.xlane.xlu0 %1636 }
 0x311   : > { %v1730_v26 = vpop.xlane.xlu1 %1729  ;;  %v4663_v24 = vpop.eup %3379  ;;  %3399 = vpow2.f32 %v2080_v62  ;;  %v1822_v9 = vsub.f32 %v4307_v30, %v1637_v8  ;;  %v1823_v27 = vsub.f32 %v4309_v31, %v1637_v8  ;;  %v2292_v5 = vadd.f32 %v4661_v2, %v4659_v61 }
 0x312   : > { %v1884_v25 = vsub.f32 %v4305_v29, %v1730_v26  ;;  %v1885_v6 = vsub.f32 %v4311_v32, %v1730_v26  ;;  %v4668_v7 = vpop.eup %3381  ;;  %3401 = vpow2.f32 %v2082_v4 }
 0x313   : > { %v4673_v63 = vpop.eup %3383  ;;  %3403 = vpow2.f32 %v1956_v47  ;;  %v1960_v14 = vmul.f32 1.442695, %v1822_v9  ;;  %v1962_v29 = vmul.f32 1.442695, %v1823_v27  ;;  %2293 = vadd.xlane.f32.xlu1 %v2292_v5  ;;  %v2199_v30 = vadd.f32 %v4668_v7, %v4663_v24 }
 0x314   : > { %v2084_v58 = vmul.f32 1.442695, %v1884_v25  ;;  %v2086_v11 = vmul.f32 1.442695, %v1885_v6  ;;  %v4675_v12 = vpop.eup %3385  ;;  %3405 = vpow2.f32 %v1958_v23  ;;  %v1733_v32 = vpop.xlane.xlu0 %1732 }
 0x315   : > { %v1640_v13 = vpop.xlane.xlu1 %1639  ;;  %v4679_v31 = vpop.eup %3387  ;;  %v1886_v0 = vsub.f32 %v4317_v37, %v1733_v32  ;;  %v1887_v3 = vsub.f32 %v4323_v40, %v1733_v32  ;;  %2200 = vadd.xlane.f32.xlu0 %v2199_v30  ;;  %v2295_v17 = vadd.f32 %v4675_v12, %v4673_v63 }
 0x316   : > { %3407 = vpow2.f32 %v2084_v58  ;;  %v1824_v59 = vsub.f32 %v4319_v38, %v1640_v13  ;;  %v4684_v33 = vpop.eup %3389  ;;  %v1825_v42 = vsub.f32 %v4321_v39, %v1640_v13 }
 0x317   : > { %3409 = vpow2.f32 %v2086_v11  ;;  %v4689_v18 = vpop.eup %3391  ;;  %v2088_v20 = vmul.f32 1.442695, %v1886_v0  ;;  %v2090_v19 = vmul.f32 1.442695, %v1887_v3  ;;  %v2202_v38 = vadd.f32 %v4684_v33, %v4679_v31 }
 0x318   : > { %3411 = vpow2.f32 %v1960_v14  ;;  %v1964_v22 = vmul.f32 1.442695, %v1824_v59  ;;  %v4691_v37 = vpop.eup %3393  ;;  %v1966_v40 = vmul.f32 1.442695, %v1825_v42  ;;  %v1643_v4 = vpop.xlane.xlu0 %1642 }
 0x319   : > { %3413 = vpow2.f32 %v1962_v29  ;;  %v1736_v62 = vpop.xlane.xlu1 %1735  ;;  %v4695_v47 = vpop.eup %3395  ;;  %v1826_v26 = vsub.f32 %v4331_v44, %v1643_v4  ;;  %2203 = vadd.xlane.f32.xlu1 %v2202_v38  ;;  %2296 = vadd.xlane.f32.xlu0 %v2295_v17  ;;  %v1827_v25 = vsub.f32 %v4333_v45, %v1643_v4  ;;  %v2298_v6 = vadd.f32 %v4691_v37, %v4689_v18 }
 0x31a   : > { %3415 = vpow2.f32 %v2088_v20  ;;  %v1888_v39 = vsub.f32 %v4329_v43, %v1736_v62  ;;  %v1889_v23 = vsub.f32 %v4335_v46, %v1736_v62  ;;  %v4700_v8 = vpop.eup %3397 }
 0x31b   : > { %3417 = vpow2.f32 %v2090_v19  ;;  %v4705_v9 = vpop.eup %3399  ;;  %v1968_v43 = vmul.f32 1.442695, %v1826_v26  ;;  %v1970_v44 = vmul.f32 1.442695, %v1827_v25  ;;  %v2205_v46 = vadd.f32 %v4700_v8, %v4695_v47 }
 0x31c   : > { %3419 = vpow2.f32 %v1964_v22  ;;  %v2092_v27 = vmul.f32 1.442695, %v1888_v39  ;;  %v2094_v5 = vmul.f32 1.442695, %v1889_v23  ;;  %v4707_v58 = vpop.eup %3401  ;;  %v1739_v11 = vpop.xlane.xlu0 %1738 }
 0x31d   : > { %3421 = vpow2.f32 %v1966_v40  ;;  %v1646_v14 = vpop.xlane.xlu1 %1645  ;;  %v4711_v29 = vpop.eup %3403  ;;  %v1890_v45 = vsub.f32 %v4341_v49, %v1739_v11  ;;  %v1891_v30 = vsub.f32 %v4347_v52, %v1739_v11  ;;  %2299 = vadd.xlane.f32.xlu1 %v2298_v6  ;;  %2206 = vadd.xlane.f32.xlu0 %v2205_v46  ;;  %v2301_v3 = vadd.f32 %v4707_v58, %v4705_v9 }
 0x31e   : > { %3423 = vpow2.f32 %v2092_v27  ;;  %v1828_v32 = vsub.f32 %v4343_v50, %v1646_v14  ;;  %v4716_v13 = vpop.eup %3405  ;;  %v1829_v0 = vsub.f32 %v4345_v51, %v1646_v14 }
 0x31f   : > { %3425 = vpow2.f32 %v2094_v5  ;;  %v2096_v42 = vmul.f32 1.442695, %v1890_v45  ;;  %v2098_v17 = vmul.f32 1.442695, %v1891_v30  ;;  %v2208_v52 = vadd.f32 %v4716_v13, %v4711_v29 }
 0x320   : > { %v4721_v59 = vpop.eup %3407  ;;  %3427 = vpow2.f32 %v1968_v43  ;;  %v1972_v49 = vmul.f32 1.442695, %v1828_v32  ;;  %v1974_v50 = vmul.f32 1.442695, %v1829_v0  ;;  %v1649_v22 = vpop.xlane.xlu0 %1648 }
 0x321   : > { %v4723_v20 = vpop.eup %3409  ;;  %3429 = vpow2.f32 %v1970_v44  ;;  %v1742_v19 = vpop.xlane.xlu1 %1741  ;;  %v1830_v62 = vsub.f32 %v4355_v56, %v1649_v22  ;;  %2209 = vadd.xlane.f32.xlu1 %v2208_v52  ;;  %2302 = vadd.xlane.f32.xlu0 %v2301_v3  ;;  %v1831_v39 = vsub.f32 %v4357_v57, %v1649_v22 }
 0x322   : > { %v4727_v40 = vpop.eup %3411  ;;  %3431 = vpow2.f32 %v2096_v42  ;;  %v1892_v51 = vsub.f32 %v4353_v55, %v1742_v19  ;;  %v1893_v38 = vsub.f32 %v4359_v60, %v1742_v19  ;;  %v2304_v23 = vadd.f32 %v4723_v20, %v4721_v59 }
 0x323   : > { %v4732_v4 = vpop.eup %3413  ;;  %3433 = vpow2.f32 %v2098_v17  ;;  %v1976_v55 = vmul.f32 1.442695, %v1830_v62  ;;  %v1978_v56 = vmul.f32 1.442695, %v1831_v39 }
 0x324   : > { %v4737_v26 = vpop.eup %3415  ;;  %3435 = vpow2.f32 %v1972_v49  ;;  %v2100_v25 = vmul.f32 1.442695, %v1892_v51  ;;  %v2102_v6 = vmul.f32 1.442695, %v1893_v38  ;;  %v2211_v60 = vadd.f32 %v4732_v4, %v4727_v40  ;;  %v1745_v5 = vpop.xlane.xlu0 %1744 }
 0x325   : > { %v4739_v27 = vpop.eup %3417  ;;  %3437 = vpow2.f32 %v1974_v50  ;;  %v1652_v43 = vpop.xlane.xlu1 %1651  ;;  %v1894_v57 = vsub.f32 %v4365_v10, %v1745_v5  ;;  %v1895_v46 = vsub.f32 %v4371_v21, %v1745_v5  ;;  %2305 = vadd.xlane.f32.xlu1 %v2304_v23 }
 0x326   : > { %v4743_v44 = vpop.eup %3419  ;;  %3439 = vpow2.f32 %v2100_v25  ;;  %v1832_v11 = vsub.f32 %v4367_v15, %v1652_v43  ;;  %2212 = vadd.xlane.f32.xlu0 %v2211_v60  ;;  %v1833_v45 = vsub.f32 %v4369_v16, %v1652_v43  ;;  %v2307_v30 = vadd.f32 %v4739_v27, %v4737_v26 }
 0x327   : > { %v4748_v14 = vpop.eup %3421  ;;  %3441 = vpow2.f32 %v2102_v6  ;;  %v2104_v0 = vmul.f32 1.442695, %v1894_v57  ;;  %v2106_v3 = vmul.f32 1.442695, %v1895_v46  ;;  %v5673_v57 = vld [vmem:[#allocation20_spill] sm:$0xff] }
 0x328   : > { %v4753_v32 = vpop.eup %3423  ;;  %3443 = vpow2.f32 %v1976_v55  ;;  %v1980_v10 = vmul.f32 1.442695, %v1832_v11  ;;  %v1982_v15 = vmul.f32 1.442695, %v1833_v45  ;;  %v2214_v21 = vadd.f32 %v4748_v14, %v4743_v44  ;;  %v1655_v49 = vpop.xlane.xlu0 %1654 }
 0x329   : > { %v4755_v42 = vpop.eup %3425  ;;  %3445 = vpow2.f32 %v1978_v56  ;;  %v1748_v17 = vpop.xlane.xlu1 %1747  ;;  %v1834_v19 = vsub.f32 %v4379_v34, %v1655_v49  ;;  %v1835_v51 = vsub.f32 %v4381_v35, %v1655_v49 }
 0x32a   : > { %v4759_v50 = vpop.eup %3427  ;;  %3447 = vpow2.f32 %v2104_v0  ;;  %v1896_v16 = vsub.f32 %v4377_v28, %v1748_v17  ;;  %v1897_v52 = vsub.f32 %v4383_v41, %v1748_v17  ;;  %2215 = vadd.xlane.f32.xlu1 %v2214_v21  ;;  %2308 = vadd.xlane.f32.xlu0 %v2307_v30  ;;  %v2310_v38 = vadd.f32 %v4755_v42, %v4753_v32  ;;  %v5674_v17 = vld [vmem:[#allocation21_spill] sm:$0xff] }
 0x32b   : > { %v4764_v22 = vpop.eup %3429  ;;  %3449 = vpow2.f32 %v2106_v3  ;;  %v1984_v28 = vmul.f32 1.442695, %v1834_v19  ;;  %v1986_v34 = vmul.f32 1.442695, %v1835_v51  ;;  %v5676_v19 = vld [vmem:[#allocation22_spill] sm:$0xff] }
 0x32c   : > { %v4769_v62 = vpop.eup %3431  ;;  %3451 = vpow2.f32 %v1980_v10  ;;  %v2108_v39 = vmul.f32 1.442695, %v1896_v16  ;;  %v2110_v23 = vmul.f32 1.442695, %v1897_v52  ;;  %v2217_v41 = vadd.f32 %v4764_v22, %v4759_v50  ;;  %v1751_v6 = vpop.xlane.xlu0 %1750  ;;  %v5675_v16 = vld [vmem:[#allocation24_spill] sm:$0xff] }
 0x32d   : > { %v4771_v25 = vpop.eup %3433  ;;  %3453 = vpow2.f32 %v1982_v15  ;;  %v1658_v55 = vpop.xlane.xlu1 %1657  ;;  %v1898_v35 = vsub.f32 %v4389_v48, %v1751_v6  ;;  %v1899_v60 = vsub.f32 %v4395_v1, %v1751_v6 }
 0x32e   : > { %v4775_v56 = vpop.eup %3435  ;;  %3455 = vpow2.f32 %v2108_v39  ;;  %v1836_v5 = vsub.f32 %v4391_v53, %v1658_v55  ;;  %2311 = vadd.xlane.f32.xlu1 %v2310_v38  ;;  %2218 = vadd.xlane.f32.xlu0 %v2217_v41  ;;  %v1837_v46 = vsub.f32 %v5673_v57, %v1658_v55  ;;  %v2313_v11 = vadd.f32 %v4771_v25, %v4769_v62  ;;  %v5677_v39 = vld [vmem:[#allocation23_spill] sm:$0xff] }
 0x32f   : > { %v4780_v43 = vpop.eup %3437  ;;  %3457 = vpow2.f32 %v2110_v23  ;;  %v2112_v30 = vmul.f32 1.442695, %v1898_v35  ;;  %v2114_v0 = vmul.f32 1.442695, %v1899_v60 }
 0x330   : > { %v4785_v45 = vpop.eup %3439  ;;  %3459 = vpow2.f32 %v1984_v28  ;;  %v1988_v48 = vmul.f32 1.442695, %v1836_v5  ;;  %v1990_v53 = vmul.f32 1.442695, %v1837_v46  ;;  %v2220_v1 = vadd.f32 %v4780_v43, %v4775_v56  ;;  %v1661_v15 = vpop.xlane.xlu0 %1660 }
 0x331   : > { %v4787_v3 = vpop.eup %3441  ;;  %3461 = vpow2.f32 %v1986_v34  ;;  %v1754_v10 = vpop.xlane.xlu1 %1753  ;;  %v1838_v51 = vsub.f32 %v5676_v19, %v1661_v15  ;;  %v1839_v23 = vsub.f32 %v5677_v39, %v1661_v15 }
 0x332   : > { %v4791_v21 = vpop.eup %3443  ;;  %3463 = vpow2.f32 %v2112_v30  ;;  %v1900_v49 = vsub.f32 %v5674_v17, %v1754_v10  ;;  %v1901_v52 = vsub.f32 %v5675_v16, %v1754_v10  ;;  %2221 = vadd.xlane.f32.xlu1 %v2220_v1  ;;  %2314 = vadd.xlane.f32.xlu0 %v2313_v11  ;;  %v2316_v28 = vadd.f32 %v4787_v3, %v4785_v45  ;;  %v5679_v30 = vld [vmem:[#allocation25_spill] sm:$0xff]  ;;  %v5680_v1 = vld [vmem:[#allocation28_spill] sm:$0xff] }
 0x333   : > { %v4796_v38 = vpop.eup %3445  ;;  %3465 = vpow2.f32 %v2114_v0  ;;  %v1992_v55 = vmul.f32 1.442695, %v1838_v51  ;;  %v1994_v60 = vmul.f32 1.442695, %v1839_v23 }
 0x334   : > { %v4801_v34 = vpop.eup %3447  ;;  %3467 = vpow2.f32 %v1988_v48  ;;  %v2116_v41 = vmul.f32 1.442695, %v1900_v49  ;;  %v2118_v6 = vmul.f32 1.442695, %v1901_v52  ;;  %v2223_v5 = vadd.f32 %v4796_v38, %v4791_v21  ;;  %v1757_v57 = vpop.xlane.xlu0 %1756  ;;  %v5681_v48 = vld [vmem:[#allocation26_spill] sm:$0xff] }
 0x335   : > { %v4803_v35 = vpop.eup %3449  ;;  %3469 = vpow2.f32 %v1990_v53  ;;  %v1664_v46 = vpop.xlane.xlu1 %1663  ;;  %v1902_v0 = vsub.f32 %v5679_v30, %v1757_v57  ;;  %v1903_v10 = vsub.f32 %v5680_v1, %v1757_v57  ;;  %v5683_v53 = vld [vmem:[#allocation27_spill] sm:$0xff]  ;;  %v5688_v1 = vld [vmem:[#allocation32_spill] sm:$0xff] }
 0x336   : > { %v4807_v11 = vpop.eup %3451  ;;  %3471 = vpow2.f32 %v2116_v41  ;;  %v1840_v15 = vsub.f32 %v5681_v48, %v1664_v46  ;;  %2317 = vadd.xlane.f32.xlu1 %v2316_v28  ;;  %2224 = vadd.xlane.f32.xlu0 %v2223_v5  ;;  %v1841_v49 = vsub.f32 %v5683_v53, %v1664_v46  ;;  %v2319_v16 = vadd.f32 %v4803_v35, %v4801_v34  ;;  %v5687_v46 = vld [vmem:[#allocation29_spill] sm:$0xff] }
 0x337   : > { %5678 = vst [vmem:[#allocation20_spill] sm:$0xff] %v4807_v11  ;;  %v4812_v17 = vpop.eup %3453  ;;  %3473 = vpow2.f32 %v2118_v6  ;;  %v2120_v19 = vmul.f32 1.442695, %v1902_v0  ;;  %v2122_v51 = vmul.f32 1.442695, %v1903_v10 }
 0x338   : > { %5682 = vst [vmem:[#allocation21_spill] sm:$0xff] %v4812_v17  ;;  %v4817_v52 = vpop.eup %3455  ;;  %3475 = vpow2.f32 %v1992_v55  ;;  %v1996_v39 = vmul.f32 1.442695, %v1840_v15  ;;  %v1998_v41 = vmul.f32 1.442695, %v1841_v49  ;;  %v2226_v6 = vadd.f32 %v4812_v17, %v4807_v11  ;;  %v1667_v5 = vpop.xlane.xlu0 %1666  ;;  %v5689_v55 = vld [vmem:[#allocation30_spill] sm:$0xff] }
 0x339   : > { %5684 = vst [vmem:[#allocation24_spill] sm:$0xff] %v4817_v52  ;;  %v4819_v23 = vpop.eup %3457  ;;  %3477 = vpow2.f32 %v1994_v60  ;;  %v1760_v28 = vpop.xlane.xlu1 %1759  ;;  %v1842_v0 = vsub.f32 %v5689_v55, %v1667_v5  ;;  %v5691_v60 = vld [vmem:[#allocation31_spill] sm:$0xff] }
 0x33a   : > { %5685 = vst [vmem:[#allocation22_spill] sm:$0xff] %v4819_v23  ;;  %v4823_v57 = vpop.eup %3459  ;;  %3479 = vpow2.f32 %v2120_v19  ;;  %v1904_v30 = vsub.f32 %v5687_v46, %v1760_v28  ;;  %v1905_v48 = vsub.f32 %v5688_v1, %v1760_v28  ;;  %2227 = vadd.xlane.f32.xlu1 %v2226_v6  ;;  %2320 = vadd.xlane.f32.xlu0 %v2319_v16 }
 0x33b   : > { %5686 = vst [vmem:[#allocation23_spill] sm:$0xff] %v4823_v57  ;;  %v4828_v10 = vpop.eup %3461  ;;  %3481 = vpow2.f32 %v2122_v51  ;;  %v1843_v15 = vsub.f32 %v5691_v60, %v1667_v5  ;;  %v2322_v53 = vadd.f32 %v4819_v23, %v4817_v52  ;;  %v2000_v46 = vmul.f32 1.442695, %v1842_v0  ;;  %v5695_v5 = vld [vmem:[#allocation33_spill] sm:$0xff]  ;;  %v5696_v60 = vld [vmem:[#allocation36_spill] sm:$0xff] }
 0x33c   : > { %5690 = vst [vmem:[#allocation25_spill] sm:$0xff] %v4828_v10  ;;  %v4833_v49 = vpop.eup %3463  ;;  %3483 = vpow2.f32 %v1996_v39  ;;  %v2124_v19 = vmul.f32 1.442695, %v1904_v30  ;;  %v2126_v11 = vmul.f32 1.442695, %v1905_v48  ;;  %v2229_v51 = vadd.f32 %v4828_v10, %v4823_v57  ;;  %v1763_v6 = vpop.xlane.xlu0 %1762  ;;  %v5697_v39 = vld [vmem:[#allocation34_spill] sm:$0xff] }
 0x33d   : > { %5692 = vst [vmem:[#allocation28_spill] sm:$0xff] %v4833_v49  ;;  %v4835_v17 = vpop.eup %3465  ;;  %3485 = vpow2.f32 %v1998_v41  ;;  %v2002_v28 = vmul.f32 1.442695, %v1843_v15  ;;  %v1670_v16 = vpop.xlane.xlu1 %1669  ;;  %v1906_v55 = vsub.f32 %v5695_v5, %v1763_v6  ;;  %v1907_v52 = vsub.f32 %v5696_v60, %v1763_v6  ;;  %v5699_v41 = vld [vmem:[#allocation35_spill] sm:$0xff] }
 0x33e   : > { %5693 = vst [vmem:[#allocation26_spill] sm:$0xff] %v4835_v17  ;;  %v4839_v1 = vpop.eup %3467  ;;  %3487 = vpow2.f32 %v2124_v19  ;;  %v1844_v30 = vsub.f32 %v5697_v39, %v1670_v16  ;;  %2323 = vadd.xlane.f32.xlu1 %v2322_v53  ;;  %2230 = vadd.xlane.f32.xlu0 %v2229_v51  ;;  %v1845_v0 = vsub.f32 %v5699_v41, %v1670_v16  ;;  %v5703_v16 = vld [vmem:[#allocation37_spill] sm:$0xff]  ;;  %v5704_v41 = vld [vmem:[#allocation40_spill] sm:$0xff] }
 0x33f   : > { %5694 = vst [vmem:[#allocation27_spill] sm:$0xff] %v4839_v1  ;;  %v4844_v48 = vpop.eup %3469  ;;  %3489 = vpow2.f32 %v2126_v11  ;;  %v2325_v15 = vadd.f32 %v4835_v17, %v4833_v49  ;;  %v2128_v19 = vmul.f32 1.442695, %v1906_v55  ;;  %v2130_v57 = vmul.f32 1.442695, %v1907_v52 }
 0x340   : > { %5698 = vst [vmem:[#allocation29_spill] sm:$0xff] %v4844_v48  ;;  %v4849_v23 = vpop.eup %3471  ;;  %3491 = vpow2.f32 %v2000_v46  ;;  %v2004_v5 = vmul.f32 1.442695, %v1844_v30  ;;  %v2006_v6 = vmul.f32 1.442695, %v1845_v0  ;;  %v2232_v11 = vadd.f32 %v4844_v48, %v4839_v1  ;;  %v1673_v51 = vpop.xlane.xlu0 %1672  ;;  %v5705_v46 = vld [vmem:[#allocation38_spill] sm:$0xff] }
 0x341   : > { %5700 = vst [vmem:[#allocation32_spill] sm:$0xff] %v4849_v23  ;;  %v4851_v10 = vpop.eup %3473  ;;  %3493 = vpow2.f32 %v2002_v28  ;;  %v1766_v53 = vpop.xlane.xlu1 %1765  ;;  %v1846_v55 = vsub.f32 %v5705_v46, %v1673_v51  ;;  %v5707_v28 = vld [vmem:[#allocation39_spill] sm:$0xff] }
 0x342   : > { %5701 = vst [vmem:[#allocation30_spill] sm:$0xff] %v4851_v10  ;;  %v4855_v60 = vpop.eup %3475  ;;  %3495 = vpow2.f32 %v2128_v19  ;;  %v1908_v39 = vsub.f32 %v5703_v16, %v1766_v53  ;;  %v1909_v49 = vsub.f32 %v5704_v41, %v1766_v53  ;;  %2233 = vadd.xlane.f32.xlu1 %v2232_v11  ;;  %2326 = vadd.xlane.f32.xlu0 %v2325_v15 }
 0x343   : > { %5702 = vst [vmem:[#allocation31_spill] sm:$0xff] %v4855_v60  ;;  %v4860_v52 = vpop.eup %3477  ;;  %3497 = vpow2.f32 %v2130_v57  ;;  %v1847_v30 = vsub.f32 %v5707_v28, %v1673_v51  ;;  %v2328_v0 = vadd.f32 %v4851_v10, %v4849_v23  ;;  %v2008_v16 = vmul.f32 1.442695, %v1846_v55  ;;  %v5711_v51 = vld [vmem:[#allocation41_spill] sm:$0xff]  ;;  %v5712_v28 = vld [vmem:[#allocation44_spill] sm:$0xff] }
 0x344   : > { %5706 = vst [vmem:[#allocation33_spill] sm:$0xff] %v4860_v52  ;;  %v4865_v1 = vpop.eup %3479  ;;  %3499 = vpow2.f32 %v2004_v5  ;;  %v2132_v19 = vmul.f32 1.442695, %v1908_v39  ;;  %v2134_v48 = vmul.f32 1.442695, %v1909_v49  ;;  %v2235_v57 = vadd.f32 %v4860_v52, %v4855_v60  ;;  %v1769_v11 = vpop.xlane.xlu0 %1768  ;;  %v5713_v5 = vld [vmem:[#allocation42_spill] sm:$0xff] }
 0x345   : > { %5708 = vst [vmem:[#allocation36_spill] sm:$0xff] %v4865_v1  ;;  %v4867_v17 = vpop.eup %3481  ;;  %3501 = vpow2.f32 %v2006_v6  ;;  %v2010_v53 = vmul.f32 1.442695, %v1847_v30  ;;  %v1676_v15 = vpop.xlane.xlu1 %1675  ;;  %v1910_v46 = vsub.f32 %v5711_v51, %v1769_v11  ;;  %v1911_v23 = vsub.f32 %v5712_v28, %v1769_v11  ;;  %v5715_v6 = vld [vmem:[#allocation43_spill] sm:$0xff] }
 0x346   : > { %5709 = vst [vmem:[#allocation34_spill] sm:$0xff] %v4867_v17  ;;  %v4871_v41 = vpop.eup %3483  ;;  %3503 = vpow2.f32 %v2132_v19  ;;  %v1848_v39 = vsub.f32 %v5713_v5, %v1676_v15  ;;  %2329 = vadd.xlane.f32.xlu1 %v2328_v0  ;;  %2236 = vadd.xlane.f32.xlu0 %v2235_v57  ;;  %v1849_v55 = vsub.f32 %v5715_v6, %v1676_v15  ;;  %v5719_v15 = vld [vmem:[#allocation45_spill] sm:$0xff]  ;;  %v5720_v6 = vld [vmem:[#allocation48_spill] sm:$0xff] }
 0x347   : > { %5710 = vst [vmem:[#allocation35_spill] sm:$0xff] %v4871_v41  ;;  %v4876_v49 = vpop.eup %3485  ;;  %3505 = vpow2.f32 %v2134_v48  ;;  %v2331_v30 = vadd.f32 %v4867_v17, %v4865_v1  ;;  %v2136_v19 = vmul.f32 1.442695, %v1910_v46  ;;  %v2138_v60 = vmul.f32 1.442695, %v1911_v23 }
 0x348   : > { %5714 = vst [vmem:[#allocation37_spill] sm:$0xff] %v4876_v49  ;;  %v4881_v10 = vpop.eup %3487  ;;  %3507 = vpow2.f32 %v2008_v16  ;;  %v2012_v51 = vmul.f32 1.442695, %v1848_v39  ;;  %v2014_v11 = vmul.f32 1.442695, %v1849_v55  ;;  %v2238_v48 = vadd.f32 %v4876_v49, %v4871_v41  ;;  %v1679_v57 = vpop.xlane.xlu0 %1678  ;;  %v5721_v16 = vld [vmem:[#allocation46_spill] sm:$0xff] }
 0x349   : > { %5716 = vst [vmem:[#allocation40_spill] sm:$0xff] %v4881_v10  ;;  %v4883_v52 = vpop.eup %3489  ;;  %3509 = vpow2.f32 %v2010_v53  ;;  %v1772_v0 = vpop.xlane.xlu1 %1771  ;;  %v1850_v46 = vsub.f32 %v5721_v16, %v1679_v57  ;;  %v5723_v53 = vld [vmem:[#allocation47_spill] sm:$0xff] }
 0x34a   : > { %5717 = vst [vmem:[#allocation38_spill] sm:$0xff] %v4883_v52  ;;  %v4887_v28 = vpop.eup %3491  ;;  %3511 = vpow2.f32 %v2136_v19  ;;  %v1912_v5 = vsub.f32 %v5719_v15, %v1772_v0  ;;  %v1913_v1 = vsub.f32 %v5720_v6, %v1772_v0  ;;  %2239 = vadd.xlane.f32.xlu1 %v2238_v48  ;;  %2332 = vadd.xlane.f32.xlu0 %v2331_v30 }
 0x34b   : > { %5718 = vst [vmem:[#allocation39_spill] sm:$0xff] %v4887_v28  ;;  %v4892_v23 = vpop.eup %3493  ;;  %3513 = vpow2.f32 %v2138_v60  ;;  %v1851_v39 = vsub.f32 %v5723_v53, %v1679_v57  ;;  %v2334_v55 = vadd.f32 %v4883_v52, %v4881_v10  ;;  %v2016_v15 = vmul.f32 1.442695, %v1850_v46  ;;  %v5727_v57 = vld [vmem:[#allocation49_spill] sm:$0xff]  ;;  %v5728_v53 = vld [vmem:[#allocation52_spill] sm:$0xff] }
 0x34c   : > { %5722 = vst [vmem:[#allocation41_spill] sm:$0xff] %v4892_v23  ;;  %v4897_v41 = vpop.eup %3495  ;;  %3515 = vpow2.f32 %v2012_v51  ;;  %v2140_v19 = vmul.f32 1.442695, %v1912_v5  ;;  %v2142_v49 = vmul.f32 1.442695, %v1913_v1  ;;  %v2241_v60 = vadd.f32 %v4892_v23, %v4887_v28  ;;  %v1775_v48 = vpop.xlane.xlu0 %1774  ;;  %v5729_v51 = vld [vmem:[#allocation50_spill] sm:$0xff] }
 0x34d   : > { %5724 = vst [vmem:[#allocation44_spill] sm:$0xff] %v4897_v41  ;;  %v4899_v17 = vpop.eup %3497  ;;  %3517 = vpow2.f32 %v2014_v11  ;;  %v2018_v0 = vmul.f32 1.442695, %v1851_v39  ;;  %v1682_v30 = vpop.xlane.xlu1 %1681  ;;  %v1914_v16 = vsub.f32 %v5727_v57, %v1775_v48  ;;  %v1915_v10 = vsub.f32 %v5728_v53, %v1775_v48  ;;  %v5731_v11 = vld [vmem:[#allocation51_spill] sm:$0xff] }
 0x34e   : > { %5725 = vst [vmem:[#allocation42_spill] sm:$0xff] %v4899_v17  ;;  %v4903_v6 = vpop.eup %3499  ;;  %3519 = vpow2.f32 %v2140_v19  ;;  %v1852_v5 = vsub.f32 %v5729_v51, %v1682_v30  ;;  %2335 = vadd.xlane.f32.xlu1 %v2334_v55  ;;  %2242 = vadd.xlane.f32.xlu0 %v2241_v60  ;;  %v1853_v46 = vsub.f32 %v5731_v11, %v1682_v30  ;;  %v5735_v30 = vld [vmem:[#allocation53_spill] sm:$0xff]  ;;  %v5736_v11 = vld [vmem:[#allocation56_spill] sm:$0xff] }
 0x34f   : > { %5726 = vst [vmem:[#allocation43_spill] sm:$0xff] %v4903_v6  ;;  %v4908_v1 = vpop.eup %3501  ;;  %3521 = vpow2.f32 %v2142_v49  ;;  %v2337_v39 = vadd.f32 %v4899_v17, %v4897_v41  ;;  %v2144_v19 = vmul.f32 1.442695, %v1914_v16  ;;  %v2146_v28 = vmul.f32 1.442695, %v1915_v10 }
 0x350   : > { %5730 = vst [vmem:[#allocation45_spill] sm:$0xff] %v4908_v1  ;;  %v4913_v52 = vpop.eup %3503  ;;  %3523 = vpow2.f32 %v2016_v15  ;;  %v2020_v57 = vmul.f32 1.442695, %v1852_v5  ;;  %v2022_v48 = vmul.f32 1.442695, %v1853_v46  ;;  %v2244_v49 = vadd.f32 %v4908_v1, %v4903_v6  ;;  %v1685_v60 = vpop.xlane.xlu0 %1684  ;;  %v5737_v15 = vld [vmem:[#allocation54_spill] sm:$0xff] }
 0x351   : > { %5732 = vst [vmem:[#allocation48_spill] sm:$0xff] %v4913_v52  ;;  %v4915_v23 = vpop.eup %3505  ;;  %3525 = vpow2.f32 %v2018_v0  ;;  %v1778_v55 = vpop.xlane.xlu1 %1777  ;;  %v1854_v16 = vsub.f32 %v5737_v15, %v1685_v60  ;;  %v5739_v0 = vld [vmem:[#allocation55_spill] sm:$0xff] }
 0x352   : > { %5733 = vst [vmem:[#allocation46_spill] sm:$0xff] %v4915_v23  ;;  %v4919_v53 = vpop.eup %3507  ;;  %3527 = vpow2.f32 %v2144_v19  ;;  %v1916_v51 = vsub.f32 %v5735_v30, %v1778_v55  ;;  %v1917_v41 = vsub.f32 %v5736_v11, %v1778_v55  ;;  %2245 = vadd.xlane.f32.xlu1 %v2244_v49  ;;  %2338 = vadd.xlane.f32.xlu0 %v2337_v39 }
 0x353   : > { %5734 = vst [vmem:[#allocation47_spill] sm:$0xff] %v4919_v53  ;;  %v4924_v10 = vpop.eup %3509  ;;  %3529 = vpow2.f32 %v2146_v28  ;;  %v1855_v5 = vsub.f32 %v5739_v0, %v1685_v60  ;;  %v2340_v46 = vadd.f32 %v4915_v23, %v4913_v52  ;;  %v2024_v30 = vmul.f32 1.442695, %v1854_v16  ;;  %v5743_v60 = vld [vmem:[#allocation57_spill] sm:$0xff]  ;;  %v5744_v0 = vld [vmem:[#allocation60_spill] sm:$0xff] }
 0x354   : > { %5738 = vst [vmem:[#allocation49_spill] sm:$0xff] %v4924_v10  ;;  %v4929_v6 = vpop.eup %3511  ;;  %3531 = vpow2.f32 %v2020_v57  ;;  %v2148_v19 = vmul.f32 1.442695, %v1916_v51  ;;  %v2150_v1 = vmul.f32 1.442695, %v1917_v41  ;;  %v2247_v28 = vadd.f32 %v4924_v10, %v4919_v53  ;;  %v1781_v49 = vpop.xlane.xlu0 %1780  ;;  %v5745_v57 = vld [vmem:[#allocation58_spill] sm:$0xff] }
 0x355   : > { %5740 = vst [vmem:[#allocation52_spill] sm:$0xff] %v4929_v6  ;;  %v4931_v17 = vpop.eup %3513  ;;  %3533 = vpow2.f32 %v2022_v48  ;;  %v2026_v55 = vmul.f32 1.442695, %v1855_v5  ;;  %v1688_v39 = vpop.xlane.xlu1 %1687  ;;  %v1918_v15 = vsub.f32 %v5743_v60, %v1781_v49  ;;  %v1919_v52 = vsub.f32 %v5744_v0, %v1781_v49  ;;  %v5747_v48 = vld [vmem:[#allocation59_spill] sm:$0xff] }
 0x356   : > { %5741 = vst [vmem:[#allocation50_spill] sm:$0xff] %v4931_v17  ;;  %v4935_v11 = vpop.eup %3515  ;;  %3535 = vpow2.f32 %v2148_v19  ;;  %v1856_v51 = vsub.f32 %v5745_v57, %v1688_v39  ;;  %2341 = vadd.xlane.f32.xlu1 %v2340_v46  ;;  %2248 = vadd.xlane.f32.xlu0 %v2247_v28  ;;  %v1857_v16 = vsub.f32 %v5747_v48, %v1688_v39  ;;  %v5751_v39 = vld [vmem:[#allocation61_spill] sm:$0xff]  ;;  %v5752_v48 = vld [vmem:[#allocation64_spill] sm:$0xff] }
 0x357   : > { %5742 = vst [vmem:[#allocation51_spill] sm:$0xff] %v4935_v11  ;;  %v4940_v41 = vpop.eup %3517  ;;  %3537 = vpow2.f32 %v2150_v1  ;;  %v2343_v5 = vadd.f32 %v4931_v17, %v4929_v6  ;;  %v2152_v19 = vmul.f32 1.442695, %v1918_v15  ;;  %v2154_v53 = vmul.f32 1.442695, %v1919_v52 }
 0x358   : > { %5746 = vst [vmem:[#allocation53_spill] sm:$0xff] %v4940_v41  ;;  %v4945_v23 = vpop.eup %3519  ;;  %3539 = vpow2.f32 %v2024_v30  ;;  %v2028_v60 = vmul.f32 1.442695, %v1856_v51  ;;  %v2030_v49 = vmul.f32 1.442695, %v1857_v16  ;;  %v2250_v1 = vadd.f32 %v4940_v41, %v4935_v11  ;;  %v1691_v28 = vpop.xlane.xlu0 %1690  ;;  %v5753_v30 = vld [vmem:[#allocation62_spill] sm:$0xff] }
 0x359   : > { %5748 = vst [vmem:[#allocation56_spill] sm:$0xff] %v4945_v23  ;;  %v4947_v10 = vpop.eup %3521  ;;  %3541 = vpow2.f32 %v2026_v55  ;;  %v1784_v46 = vpop.xlane.xlu1 %1783  ;;  %v1858_v15 = vsub.f32 %v5753_v30, %v1691_v28  ;;  %v5755_v55 = vld [vmem:[#allocation63_spill] sm:$0xff] }
 0x35a   : > { %5749 = vst [vmem:[#allocation54_spill] sm:$0xff] %v4947_v10  ;;  %v4951_v0 = vpop.eup %3523  ;;  %3543 = vpow2.f32 %v2152_v19  ;;  %v1920_v57 = vsub.f32 %v5751_v39, %v1784_v46  ;;  %v1921_v6 = vsub.f32 %v5752_v48, %v1784_v46  ;;  %2251 = vadd.xlane.f32.xlu1 %v2250_v1  ;;  %2344 = vadd.xlane.f32.xlu0 %v2343_v5 }
 0x35b   : > { %5750 = vst [vmem:[#allocation55_spill] sm:$0xff] %v4951_v0  ;;  %v4956_v52 = vpop.eup %3525  ;;  %3545 = vpow2.f32 %v2154_v53  ;;  %v1859_v51 = vsub.f32 %v5755_v55, %v1691_v28  ;;  %v2346_v16 = vadd.f32 %v4947_v10, %v4945_v23  ;;  %v2032_v39 = vmul.f32 1.442695, %v1858_v15  ;;  %v5759_v28 = vld [vmem:[#allocation65_spill] sm:$0xff]  ;;  %v5760_v55 = vld [vmem:[#allocation68_spill] sm:$0xff] }
 0x35c   : > { %5754 = vst [vmem:[#allocation57_spill] sm:$0xff] %v4956_v52  ;;  %v4961_v11 = vpop.eup %3527  ;;  %3547 = vpow2.f32 %v2028_v60  ;;  %v2156_v19 = vmul.f32 1.442695, %v1920_v57  ;;  %v2158_v41 = vmul.f32 1.442695, %v1921_v6  ;;  %v2253_v53 = vadd.f32 %v4956_v52, %v4951_v0  ;;  %v1787_v1 = vpop.xlane.xlu0 %1786  ;;  %v5761_v60 = vld [vmem:[#allocation66_spill] sm:$0xff] }
 0x35d   : > { %5756 = vst [vmem:[#allocation60_spill] sm:$0xff] %v4961_v11  ;;  %v4963_v17 = vpop.eup %3529  ;;  %3549 = vpow2.f32 %v2030_v49  ;;  %v2034_v46 = vmul.f32 1.442695, %v1859_v51  ;;  %v1694_v5 = vpop.xlane.xlu1 %1693  ;;  %v1922_v30 = vsub.f32 %v5759_v28, %v1787_v1  ;;  %v1923_v23 = vsub.f32 %v5760_v55, %v1787_v1  ;;  %v5763_v49 = vld [vmem:[#allocation67_spill] sm:$0xff] }
 0x35e   : > { %5757 = vst [vmem:[#allocation58_spill] sm:$0xff] %v4963_v17  ;;  %v4967_v48 = vpop.eup %3531  ;;  %3551 = vpow2.f32 %v2156_v19  ;;  %v1860_v57 = vsub.f32 %v5761_v60, %v1694_v5  ;;  %2347 = vadd.xlane.f32.xlu1 %v2346_v16  ;;  %2254 = vadd.xlane.f32.xlu0 %v2253_v53  ;;  %v1861_v15 = vsub.f32 %v5763_v49, %v1694_v5  ;;  %v5767_v5 = vld [vmem:[#allocation69_spill] sm:$0xff]  ;;  %v5768_v49 = vld [vmem:[#allocation72_spill] sm:$0xff] }
 0x35f   : > { %5758 = vst [vmem:[#allocation59_spill] sm:$0xff] %v4967_v48  ;;  %v4972_v6 = vpop.eup %3533  ;;  %3553 = vpow2.f32 %v2158_v41  ;;  %v2349_v51 = vadd.f32 %v4963_v17, %v4961_v11  ;;  %v2160_v19 = vmul.f32 1.442695, %v1922_v30  ;;  %v2162_v0 = vmul.f32 1.442695, %v1923_v23 }
 0x360   : > { %5762 = vst [vmem:[#allocation61_spill] sm:$0xff] %v4972_v6  ;;  %v4977_v10 = vpop.eup %3535  ;;  %3555 = vpow2.f32 %v2032_v39  ;;  %v2036_v28 = vmul.f32 1.442695, %v1860_v57  ;;  %v2038_v1 = vmul.f32 1.442695, %v1861_v15  ;;  %v2256_v41 = vadd.f32 %v4972_v6, %v4967_v48  ;;  %v1697_v53 = vpop.xlane.xlu0 %1696  ;;  %v5769_v39 = vld [vmem:[#allocation70_spill] sm:$0xff] }
 0x361   : > { %5764 = vst [vmem:[#allocation64_spill] sm:$0xff] %v4977_v10  ;;  %v4979_v52 = vpop.eup %3537  ;;  %3557 = vpow2.f32 %v2034_v46  ;;  %v1790_v16 = vpop.xlane.xlu1 %1789  ;;  %v1862_v30 = vsub.f32 %v5769_v39, %v1697_v53  ;;  %v5771_v46 = vld [vmem:[#allocation71_spill] sm:$0xff] }
 0x362   : > { %5765 = vst [vmem:[#allocation62_spill] sm:$0xff] %v4979_v52  ;;  %v4983_v55 = vpop.eup %3539  ;;  %3559 = vpow2.f32 %v2160_v19  ;;  %v1924_v60 = vsub.f32 %v5767_v5, %v1790_v16  ;;  %v1925_v11 = vsub.f32 %v5768_v49, %v1790_v16  ;;  %2257 = vadd.xlane.f32.xlu1 %v2256_v41  ;;  %2350 = vadd.xlane.f32.xlu0 %v2349_v51 }
 0x363   : > { %5766 = vst [vmem:[#allocation63_spill] sm:$0xff] %v4983_v55  ;;  %v4988_v23 = vpop.eup %3541  ;;  %3561 = vpow2.f32 %v2162_v0  ;;  %v1863_v57 = vsub.f32 %v5771_v46, %v1697_v53  ;;  %v2352_v15 = vadd.f32 %v4979_v52, %v4977_v10  ;;  %v2040_v5 = vmul.f32 1.442695, %v1862_v30  ;;  %v5775_v53 = vld [vmem:[#allocation73_spill] sm:$0xff]  ;;  %v5776_v46 = vld [vmem:[#allocation76_spill] sm:$0xff] }
 0x364   : > { %5770 = vst [vmem:[#allocation65_spill] sm:$0xff] %v4988_v23  ;;  %v4993_v48 = vpop.eup %3543  ;;  %3563 = vpow2.f32 %v2036_v28  ;;  %v2164_v19 = vmul.f32 1.442695, %v1924_v60  ;;  %v2166_v6 = vmul.f32 1.442695, %v1925_v11  ;;  %v2259_v0 = vadd.f32 %v4988_v23, %v4983_v55  ;;  %v1793_v41 = vpop.xlane.xlu0 %1792  ;;  %v5777_v28 = vld [vmem:[#allocation74_spill] sm:$0xff] }
 0x365   : > { %5772 = vst [vmem:[#allocation68_spill] sm:$0xff] %v4993_v48  ;;  %v4995_v17 = vpop.eup %3545  ;;  %3565 = vpow2.f32 %v2038_v1  ;;  %v2042_v16 = vmul.f32 1.442695, %v1863_v57  ;;  %v1700_v51 = vpop.xlane.xlu1 %1699  ;;  %v1926_v39 = vsub.f32 %v5775_v53, %v1793_v41  ;;  %v1927_v10 = vsub.f32 %v5776_v46, %v1793_v41  ;;  %v5779_v1 = vld [vmem:[#allocation75_spill] sm:$0xff] }
 0x366   : > { %5773 = vst [vmem:[#allocation66_spill] sm:$0xff] %v4995_v17  ;;  %v4999_v49 = vpop.eup %3547  ;;  %3567 = vpow2.f32 %v2164_v19  ;;  %v1864_v60 = vsub.f32 %v5777_v28, %v1700_v51  ;;  %2353 = vadd.xlane.f32.xlu1 %v2352_v15  ;;  %2260 = vadd.xlane.f32.xlu0 %v2259_v0  ;;  %v1865_v30 = vsub.f32 %v5779_v1, %v1700_v51  ;;  %v5783_v51 = vld [vmem:[#allocation77_spill] sm:$0xff]  ;;  %v5784_v1 = vld [vmem:[#allocation80_spill] sm:$0xff] }
 0x367   : > { %5774 = vst [vmem:[#allocation67_spill] sm:$0xff] %v4999_v49  ;;  %v5004_v11 = vpop.eup %3549  ;;  %3569 = vpow2.f32 %v2166_v6  ;;  %v2355_v57 = vadd.f32 %v4995_v17, %v4993_v48  ;;  %v2168_v19 = vmul.f32 1.442695, %v1926_v39  ;;  %v2170_v55 = vmul.f32 1.442695, %v1927_v10 }
 0x368   : > { %5778 = vst [vmem:[#allocation69_spill] sm:$0xff] %v5004_v11  ;;  %v5009_v52 = vpop.eup %3551  ;;  %3571 = vpow2.f32 %v2040_v5  ;;  %v2044_v53 = vmul.f32 1.442695, %v1864_v60  ;;  %v2046_v41 = vmul.f32 1.442695, %v1865_v30  ;;  %v2262_v6 = vadd.f32 %v5004_v11, %v4999_v49  ;;  %v1703_v0 = vpop.xlane.xlu0 %1702  ;;  %v5785_v5 = vld [vmem:[#allocation78_spill] sm:$0xff] }
 0x369   : > { %5780 = vst [vmem:[#allocation72_spill] sm:$0xff] %v5009_v52  ;;  %v5011_v23 = vpop.eup %3553  ;;  %3573 = vpow2.f32 %v2042_v16  ;;  %v1796_v15 = vpop.xlane.xlu1 %1795  ;;  %v1866_v39 = vsub.f32 %v5785_v5, %v1703_v0  ;;  %v5787_v16 = vld [vmem:[#allocation79_spill] sm:$0xff] }
 0x36a   : > { %5781 = vst [vmem:[#allocation70_spill] sm:$0xff] %v5011_v23  ;;  %v5015_v46 = vpop.eup %3555  ;;  %3575 = vpow2.f32 %v2168_v19  ;;  %v1928_v28 = vsub.f32 %v5783_v51, %v1796_v15  ;;  %v1929_v48 = vsub.f32 %v5784_v1, %v1796_v15  ;;  %2263 = vadd.xlane.f32.xlu1 %v2262_v6  ;;  %2356 = vadd.xlane.f32.xlu0 %v2355_v57 }
 0x36b   : > { %5782 = vst [vmem:[#allocation71_spill] sm:$0xff] %v5015_v46  ;;  %v5020_v10 = vpop.eup %3557  ;;  %3577 = vpow2.f32 %v2170_v55  ;;  %v1867_v60 = vsub.f32 %v5787_v16, %v1703_v0  ;;  %v2358_v30 = vadd.f32 %v5011_v23, %v5009_v52  ;;  %v2048_v51 = vmul.f32 1.442695, %v1866_v39  ;;  %v5791_v0 = vld [vmem:[#allocation81_spill] sm:$0xff]  ;;  %v5792_v16 = vld [vmem:[#allocation84_spill] sm:$0xff] }
 0x36c   : > { %5786 = vst [vmem:[#allocation73_spill] sm:$0xff] %v5020_v10  ;;  %v5025_v49 = vpop.eup %3559  ;;  %3579 = vpow2.f32 %v2044_v53  ;;  %v2172_v19 = vmul.f32 1.442695, %v1928_v28  ;;  %v2174_v11 = vmul.f32 1.442695, %v1929_v48  ;;  %v2265_v55 = vadd.f32 %v5020_v10, %v5015_v46  ;;  %v1799_v6 = vpop.xlane.xlu0 %1798  ;;  %v5793_v53 = vld [vmem:[#allocation82_spill] sm:$0xff] }
 0x36d   : > { %5788 = vst [vmem:[#allocation76_spill] sm:$0xff] %v5025_v49  ;;  %v5027_v17 = vpop.eup %3561  ;;  %3581 = vpow2.f32 %v2046_v41  ;;  %v2050_v15 = vmul.f32 1.442695, %v1867_v60  ;;  %v1706_v57 = vpop.xlane.xlu1 %1705  ;;  %v1930_v5 = vsub.f32 %v5791_v0, %v1799_v6  ;;  %v1931_v52 = vsub.f32 %v5792_v16, %v1799_v6  ;;  %v5795_v41 = vld [vmem:[#allocation83_spill] sm:$0xff] }
 0x36e   : > { %5789 = vst [vmem:[#allocation74_spill] sm:$0xff] %v5027_v17  ;;  %v5031_v1 = vpop.eup %3563  ;;  %3583 = vpow2.f32 %v2172_v19  ;;  %v1868_v28 = vsub.f32 %v5793_v53, %v1706_v57  ;;  %2359 = vadd.xlane.f32.xlu1 %v2358_v30  ;;  %2266 = vadd.xlane.f32.xlu0 %v2265_v55  ;;  %v1869_v39 = vsub.f32 %v5795_v41, %v1706_v57  ;;  %v5799_v57 = vld [vmem:[#allocation85_spill] sm:$0xff]  ;;  %v5800_v41 = vld [vmem:[#allocation88_spill] sm:$0xff] }
 0x36f   : > { %5790 = vst [vmem:[#allocation75_spill] sm:$0xff] %v5031_v1  ;;  %v5036_v48 = vpop.eup %3565  ;;  %3585 = vpow2.f32 %v2174_v11  ;;  %v2361_v60 = vadd.f32 %v5027_v17, %v5025_v49  ;;  %v2176_v19 = vmul.f32 1.442695, %v1930_v5  ;;  %v2178_v46 = vmul.f32 1.442695, %v1931_v52 }
 0x370   : > { %5794 = vst [vmem:[#allocation77_spill] sm:$0xff] %v5036_v48  ;;  %v5041_v23 = vpop.eup %3567  ;;  %3587 = vpow2.f32 %v2048_v51  ;;  %v2052_v0 = vmul.f32 1.442695, %v1868_v28  ;;  %v2054_v6 = vmul.f32 1.442695, %v1869_v39  ;;  %v2268_v11 = vadd.f32 %v5036_v48, %v5031_v1  ;;  %v1709_v55 = vpop.xlane.xlu0 %1708  ;;  %v5801_v51 = vld [vmem:[#allocation86_spill] sm:$0xff] }
 0x371   : > { %5796 = vst [vmem:[#allocation80_spill] sm:$0xff] %v5041_v23  ;;  %v5043_v10 = vpop.eup %3569  ;;  %3589 = vpow2.f32 %v2050_v15  ;;  %v1802_v30 = vpop.xlane.xlu1 %1801  ;;  %v1870_v5 = vsub.f32 %v5801_v51, %v1709_v55  ;;  %v5803_v15 = vld [vmem:[#allocation87_spill] sm:$0xff] }
 0x372   : > { %5797 = vst [vmem:[#allocation78_spill] sm:$0xff] %v5043_v10  ;;  %v5047_v16 = vpop.eup %3571  ;;  %3591 = vpow2.f32 %v2176_v19  ;;  %v1932_v53 = vsub.f32 %v5799_v57, %v1802_v30  ;;  %v1933_v49 = vsub.f32 %v5800_v41, %v1802_v30  ;;  %2269 = vadd.xlane.f32.xlu1 %v2268_v11  ;;  %2362 = vadd.xlane.f32.xlu0 %v2361_v60 }
 0x373   : > { %5798 = vst [vmem:[#allocation79_spill] sm:$0xff] %v5047_v16  ;;  %v5052_v52 = vpop.eup %3573  ;;  %3593 = vpow2.f32 %v2178_v46  ;;  %v1871_v28 = vsub.f32 %v5803_v15, %v1709_v55  ;;  %v2364_v39 = vadd.f32 %v5043_v10, %v5041_v23  ;;  %v2056_v57 = vmul.f32 1.442695, %v1870_v5  ;;  %v5807_v55 = vld [vmem:[#allocation89_spill] sm:$0xff]  ;;  %v5808_v15 = vld [vmem:[#allocation92_spill] sm:$0xff] }
 0x374   : > { %5802 = vst [vmem:[#allocation81_spill] sm:$0xff] %v5052_v52  ;;  %v5057_v1 = vpop.eup %3575  ;;  %3595 = vpow2.f32 %v2052_v0  ;;  %v2180_v19 = vmul.f32 1.442695, %v1932_v53  ;;  %v2182_v48 = vmul.f32 1.442695, %v1933_v49  ;;  %v2271_v46 = vadd.f32 %v5052_v52, %v5047_v16  ;;  %v1805_v11 = vpop.xlane.xlu0 %1804  ;;  %v5809_v0 = vld [vmem:[#allocation90_spill] sm:$0xff] }
 0x375   : > { %5804 = vst [vmem:[#allocation84_spill] sm:$0xff] %v5057_v1  ;;  %v5059_v17 = vpop.eup %3577  ;;  %3597 = vpow2.f32 %v2054_v6  ;;  %v2058_v30 = vmul.f32 1.442695, %v1871_v28  ;;  %v1712_v60 = vpop.xlane.xlu1 %1711  ;;  %v1934_v51 = vsub.f32 %v5807_v55, %v1805_v11  ;;  %v1935_v23 = vsub.f32 %v5808_v15, %v1805_v11  ;;  %v5811_v6 = vld [vmem:[#allocation91_spill] sm:$0xff] }
 0x376   : > { %5805 = vst [vmem:[#allocation82_spill] sm:$0xff] %v5059_v17  ;;  %v5063_v41 = vpop.eup %3579  ;;  %3599 = vpow2.f32 %v2180_v19  ;;  %v1872_v53 = vsub.f32 %v5809_v0, %v1712_v60  ;;  %2365 = vadd.xlane.f32.xlu1 %v2364_v39  ;;  %2272 = vadd.xlane.f32.xlu0 %v2271_v46  ;;  %v1873_v5 = vsub.f32 %v5811_v6, %v1712_v60  ;;  %v5813_v60 = vld [vmem:[#allocation93_spill] sm:$0xff]  ;;  %v5814_v6 = vld [vmem:[#allocation96_spill] sm:$0xff] }
 0x377   : > { %5806 = vst [vmem:[#allocation83_spill] sm:$0xff] %v5063_v41  ;;  %v5068_v49 = vpop.eup %3581  ;;  %3601 = vpow2.f32 %v2182_v48  ;;  %v2367_v28 = vadd.f32 %v5059_v17, %v5057_v1  ;;  %v2184_v19 = vmul.f32 1.442695, %v1934_v51  ;;  %v2186_v16 = vmul.f32 1.442695, %v1935_v23 }
 0x378   : > { %5810 = vst [vmem:[#allocation85_spill] sm:$0xff] %v5068_v49  ;;  %v5073_v10 = vpop.eup %3583  ;;  %3603 = vpow2.f32 %v2056_v57  ;;  %v2060_v55 = vmul.f32 1.442695, %v1872_v53  ;;  %v2062_v11 = vmul.f32 1.442695, %v1873_v5  ;;  %v2274_v48 = vadd.f32 %v5068_v49, %v5063_v41  ;;  %v1715_v46 = vpop.xlane.xlu0 %1714  ;;  %v5815_v57 = vld [vmem:[#allocation94_spill] sm:$0xff] }
 0x379   : > { %5812 = vst [vmem:[#allocation88_spill] sm:$0xff] %v5073_v10  ;;  %v5075_v52 = vpop.eup %3585  ;;  %3605 = vpow2.f32 %v2058_v30  ;;  %v1808_v39 = vpop.xlane.xlu1 %1807  ;;  %v1874_v51 = vsub.f32 %v5815_v57, %v1715_v46  ;;  %v5816_v30 = vld [vmem:[#allocation95_spill] sm:$0xff]  ;;  %v5818_v57 = vld [vmem:[#allocation98_spill] sm:$0xff] }
 0x37a   : > { %v5079_v15 = vpop.eup %3587  ;;  %3607 = vpow2.f32 %v2184_v19  ;;  %v1936_v0 = vsub.f32 %v5813_v60, %v1808_v39  ;;  %v1937_v1 = vsub.f32 %v5814_v6, %v1808_v39  ;;  %2275 = vadd.xlane.f32.xlu1 %v2274_v48  ;;  %2368 = vadd.xlane.f32.xlu0 %v2367_v28  ;;  %v1875_v53 = vsub.f32 %v5816_v30, %v1715_v46  ;;  %v5817_v46 = vld [vmem:[#allocation97_spill] sm:$0xff] }
 0x37b   : > { %v5084_v23 = vpop.eup %3589  ;;  %3609 = vpow2.f32 %v2186_v16  ;;  %v2370_v5 = vadd.f32 %v5075_v52, %v5073_v10  ;;  %v2064_v60 = vmul.f32 1.442695, %v1874_v51 }
 0x37c   : > { %v5089_v41 = vpop.eup %3591  ;;  %3611 = vpow2.f32 %v2060_v55  ;;  %v2188_v19 = vmul.f32 1.442695, %v1936_v0  ;;  %v2190_v49 = vmul.f32 1.442695, %v1937_v1  ;;  %v2066_v39 = vmul.f32 1.442695, %v1875_v53  ;;  %v1811_v48 = vpop.xlane.xlu0 %1810 }
 0x37d   : > { %v5091_v17 = vpop.eup %3593  ;;  %3613 = vpow2.f32 %v2062_v11  ;;  %v2277_v16 = vadd.f32 %v5084_v23, %v5079_v15  ;;  %v1938_v6 = vsub.f32 %v5817_v46, %v1811_v48  ;;  %v1939_v30 = vsub.f32 %v5818_v57, %v1811_v48 }
 0x37e   : > { %v5095_v28 = vpop.eup %3595  ;;  %3615 = vpow2.f32 %v2188_v19  ;;  %2371 = vadd.xlane.f32.xlu1 %v2370_v5  ;;  %v2373_v1 = vadd.f32 %v5091_v17, %v5089_v41 }
 0x37f   : > { %v5099_v10 = vpop.eup %3597  ;;  %3617 = vpow2.f32 %v2190_v49  ;;  %2278 = vadd.xlane.f32.xlu0 %v2277_v16  ;;  %v2192_v11 = vmul.f32 1.442695, %v1938_v6  ;;  %v2194_v0 = vmul.f32 1.442695, %v1939_v30 }
 0x380   : > { %v5103_v55 = vpop.eup %3599  ;;  %3619 = vpow2.f32 %v2064_v60  ;;  %v2280_v51 = vadd.f32 %v5099_v10, %v5095_v28 }
 0x381   : > { %5819 = vst [vmem:[#allocation86_spill] sm:$0xff] %v5103_v55  ;;  %v5107_v53 = vpop.eup %3601  ;;  %3621 = vpow2.f32 %v2066_v39 }
 0x382   : > { %5820 = vst [vmem:[#allocation87_spill] sm:$0xff] %v5107_v53  ;;  %v5109_v19 = vpop.eup %3603  ;;  %3623 = vpow2.f32 %v2192_v11  ;;  %2281 = vadd.xlane.f32.xlu1 %v2280_v51  ;;  %v2376_v5 = vadd.f32 %v5107_v53, %v5103_v55 }
 0x383   : > { %v5111_v49 = vpop.eup %3605  ;;  %3625 = vpow2.f32 %v2194_v0  ;;  %2374 = vadd.xlane.f32.xlu0 %v2373_v1 }
 0x384   : > { %v5115_v60 = vpop.eup %3607  ;;  %v2283_v16 = vadd.f32 %v5111_v49, %v5109_v19 }
 0x385   : > { %5821 = vst [vmem:[#allocation89_spill] sm:$0xff] %v5115_v60  ;;  %v5119_v48 = vpop.eup %3609 }
 0x386   : > { %5822 = vst [vmem:[#allocation92_spill] sm:$0xff] %v5119_v48  ;;  %v5121_v46 = vpop.eup %3611  ;;  %2377 = vadd.xlane.f32.xlu1 %v2376_v5  ;;  %v2379_v6 = vadd.f32 %v5119_v48, %v5115_v60 }
 0x387   : > { %5823 = vst [vmem:[#allocation90_spill] sm:$0xff] %v5121_v46  ;;  %v5123_v39 = vpop.eup %3613  ;;  %2284 = vadd.xlane.f32.xlu0 %v2283_v16 }
 0x388   : > { %5824 = vst [vmem:[#allocation91_spill] sm:$0xff] %v5123_v39  ;;  %v5127_v57 = vpop.eup %3615  ;;  %v2286_v30 = vadd.f32 %v5123_v39, %v5121_v46 }
 0x389   : > { %5825 = vst [vmem:[#allocation93_spill] sm:$0xff] %v5127_v57  ;;  %v5131_v1 = vpop.eup %3617 }
 0x38a   : > { %5826 = vst [vmem:[#allocation96_spill] sm:$0xff] %v5131_v1  ;;  %v5133_v11 = vpop.eup %3619  ;;  %2287 = vadd.xlane.f32.xlu1 %v2286_v30  ;;  %v2382_v51 = vadd.f32 %v5131_v1, %v5127_v57  ;;  %v664_v57 = vld [vmem:[%s5403_s7 + $0x18] sm:$0xff] }
 0x38b   : > { %5827 = vst [vmem:[#allocation94_spill] sm:$0xff] %v5133_v11  ;;  %v5135_v0 = vpop.eup %3621  ;;  %2380 = vadd.xlane.f32.xlu0 %v2379_v6  ;;  %v663_v6 = vld [vmem:[%s5403_s7 + $0x10] sm:$0xff] }
 0x38c   : > { %5828 = vst [vmem:[#allocation95_spill] sm:$0xff] %v5135_v0  ;;  %v5139_v5 = vpop.eup %3623  ;;  %v2289_v16 = vadd.f32 %v5135_v0, %v5133_v11 }
 0x38d   : > { %5829 = vst [vmem:[#allocation97_spill] sm:$0xff] %v5139_v5  ;;  %v5143_v60 = vpop.eup %3625 }
 0x38e   : > { %5830 = vst [vmem:[#allocation98_spill] sm:$0xff] %v5143_v60  ;;  %2383 = vadd.xlane.f32.xlu1 %v2382_v51  ;;  %v2385_v46 = vadd.f32 %v5143_v60, %v5139_v5  ;;  %v2829_v51 = vld [vmem:[%s5407_s11] sm:$0xff] }
 0x38f   : > { %2290 = vadd.xlane.f32.xlu0 %v2289_v16 }
 0x393   : > { %2386 = vadd.xlane.f32.xlu0 %v2385_v46  ;;  %v662_v46 = vld [vmem:[%s5403_s7 + $0x8] sm:$0xff] }
 0x39c   : > { %v2198_v30 = vpop.xlane.xlu1 %2197 }
 0x39d   : > { %3627 = vrcp.f32 %v2198_v30  ;;  %v2831_v30 = vld [vmem:[%s5407_s11 + $0x10] sm:$0xff] }
 0x39f   : > { %677 = vperm.xlu1 %3370, %v663_v6  }
 0x3a0   : > { %v2294_v1 = vpop.xlane.xlu1 %2293 }
 0x3a2   : > { %v2201_v11 = vpop.xlane.xlu0 %2200 }
 0x3a3   : > { %682 = vperm.xlu1 %3370, %v664_v57   ;;  %3629 = vrcp.f32 %v2201_v11  ;;  %v2743_v57 = vld [vmem:[%s5405_s9] sm:$0xff] }
 0x3a4   : > { %3631 = vrcp.f32 %v2294_v1  ;;  %v2830_v1 = vld [vmem:[%s5407_s11 + $0x8] sm:$0xff] }
 0x3a6   : > { %v2204_v16 = vpop.xlane.xlu1 %2203  ;;  %v2297_v6 = vpop.xlane.xlu0 %2296 }
 0x3a7   : > { %2835 = vperm.xlu1 %3370, %v2829_v51   ;;  %3633 = vrcp.f32 %v2297_v6  ;;  %v3628_v11 = vpop.eup %3627 }
 0x3a8   : > { %3635 = vrcp.f32 %v2204_v16  ;;  %v2452_v55 = vmul.f32 %v3628_v11, %v4649_v54 }
 0x3a9   : > { %672 = vperm.xlu0 %3369, %v662_v46   ;;  %v2453_v46 = vmul.f32 %v3628_v11, %v4651_v36 }
 0x3aa   : > { %v2300_v5 = vpop.xlane.xlu1 %2299  ;;  %v2207_v60 = vpop.xlane.xlu0 %2206 }
 0x3ab   : > { %2845 = vperm.xlu1 %3370, %v2831_v30   ;;  %3637 = vrcp.f32 %v2207_v60 }
 0x3ac   : > { %3639 = vrcp.f32 %v2300_v5 }
 0x3ad   : > { %2746 = vperm.xlu0 %3369, %v2743_v57   ;;  %v3630_v51 = vpop.eup %3629  ;;  %v2832_v57 = vld [vmem:[%s5407_s11 + $0x18] sm:$0xff] }
 0x3ae   : > { %v2210_v6 = vpop.xlane.xlu1 %2209  ;;  %v2303_v0 = vpop.xlane.xlu0 %2302  ;;  %v2455_v39 = vmul.f32 %v3630_v51, %v4668_v7  ;;  %v2454_v16 = vmul.f32 %v3630_v51, %v4663_v24 }
 0x3af   : > { %v3632_v30 = vpop.eup %3631  ;;  %3641 = vrcp.f32 %v2303_v0 }
 0x3b0   : > { %v3183_v60 = vpack.c.bf16 %v2455_v39, %v2453_v46  ;;  %v3185_v48 = vpack.c.bf16 %v2454_v16, %v2452_v55  ;;  %3643 = vrcp.f32 %v2210_v6  ;;  %v2517_v7 = vmul.f32 %v3632_v30, %v4661_v2 }
 0x3b1   : > { %2840 = vperm.xlu0 %3369, %v2830_v1   ;;  %v3634_v53 = vpop.eup %3633  ;;  %v2516_v24 = vmul.f32 %v3632_v30, %v4659_v61 }
 0x3b2   : > { %v2306_v36 = vpop.xlane.xlu1 %2305  ;;  %3184 = vmatprep.subr.bf16.mxu1 %v3183_v60  ;;  %v2519_v54 = vmul.f32 %v3634_v53, %v4675_v12  ;;  %v2518_v39 = vmul.f32 %v3634_v53, %v4673_v63  ;;  %v3636_v0 = vpop.eup %3635 }
 0x3b3   : > { %v2213_v5 = vpop.xlane.xlu0 %2212  ;;  %3186 = vmatpush1.bf16.xpose.msra.mxu1 %v3185_v48  ;;  %v2457_v6 = vmul.f32 %v3636_v0, %v4684_v33  ;;  %v2456_v48 = vmul.f32 %v3636_v0, %v4679_v31 }
 0x3b4   : > { %3645 = vrcp.f32 %v2213_v5  ;;  %v3247_v11 = vpack.c.bf16 %v2519_v54, %v2517_v7  ;;  %v3249_v1 = vpack.c.bf16 %v2518_v39, %v2516_v24 }
 0x3b5   : > { %2850 = vperm.xlu0 %3369, %v2832_v57   ;;  %v3638_v55 = vpop.eup %3637  ;;  %3647 = vrcp.f32 %v2306_v36 }
 0x3b6   : > { %3248 = vmatprep.subr.bf16.mxu0 %v3247_v11  ;;  %v2459_v2 = vmul.f32 %v3638_v55, %v4700_v8  ;;  %v2458_v12 = vmul.f32 %v3638_v55, %v4695_v47  ;;  %v3640_v61 = vpop.eup %3639 }
 0x3b7   : > { %v2216_v51 = vpop.xlane.xlu1 %2215  ;;  %v2309_v46 = vpop.xlane.xlu0 %2308  ;;  %3250 = vmatpush1.bf16.xpose.msra.mxu0 %v3249_v1  ;;  %v2521_v57 = vmul.f32 %v3640_v61, %v4691_v37  ;;  %v2520_v8 = vmul.f32 %v3640_v61, %v4689_v18 }
 0x3b8   : > { %3649 = vrcp.f32 %v2309_v46  ;;  %v3187_v63 = vpack.c.bf16 %v2459_v2, %v2457_v6  ;;  %v3189_v53 = vpack.c.bf16 %v2458_v12, %v2456_v48 }
 0x3b9   : > { %v3642_v16 = vpop.eup %3641  ;;  %3651 = vrcp.f32 %v2216_v51 }
 0x3ba   : > { %3188 = vmatprep.subr.bf16.mxu1 %v3187_v63  ;;  %v2523_v33 = vmul.f32 %v3642_v16, %v4707_v58  ;;  %v2522_v31 = vmul.f32 %v3642_v16, %v4705_v9  ;;  %v3644_v36 = vpop.eup %3643 }
 0x3bb   : > { %v2312_v30 = vpop.xlane.xlu1 %2311  ;;  %v2219_v60 = vpop.xlane.xlu0 %2218  ;;  %3190 = vmatpush1.bf16.xpose.msra.mxu1 %v3189_v53  ;;  %v2461_v39 = vmul.f32 %v3644_v36, %v4716_v13  ;;  %v2460_v58 = vmul.f32 %v3644_v36, %v4711_v29 }
 0x3bc   : > { %3653 = vrcp.f32 %v2219_v60  ;;  %v3251_v47 = vpack.c.bf16 %v2523_v33, %v2521_v57  ;;  %v3253_v5 = vpack.c.bf16 %v2522_v31, %v2520_v8 }
 0x3bd   : > { %3655 = vrcp.f32 %v2312_v30 }
 0x3be   : > { %v3646_v7 = vpop.eup %3645  ;;  %3252 = vmatprep.subr.bf16.mxu0 %v3251_v47 }
 0x3bf   : > { %v2222_v54 = vpop.xlane.xlu1 %2221  ;;  %v2315_v24 = vpop.xlane.xlu0 %2314  ;;  %v2463_v37 = vmul.f32 %v3646_v7, %v4732_v4  ;;  %v2462_v18 = vmul.f32 %v3646_v7, %v4727_v40  ;;  %3254 = vmatpush1.bf16.xpose.msra.mxu0 %v3253_v5 }
 0x3c0   : > { %v3648_v0 = vpop.eup %3647  ;;  %3657 = vrcp.f32 %v2315_v24 }
 0x3c1   : > { %v3191_v9 = vpack.c.bf16 %v2463_v37, %v2461_v39  ;;  %v3193_v11 = vpack.c.bf16 %v2462_v18, %v2460_v58  ;;  %3659 = vrcp.f32 %v2222_v54  ;;  %v2525_v46 = vmul.f32 %v3648_v0, %v4723_v20 }
 0x3c2   : > { %v3650_v1 = vpop.eup %3649  ;;  %v2524_v4 = vmul.f32 %v3648_v0, %v4721_v59 }
 0x3c3   : > { %v2318_v55 = vpop.xlane.xlu1 %2317  ;;  %v2225_v51 = vpop.xlane.xlu0 %2224  ;;  %3192 = vmatprep.subr.bf16.mxu1 %v3191_v9  ;;  %v2527_v13 = vmul.f32 %v3650_v1, %v4739_v27  ;;  %v2526_v29 = vmul.f32 %v3650_v1, %v4737_v26 }
 0x3c4   : > { %v3652_v6 = vpop.eup %3651  ;;  %3661 = vrcp.f32 %v2225_v51  ;;  %3194 = vmatpush1.bf16.xpose.msra.mxu1 %v3193_v11  ;;  %v5831_v51 = vld [vmem:[#allocation21_spill] sm:$0xff] }
 0x3c5   : > { %v3255_v40 = vpack.c.bf16 %v2527_v13, %v2525_v46  ;;  %v3257_v2 = vpack.c.bf16 %v2526_v29, %v2524_v4  ;;  %3663 = vrcp.f32 %v2318_v55  ;;  %v2465_v63 = vmul.f32 %v3652_v6, %v4748_v14  ;;  %v5832_v13 = vld [vmem:[#allocation25_spill] sm:$0xff]  ;;  %v5833_v4 = vld [vmem:[#allocation20_spill] sm:$0xff]  ;;  %v5834_v29 = vld [vmem:[#allocation23_spill] sm:$0xff] }
 0x3c6   : > { %v3654_v48 = vpop.eup %3653  ;;  %v2464_v27 = vmul.f32 %v3652_v6, %v4743_v44 }
 0x3c7   : > { %v2228_v12 = vpop.xlane.xlu1 %2227  ;;  %v2321_v61 = vpop.xlane.xlu0 %2320  ;;  %3256 = vmatprep.subr.bf16.mxu0 %v3255_v40  ;;  %v2467_v20 = vmul.f32 %v3654_v48, %v4764_v22  ;;  %v2466_v59 = vmul.f32 %v3654_v48, %v4759_v50 }
 0x3c8   : > { %v3656_v53 = vpop.eup %3655  ;;  %3665 = vrcp.f32 %v2321_v61  ;;  %3258 = vmatpush1.bf16.xpose.msra.mxu0 %v3257_v2  ;;  %v5835_v61 = vld [vmem:[#allocation22_spill] sm:$0xff] }
 0x3c9   : > { %v3195_v26 = vpack.c.bf16 %v2467_v20, %v2465_v63  ;;  %v3197_v16 = vpack.c.bf16 %v2466_v59, %v2464_v27  ;;  %3667 = vrcp.f32 %v2228_v12  ;;  %v2529_v33 = vmul.f32 %v3656_v53, %v4755_v42  ;;  %v5836_v20 = vld [vmem:[#allocation26_spill] sm:$0xff]  ;;  %v5837_v59 = vld [vmem:[#allocation24_spill] sm:$0xff] }
 0x3ca   : > { %v3658_v30 = vpop.eup %3657  ;;  %v2528_v22 = vmul.f32 %v3656_v53, %v4753_v32 }
 0x3cb   : > { %v2324_v60 = vpop.xlane.xlu1 %2323  ;;  %v2231_v57 = vpop.xlane.xlu0 %2230  ;;  %3196 = vmatprep.subr.bf16.mxu1 %v3195_v26  ;;  %v2531_v14 = vmul.f32 %v3658_v30, %v4771_v25  ;;  %v2530_v44 = vmul.f32 %v3658_v30, %v4769_v62  ;;  %v5838_v26 = vld [vmem:[#allocation28_spill] sm:$0xff] }
 0x3cc   : > { %v3660_v8 = vpop.eup %3659  ;;  %3669 = vrcp.f32 %v2231_v57  ;;  %3198 = vmatpush1.bf16.xpose.msra.mxu1 %v3197_v16 }
 0x3cd   : > { %v3259_v50 = vpack.c.bf16 %v2531_v14, %v2529_v33  ;;  %v3261_v31 = vpack.c.bf16 %v2530_v44, %v2528_v22  ;;  %3671 = vrcp.f32 %v2324_v60  ;;  %v2469_v7 = vmul.f32 %v3660_v8, %v4780_v43  ;;  %v5839_v44 = vld [vmem:[#allocation29_spill] sm:$0xff] }
 0x3ce   : > { %v3662_v36 = vpop.eup %3661  ;;  %v2468_v25 = vmul.f32 %v3660_v8, %v4775_v56 }
 0x3cf   : > { %v2234_v47 = vpop.xlane.xlu1 %2233  ;;  %v2327_v5 = vpop.xlane.xlu0 %2326  ;;  %3260 = vmatprep.subr.bf16.mxu0 %v3259_v50  ;;  %v2471_v42 = vmul.f32 %v3662_v36, %v4796_v38  ;;  %v2470_v32 = vmul.f32 %v3662_v36, %v4791_v21  ;;  %v5840_v50 = vld [vmem:[#allocation33_spill] sm:$0xff]  ;;  %v5841_v36 = vld [vmem:[#allocation27_spill] sm:$0xff] }
 0x3d0   : > { %v3664_v54 = vpop.eup %3663  ;;  %3673 = vrcp.f32 %v2327_v5  ;;  %3262 = vmatpush1.bf16.xpose.msra.mxu0 %v3261_v31  ;;  %v5842_v5 = vld [vmem:[#allocation31_spill] sm:$0xff] }
 0x3d1   : > { %v3199_v62 = vpack.c.bf16 %v2471_v42, %v2469_v7  ;;  %v3201_v24 = vpack.c.bf16 %v2470_v32, %v2468_v25  ;;  %3675 = vrcp.f32 %v2234_v47  ;;  %v2533_v18 = vmul.f32 %v3664_v54, %v4787_v3 }
 0x3d2   : > { %v3666_v39 = vpop.eup %3665  ;;  %v2532_v38 = vmul.f32 %v3664_v54, %v4785_v45 }
 0x3d3   : > { %v2330_v37 = vpop.xlane.xlu1 %2329  ;;  %v2237_v58 = vpop.xlane.xlu0 %2236  ;;  %3200 = vmatprep.subr.bf16.mxu1 %v3199_v62  ;;  %v2535_v43 = vmul.f32 %v3666_v39, %v4803_v35  ;;  %v2534_v56 = vmul.f32 %v3666_v39, %v4801_v34  ;;  %v5843_v39 = vld [vmem:[#allocation30_spill] sm:$0xff] }
 0x3d4   : > { %v3668_v0 = vpop.eup %3667  ;;  %3677 = vrcp.f32 %v2237_v58  ;;  %3202 = vmatpush1.bf16.xpose.msra.mxu1 %v3201_v24  ;;  %v5844_v58 = vld [vmem:[#allocation34_spill] sm:$0xff] }
 0x3d5   : > { %v3263_v21 = vpack.c.bf16 %v2535_v43, %v2533_v18  ;;  %v3265_v9 = vpack.c.bf16 %v2534_v56, %v2532_v38  ;;  %3679 = vrcp.f32 %v2330_v37  ;;  %v2473_v46 = vmul.f32 %v3668_v0, %v5831_v51  ;;  %v5845_v43 = vld [vmem:[#allocation32_spill] sm:$0xff] }
 0x3d6   : > { %v3670_v11 = vpop.eup %3669  ;;  %v2472_v35 = vmul.f32 %v3668_v0, %v5833_v4  ;;  %v5846_v56 = vld [vmem:[#allocation36_spill] sm:$0xff] }
 0x3d7   : > { %v2240_v1 = vpop.xlane.xlu1 %2239  ;;  %v2333_v55 = vpop.xlane.xlu0 %2332  ;;  %3264 = vmatprep.subr.bf16.mxu0 %v3263_v21  ;;  %v2475_v3 = vmul.f32 %v3670_v11, %v5832_v13  ;;  %v2474_v45 = vmul.f32 %v3670_v11, %v5834_v29 }
 0x3d8   : > { %v3672_v6 = vpop.eup %3671  ;;  %3681 = vrcp.f32 %v2333_v55  ;;  %3266 = vmatpush1.bf16.xpose.msra.mxu0 %v3265_v9 }
 0x3d9   : > { %v3203_v34 = vpack.c.bf16 %v2475_v3, %v2473_v46  ;;  %v3205_v40 = vpack.c.bf16 %v2474_v45, %v2472_v35  ;;  %3683 = vrcp.f32 %v2240_v1  ;;  %v2537_v63 = vmul.f32 %v3672_v6, %v5835_v61  ;;  %v5847_v46 = vld [vmem:[#allocation37_spill] sm:$0xff]  ;;  %v5849_v35 = vld [vmem:[#allocation35_spill] sm:$0xff] }
 0x3da   : > { %v3674_v2 = vpop.eup %3673  ;;  %v2536_v53 = vmul.f32 %v3672_v6, %v5837_v59  ;;  %v5848_v3 = vld [vmem:[#allocation41_spill] sm:$0xff]  ;;  %v5850_v45 = vld [vmem:[#allocation39_spill] sm:$0xff] }
 0x3db   : > { %v2336_v48 = vpop.xlane.xlu1 %2335  ;;  %v2243_v12 = vpop.xlane.xlu0 %2242  ;;  %3204 = vmatprep.subr.bf16.mxu1 %v3203_v34  ;;  %v2539_v27 = vmul.f32 %v3674_v2, %v5836_v20  ;;  %v2538_v16 = vmul.f32 %v3674_v2, %v5838_v26 }
 0x3dc   : > { %v3676_v30 = vpop.eup %3675  ;;  %3685 = vrcp.f32 %v2243_v12  ;;  %3206 = vmatpush1.bf16.xpose.msra.mxu1 %v3205_v40 }
 0x3dd   : > { %v3267_v60 = vpack.c.bf16 %v2539_v27, %v2537_v63  ;;  %v3269_v57 = vpack.c.bf16 %v2538_v16, %v2536_v53  ;;  %3687 = vrcp.f32 %v2336_v48  ;;  %v2477_v8 = vmul.f32 %v3676_v30, %v5839_v44  ;;  %v5851_v63 = vld [vmem:[#allocation38_spill] sm:$0xff]  ;;  %v5853_v53 = vld [vmem:[#allocation40_spill] sm:$0xff] }
 0x3de   : > { %v3678_v33 = vpop.eup %3677  ;;  %v2476_v47 = vmul.f32 %v3676_v30, %v5841_v36  ;;  %v5852_v27 = vld [vmem:[#allocation42_spill] sm:$0xff]  ;;  %v5854_v16 = vld [vmem:[#allocation44_spill] sm:$0xff] }
 0x3df   : > { %v2246_v14 = vpop.xlane.xlu1 %2245  ;;  %v2339_v22 = vpop.xlane.xlu0 %2338  ;;  %3268 = vmatprep.subr.bf16.mxu0 %v3267_v60  ;;  %v2479_v31 = vmul.f32 %v3678_v33, %v5840_v50  ;;  %v2478_v7 = vmul.f32 %v3678_v33, %v5842_v5 }
 0x3e0   : > { %v3680_v42 = vpop.eup %3679  ;;  %3689 = vrcp.f32 %v2339_v22  ;;  %3270 = vmatpush1.bf16.xpose.msra.mxu0 %v3269_v57 }
 0x3e1   : > { %v3207_v25 = vpack.c.bf16 %v2479_v31, %v2477_v8  ;;  %v3209_v32 = vpack.c.bf16 %v2478_v7, %v2476_v47  ;;  %3691 = vrcp.f32 %v2246_v14  ;;  %v2541_v37 = vmul.f32 %v3680_v42, %v5843_v39  ;;  %v5855_v8 = vld [vmem:[#allocation45_spill] sm:$0xff]  ;;  %v5857_v47 = vld [vmem:[#allocation43_spill] sm:$0xff] }
 0x3e2   : > { %v3682_v54 = vpop.eup %3681  ;;  %v2540_v38 = vmul.f32 %v3680_v42, %v5845_v43  ;;  %v5856_v31 = vld [vmem:[#allocation49_spill] sm:$0xff]  ;;  %v5858_v7 = vld [vmem:[#allocation47_spill] sm:$0xff] }
 0x3e3   : > { %v2342_v62 = vpop.xlane.xlu1 %2341  ;;  %v2249_v24 = vpop.xlane.xlu0 %2248  ;;  %3208 = vmatprep.subr.bf16.mxu1 %v3207_v25  ;;  %v2543_v18 = vmul.f32 %v3682_v54, %v5844_v58  ;;  %v2542_v0 = vmul.f32 %v3682_v54, %v5846_v56 }
 0x3e4   : > { %v3684_v21 = vpop.eup %3683  ;;  %3693 = vrcp.f32 %v2249_v24  ;;  %3210 = vmatpush1.bf16.xpose.msra.mxu1 %v3209_v32 }
 0x3e5   : > { %v3271_v9 = vpack.c.bf16 %v2543_v18, %v2541_v37  ;;  %v3273_v11 = vpack.c.bf16 %v2542_v0, %v2540_v38  ;;  %3695 = vrcp.f32 %v2342_v62  ;;  %v2481_v13 = vmul.f32 %v3684_v21, %v5847_v46  ;;  %v5859_v37 = vld [vmem:[#allocation46_spill] sm:$0xff]  ;;  %v5861_v38 = vld [vmem:[#allocation48_spill] sm:$0xff] }
 0x3e6   : > { %v3686_v1 = vpop.eup %3685  ;;  %v2480_v29 = vmul.f32 %v3684_v21, %v5849_v35  ;;  %v5860_v18 = vld [vmem:[#allocation50_spill] sm:$0xff]  ;;  %v5862_v0 = vld [vmem:[#allocation52_spill] sm:$0xff] }
 0x3e7   : > { %v2252_v55 = vpop.xlane.xlu1 %2251  ;;  %v2345_v51 = vpop.xlane.xlu0 %2344  ;;  %3272 = vmatprep.subr.bf16.mxu0 %v3271_v9  ;;  %v2483_v4 = vmul.f32 %v3686_v1, %v5848_v3  ;;  %v2482_v6 = vmul.f32 %v3686_v1, %v5850_v45 }
 0x3e8   : > { %v3688_v34 = vpop.eup %3687  ;;  %3697 = vrcp.f32 %v2345_v51  ;;  %3274 = vmatpush1.bf16.xpose.msra.mxu0 %v3273_v11 }
 0x3e9   : > { %v3211_v40 = vpack.c.bf16 %v2483_v4, %v2481_v13  ;;  %v3213_v2 = vpack.c.bf16 %v2482_v6, %v2480_v29  ;;  %3699 = vrcp.f32 %v2252_v55  ;;  %v2545_v20 = vmul.f32 %v3688_v34, %v5851_v63  ;;  %v5863_v13 = vld [vmem:[#allocation53_spill] sm:$0xff]  ;;  %v5865_v29 = vld [vmem:[#allocation51_spill] sm:$0xff] }
 0x3ea   : > { %v3690_v48 = vpop.eup %3689  ;;  %v2544_v26 = vmul.f32 %v3688_v34, %v5853_v53  ;;  %v5864_v4 = vld [vmem:[#allocation57_spill] sm:$0xff]  ;;  %v5866_v6 = vld [vmem:[#allocation55_spill] sm:$0xff] }
 0x3eb   : > { %v2348_v12 = vpop.xlane.xlu1 %2347  ;;  %v2255_v61 = vpop.xlane.xlu0 %2254  ;;  %3212 = vmatprep.subr.bf16.mxu1 %v3211_v40  ;;  %v2547_v59 = vmul.f32 %v3690_v48, %v5852_v27  ;;  %v2546_v30 = vmul.f32 %v3690_v48, %v5854_v16 }
 0x3ec   : > { %v3692_v60 = vpop.eup %3691  ;;  %3701 = vrcp.f32 %v2255_v61  ;;  %3214 = vmatpush1.bf16.xpose.msra.mxu1 %v3213_v2 }
 0x3ed   : > { %v3275_v57 = vpack.c.bf16 %v2547_v59, %v2545_v20  ;;  %v3277_v33 = vpack.c.bf16 %v2546_v30, %v2544_v26  ;;  %3703 = vrcp.f32 %v2348_v12  ;;  %v2485_v50 = vmul.f32 %v3692_v60, %v5855_v8  ;;  %v5867_v20 = vld [vmem:[#allocation54_spill] sm:$0xff]  ;;  %v5869_v26 = vld [vmem:[#allocation56_spill] sm:$0xff] }
 0x3ee   : > { %v3694_v14 = vpop.eup %3693  ;;  %v2484_v5 = vmul.f32 %v3692_v60, %v5857_v47  ;;  %v5868_v59 = vld [vmem:[#allocation58_spill] sm:$0xff]  ;;  %v5870_v30 = vld [vmem:[#allocation60_spill] sm:$0xff] }
 0x3ef   : > { %v2258_v22 = vpop.xlane.xlu1 %2257  ;;  %v2351_v44 = vpop.xlane.xlu0 %2350  ;;  %3276 = vmatprep.subr.bf16.mxu0 %v3275_v57  ;;  %v2487_v36 = vmul.f32 %v3694_v14, %v5856_v31  ;;  %v2486_v42 = vmul.f32 %v3694_v14, %v5858_v7 }
 0x3f0   : > { %v3696_v25 = vpop.eup %3695  ;;  %3705 = vrcp.f32 %v2351_v44  ;;  %3278 = vmatpush1.bf16.xpose.msra.mxu0 %v3277_v33 }
 0x3f1   : > { %v3215_v32 = vpack.c.bf16 %v2487_v36, %v2485_v50  ;;  %v3217_v54 = vpack.c.bf16 %v2486_v42, %v2484_v5  ;;  %3707 = vrcp.f32 %v2258_v22  ;;  %v2549_v58 = vmul.f32 %v3696_v25, %v5859_v37  ;;  %v5871_v50 = vld [vmem:[#allocation61_spill] sm:$0xff]  ;;  %v5873_v5 = vld [vmem:[#allocation59_spill] sm:$0xff] }
 0x3f2   : > { %v3698_v62 = vpop.eup %3697  ;;  %v2548_v56 = vmul.f32 %v3696_v25, %v5861_v38  ;;  %v5872_v36 = vld [vmem:[#allocation65_spill] sm:$0xff]  ;;  %v5874_v42 = vld [vmem:[#allocation63_spill] sm:$0xff] }
 0x3f3   : > { %v2354_v24 = vpop.xlane.xlu1 %2353  ;;  %v2261_v39 = vpop.xlane.xlu0 %2260  ;;  %3216 = vmatprep.subr.bf16.mxu1 %v3215_v32  ;;  %v2551_v43 = vmul.f32 %v3698_v62, %v5860_v18  ;;  %v2550_v21 = vmul.f32 %v3698_v62, %v5862_v0 }
 0x3f4   : > { %v3700_v9 = vpop.eup %3699  ;;  %3709 = vrcp.f32 %v2261_v39  ;;  %3218 = vmatpush1.bf16.xpose.msra.mxu1 %v3217_v54 }
 0x3f5   : > { %v3279_v11 = vpack.c.bf16 %v2551_v43, %v2549_v58  ;;  %v3281_v1 = vpack.c.bf16 %v2550_v21, %v2548_v56  ;;  %3711 = vrcp.f32 %v2354_v24  ;;  %v2489_v3 = vmul.f32 %v3700_v9, %v5863_v13  ;;  %v5875_v58 = vld [vmem:[#allocation62_spill] sm:$0xff]  ;;  %v5877_v56 = vld [vmem:[#allocation64_spill] sm:$0xff] }
 0x3f6   : > { %v3702_v55 = vpop.eup %3701  ;;  %v2488_v45 = vmul.f32 %v3700_v9, %v5865_v29  ;;  %v5876_v43 = vld [vmem:[#allocation66_spill] sm:$0xff]  ;;  %v5878_v21 = vld [vmem:[#allocation68_spill] sm:$0xff] }
 0x3f7   : > { %v2264_v51 = vpop.xlane.xlu1 %2263  ;;  %v2357_v46 = vpop.xlane.xlu0 %2356  ;;  %3280 = vmatprep.subr.bf16.mxu0 %v3279_v11  ;;  %v2491_v35 = vmul.f32 %v3702_v55, %v5864_v4  ;;  %v2490_v34 = vmul.f32 %v3702_v55, %v5866_v6 }
 0x3f8   : > { %v3704_v40 = vpop.eup %3703  ;;  %3713 = vrcp.f32 %v2357_v46  ;;  %3282 = vmatpush1.bf16.xpose.msra.mxu0 %v3281_v1 }
 0x3f9   : > { %v3219_v2 = vpack.c.bf16 %v2491_v35, %v2489_v3  ;;  %v3221_v48 = vpack.c.bf16 %v2490_v34, %v2488_v45  ;;  %3715 = vrcp.f32 %v2264_v51  ;;  %v2553_v27 = vmul.f32 %v3704_v40, %v5867_v20  ;;  %v5879_v3 = vld [vmem:[#allocation69_spill] sm:$0xff]  ;;  %v5881_v45 = vld [vmem:[#allocation67_spill] sm:$0xff] }
 0x3fa   : > { %v3706_v12 = vpop.eup %3705  ;;  %v2552_v16 = vmul.f32 %v3704_v40, %v5869_v26  ;;  %v5880_v35 = vld [vmem:[#allocation73_spill] sm:$0xff]  ;;  %v5882_v34 = vld [vmem:[#allocation71_spill] sm:$0xff] }
 0x3fb   : > { %v2360_v61 = vpop.xlane.xlu1 %2359  ;;  %v2267_v63 = vpop.xlane.xlu0 %2266  ;;  %3220 = vmatprep.subr.bf16.mxu1 %v3219_v2  ;;  %v2555_v53 = vmul.f32 %v3706_v12, %v5868_v59  ;;  %v2554_v60 = vmul.f32 %v3706_v12, %v5870_v30 }
 0x3fc   : > { %v3708_v57 = vpop.eup %3707  ;;  %3717 = vrcp.f32 %v2267_v63  ;;  %3222 = vmatpush1.bf16.xpose.msra.mxu1 %v3221_v48 }
 0x3fd   : > { %v3283_v33 = vpack.c.bf16 %v2555_v53, %v2553_v27  ;;  %v3285_v14 = vpack.c.bf16 %v2554_v60, %v2552_v16  ;;  %3719 = vrcp.f32 %v2360_v61  ;;  %v2493_v31 = vmul.f32 %v3708_v57, %v5871_v50  ;;  %v5883_v27 = vld [vmem:[#allocation70_spill] sm:$0xff]  ;;  %v5885_v16 = vld [vmem:[#allocation72_spill] sm:$0xff] }
 0x3fe   : > { %v3710_v22 = vpop.eup %3709  ;;  %v2492_v7 = vmul.f32 %v3708_v57, %v5873_v5  ;;  %v5884_v53 = vld [vmem:[#allocation74_spill] sm:$0xff]  ;;  %v5886_v60 = vld [vmem:[#allocation76_spill] sm:$0xff] }
 0x3ff   : > { %v2270_v44 = vpop.xlane.xlu1 %2269  ;;  %v2363_v8 = vpop.xlane.xlu0 %2362  ;;  %3284 = vmatprep.subr.bf16.mxu0 %v3283_v33  ;;  %v2495_v47 = vmul.f32 %v3710_v22, %v5872_v36  ;;  %v2494_v25 = vmul.f32 %v3710_v22, %v5874_v42 }
 0x400   : > { %v3712_v32 = vpop.eup %3711  ;;  %3721 = vrcp.f32 %v2363_v8  ;;  %3286 = vmatpush1.bf16.xpose.msra.mxu0 %v3285_v14 }
 0x401   : > { %v3223_v54 = vpack.c.bf16 %v2495_v47, %v2493_v31  ;;  %v3225_v62 = vpack.c.bf16 %v2494_v25, %v2492_v7  ;;  %3723 = vrcp.f32 %v2270_v44  ;;  %v2557_v18 = vmul.f32 %v3712_v32, %v5875_v58  ;;  %v5887_v31 = vld [vmem:[#allocation77_spill] sm:$0xff]  ;;  %v5889_v7 = vld [vmem:[#allocation75_spill] sm:$0xff] }
 0x402   : > { %v3714_v24 = vpop.eup %3713  ;;  %v2556_v0 = vmul.f32 %v3712_v32, %v5877_v56  ;;  %v5888_v47 = vld [vmem:[#allocation81_spill] sm:$0xff]  ;;  %v5890_v25 = vld [vmem:[#allocation79_spill] sm:$0xff] }
 0x403   : > { %v2366_v39 = vpop.xlane.xlu1 %2365  ;;  %v2273_v37 = vpop.xlane.xlu0 %2272  ;;  %3224 = vmatprep.subr.bf16.mxu1 %v3223_v54  ;;  %v2559_v38 = vmul.f32 %v3714_v24, %v5876_v43  ;;  %v2558_v9 = vmul.f32 %v3714_v24, %v5878_v21 }
 0x404   : > { %v3716_v11 = vpop.eup %3715  ;;  %3725 = vrcp.f32 %v2273_v37  ;;  %3226 = vmatpush1.bf16.xpose.msra.mxu1 %v3225_v62 }
 0x405   : > { %v3287_v1 = vpack.c.bf16 %v2559_v38, %v2557_v18  ;;  %v3289_v55 = vpack.c.bf16 %v2558_v9, %v2556_v0  ;;  %3727 = vrcp.f32 %v2366_v39  ;;  %v2497_v4 = vmul.f32 %v3716_v11, %v5879_v3  ;;  %v5891_v18 = vld [vmem:[#allocation78_spill] sm:$0xff]  ;;  %v5893_v0 = vld [vmem:[#allocation80_spill] sm:$0xff] }
 0x406   : > { %v3718_v51 = vpop.eup %3717  ;;  %v2496_v6 = vmul.f32 %v3716_v11, %v5881_v45  ;;  %v5892_v38 = vld [vmem:[#allocation82_spill] sm:$0xff]  ;;  %v5894_v9 = vld [vmem:[#allocation84_spill] sm:$0xff]  ;;  %v5896_v45 = vld [vmem:[#allocation83_spill] sm:$0xff] }
 0x407   : > { %v2276_v46 = vpop.xlane.xlu1 %2275  ;;  %v2369_v13 = vpop.xlane.xlu0 %2368  ;;  %3288 = vmatprep.subr.bf16.mxu0 %v3287_v1  ;;  %v2499_v29 = vmul.f32 %v3718_v51, %v5880_v35  ;;  %v2498_v40 = vmul.f32 %v3718_v51, %v5882_v34 }
 0x408   : > { %v3720_v2 = vpop.eup %3719  ;;  %3729 = vrcp.f32 %v2369_v13  ;;  %3290 = vmatpush1.bf16.xpose.msra.mxu0 %v3289_v55 }
 0x409   : > { %v3227_v48 = vpack.c.bf16 %v2499_v29, %v2497_v4  ;;  %v3229_v12 = vpack.c.bf16 %v2498_v40, %v2496_v6  ;;  %3731 = vrcp.f32 %v2276_v46  ;;  %v2561_v59 = vmul.f32 %v3720_v2, %v5883_v27  ;;  %v5895_v4 = vld [vmem:[#allocation85_spill] sm:$0xff] }
 0x40a   : > { %v3722_v61 = vpop.eup %3721  ;;  %v2560_v30 = vmul.f32 %v3720_v2, %v5885_v16 }
 0x40b   : > { %v2372_v63 = vpop.xlane.xlu1 %2371  ;;  %3228 = vmatprep.subr.bf16.mxu1 %v3227_v48  ;;  %v2563_v26 = vmul.f32 %v3722_v61, %v5884_v53  ;;  %v2562_v57 = vmul.f32 %v3722_v61, %v5886_v60  ;;  %v3724_v33 = vpop.eup %3723 }
 0x40c   : > { %v2279_v20 = vpop.xlane.xlu0 %2278  ;;  %3230 = vmatpush1.bf16.xpose.msra.mxu1 %v3229_v12  ;;  %v2501_v36 = vmul.f32 %v3724_v33, %v5887_v31  ;;  %v2500_v42 = vmul.f32 %v3724_v33, %v5889_v7  ;;  %v5898_v33 = vld [vmem:[#allocation16_spill] sm:$0xff] }
 0x40d   : > { %3733 = vrcp.f32 %v2279_v20  ;;  %v3291_v14 = vpack.c.bf16 %v2563_v26, %v2561_v59  ;;  %v3293_v22 = vpack.c.bf16 %v2562_v57, %v2560_v30  ;;  %v5897_v59 = vld [vmem:[#allocation88_spill] sm:$0xff] }
 0x40e   : > { %v3726_v44 = vpop.eup %3725  ;;  %3735 = vrcp.f32 %v2372_v63 }
 0x40f   : > { %v2282_v8 = vpop.xlane.xlu1 %2281  ;;  %3292 = vmatprep.subr.bf16.mxu0 %v3291_v14  ;;  %v2503_v5 = vmul.f32 %v3726_v44, %v5888_v47  ;;  %v2502_v32 = vmul.f32 %v3726_v44, %v5890_v25  ;;  %v3728_v54 = vpop.eup %3727 }
 0x410   : > { %v2375_v50 = vpop.xlane.xlu0 %2374  ;;  %3294 = vmatpush1.bf16.xpose.msra.mxu0 %v3293_v22  ;;  %v2565_v43 = vmul.f32 %v3728_v54, %v5891_v18  ;;  %v2564_v21 = vmul.f32 %v3728_v54, %v5893_v0  ;;  %v5905_v18 = vld [vmem:[#allocation90_spill] sm:$0xff] }
 0x411   : > { %3737 = vrcp.f32 %v2375_v50  ;;  %v3231_v62 = vpack.c.bf16 %v2503_v5, %v2501_v36  ;;  %v3233_v24 = vpack.c.bf16 %v2502_v32, %v2500_v42  ;;  %v5899_v36 = vld [vmem:[#allocation87_spill] sm:$0xff]  ;;  %v5900_v5 = vld [vmem:[#allocation92_spill] sm:$0xff]  ;;  %v5901_v42 = vld [vmem:[#allocation86_spill] sm:$0xff] }
 0x412   : > { %v3730_v39 = vpop.eup %3729  ;;  %3739 = vrcp.f32 %v2282_v8 }
 0x413   : > { %v2378_v37 = vpop.xlane.xlu1 %2377  ;;  %3232 = vmatprep.subr.bf16.mxu1 %v3231_v62  ;;  %v2567_v56 = vmul.f32 %v3730_v39, %v5892_v38  ;;  %v2566_v11 = vmul.f32 %v3730_v39, %v5894_v9  ;;  %v3732_v1 = vpop.eup %3731  ;;  %v5906_v38 = vld [vmem:[#allocation94_spill] sm:$0xff] }
 0x414   : > { %v2285_v58 = vpop.xlane.xlu0 %2284  ;;  %3234 = vmatpush1.bf16.xpose.msra.mxu1 %v3233_v24  ;;  %v2505_v35 = vmul.f32 %v3732_v1, %v5895_v4  ;;  %v2504_v6 = vmul.f32 %v3732_v1, %v5896_v45 }
 0x415   : > { %3741 = vrcp.f32 %v2285_v58  ;;  %v3295_v55 = vpack.c.bf16 %v2567_v56, %v2565_v43  ;;  %v3297_v51 = vpack.c.bf16 %v2566_v11, %v2564_v21  ;;  %v5907_v11 = vld [vmem:[#allocation96_spill] sm:$0xff] }
 0x416   : > { %3743 = vrcp.f32 %v2378_v37  ;;  %v5904_v37 = vld [vmem:[#allocation95_spill] sm:$0xff] }
 0x417   : > { %v3734_v46 = vpop.eup %3733  ;;  %v2288_v13 = vpop.xlane.xlu1 %2287  ;;  %3296 = vmatprep.subr.bf16.mxu0 %v3295_v55  ;;  %v5908_v55 = vld [vmem:[#allocation98_spill] sm:$0xff] }
 0x418   : > { %v2381_v3 = vpop.xlane.xlu0 %2380  ;;  %v2507_v29 = vmul.f32 %v3734_v46, %v5084_v23  ;;  %v2506_v34 = vmul.f32 %v3734_v46, %v5079_v15  ;;  %v3736_v40 = vpop.eup %3735  ;;  %3298 = vmatpush1.bf16.xpose.msra.mxu0 %v3297_v51  ;;  %v5909_v46 = vld [vmem:[#allocation93_spill] sm:$0xff] }
 0x419   : > { %3745 = vrcp.f32 %v2381_v3  ;;  %v2569_v20 = vmul.f32 %v3736_v40, %v5075_v52  ;;  %v2568_v23 = vmul.f32 %v3736_v40, %v5897_v59  ;;  %v5910_v3 = vld [vmem:[#allocation97_spill] sm:$0xff]  ;;  %v5916_v59 = vld [vmem:[#allocation18_spill] sm:$0xff] }
 0x41a   : > { %v3235_v2 = vpack.c.bf16 %v2507_v29, %v2505_v35  ;;  %v3237_v48 = vpack.c.bf16 %v2506_v34, %v2504_v6  ;;  %3747 = vrcp.f32 %v2288_v13  ;;  %v5911_v6 = vld [vmem:[#allocation19_spill] sm:$0xff]  ;;  %v5912_v34 = vld [vmem:[#allocation12_spill] sm:$0xff] }
 0x41b   : > { %v3738_v12 = vpop.eup %3737  ;;  %v2384_v61 = vpop.xlane.xlu1 %2383  ;;  %v764_v40 = vadd.f32 %v5912_v34, %v5911_v6 }
 0x41c   : > { %v2291_v63 = vpop.xlane.xlu0 %2290  ;;  %3236 = vmatprep.subr.bf16.mxu1 %v3235_v2  ;;  %v2571_v27 = vmul.f32 %v3738_v12, %v5091_v17  ;;  %v2570_v53 = vmul.f32 %v3738_v12, %v5089_v41  ;;  %v3740_v26 = vpop.eup %3739  ;;  %v5913_v2 = vld [vmem:[#allocation14_spill] sm:$0xff] }
 0x41d   : > { %3749 = vrcp.f32 %v2291_v63  ;;  %3238 = vmatpush1.bf16.xpose.msra.mxu1 %v3237_v48  ;;  %v2509_v52 = vmul.f32 %v3740_v26, %v5099_v10  ;;  %v2508_v41 = vmul.f32 %v3740_v26, %v5095_v28  ;;  %v5902_v10 = vld [vmem:[#allocation89_spill] sm:$0xff] }
 0x41e   : > { %3751 = vrcp.f32 %v2384_v61  ;;  %v3299_v15 = vpack.c.bf16 %v2571_v27, %v2569_v20  ;;  %v3301_v16 = vpack.c.bf16 %v2570_v53, %v2568_v23  ;;  %v5914_v61 = vld [vmem:[#allocation15_spill] sm:$0xff]  ;;  %v5915_v20 = vld [vmem:[#allocation13_spill] sm:$0xff]  ;;  %v5917_v53 = vmov 0.0  }
 0x41f   : > { %v3742_v30 = vpop.eup %3741  ;;  %v678_v60 = vpop.permute.xlu1 %677  ;;  %v5918_v26 = vld [vmem:[#allocation17_spill] sm:$0xff] }
 0x420   : > { %v2387_v57 = vpop.xlane.xlu0 %2386  ;;  %v778_v14 = vadd.f32 %v5898_v33, %v678_v60  ;;  %3300 = vmatprep.subr.bf16.mxu0 %v3299_v15  ;;  %v2511_v17 = vmul.f32 %v3742_v30, %v5111_v49  ;;  %v3744_v22 = vpop.eup %3743  ;;  %v2510_v44 = vmul.f32 %v3742_v30, %v5109_v19  ;;  %v5903_v19 = vld [vmem:[#allocation91_spill] sm:$0xff]  ;;  %v776_v63 = vadd.f32 %v5914_v61, %v678_v60 }
 0x421   : > { %3753 = vrcp.f32 %v2387_v57  ;;  %3302 = vmatpush1.bf16.xpose.msra.mxu0 %v3301_v16  ;;  %v2573_v47 = vmul.f32 %v3744_v22, %v5899_v36  ;;  %v2572_v25 = vmul.f32 %v3744_v22, %v5901_v42 }
 0x422   : > { %2721 = vmatprep.mubr.f32.mxu0 %v778_v14  ;;  %v3239_v8 = vpack.c.bf16 %v2511_v17, %v2509_v52  ;;  %v3241_v31 = vpack.c.bf16 %v2510_v44, %v2508_v41 }
 0x423   : > { %v3746_v50 = vpop.eup %3745  ;;  %v683_v12 = vpop.permute.xlu1 %682 }
 0x424   : > { %3240 = vmatprep.subr.bf16.mxu1 %v3239_v8  ;;  %v2575_v7 = vmul.f32 %v3746_v50, %v5900_v5  ;;  %v2574_v32 = vmul.f32 %v3746_v50, %v5902_v10  ;;  %v3748_v49 = vpop.eup %3747  ;;  %v784_v23 = vadd.f32 %v5916_v59, %v683_v12  ;;  %v782_v15 = vadd.f32 %v5918_v26, %v683_v12  ;;  %v2742_v10 = vld [vmem:[%s5404_s8] sm:$0xff] }
 0x425   : > { %3242 = vmatpush1.bf16.xpose.msra.mxu1 %v3241_v31  ;;  %v2513_v39 = vmul.f32 %v3748_v49, %v5903_v19  ;;  %v2512_v43 = vmul.f32 %v3748_v49, %v5905_v18  ;;  %v2826_v18 = vld [vmem:[%s5406_s10 + $0x8] sm:$0xff] }
 0x426   : > { %v3303_v54 = vpack.c.bf16 %v2575_v7, %v2573_v47  ;;  %v3305_v62 = vpack.c.bf16 %v2574_v32, %v2572_v25 }
 0x427   : > { %v3750_v28 = vpop.eup %3749 }
 0x428   : > { %v3752_v24 = vpop.eup %3751  ;;  %3304 = vmatprep.subr.bf16.mxu0 %v3303_v54  ;;  %v2515_v58 = vmul.f32 %v3750_v28, %v5904_v37  ;;  %v2514_v56 = vmul.f32 %v3750_v28, %v5906_v38  ;;  %v673_v45 = vpop.permute.xlu0 %672  ;;  %v2828_v38 = vld [vmem:[%s5406_s10 + $0x18] sm:$0xff] }
 0x429   : > { %3306 = vmatpush1.bf16.xpose.msra.mxu0 %v3305_v62  ;;  %v2577_v1 = vmul.f32 %v3752_v24, %v5907_v11  ;;  %v2576_v13 = vmul.f32 %v3752_v24, %v5909_v46  ;;  %v772_v48 = vadd.f32 %v5913_v2, %v673_v45  ;;  %v770_v27 = vadd.f32 %v5915_v20, %v673_v45  ;;  %v3755_v24 = vld [vmem:[%s4035_s26 + $0x8] sm:$0xff] }
 0x42a   : > { %v3243_v21 = vpack.c.bf16 %v2515_v58, %v2513_v39  ;;  %v3245_v9 = vpack.c.bf16 %v2514_v56, %v2512_v43  ;;  %v3756_v39 = vld [vmem:[%s4035_s26] sm:$0xff]  ;;  %v2836_v56 = vpop.permute.xlu1 %2835  ;;  %s3859_s26 = smov [#allocation5]  }
 0x42b   : > { %v3754_v0 = vpop.eup %3753  ;;  %v2825_v58 = vld [vmem:[%s5406_s10] sm:$0xff]  ;;  %v2827_v43 = vld [vmem:[%s5406_s10 + $0x10] sm:$0xff]  ;;  %s3792_s28 = sshll.u32 %s3859_s26, 4  ;;  %s3793_s28 = int_to_ptr.vmem [resolvable:$false] %s3792_s28 }
 0x42c   : > { %v2579_v51 = vmul.f32 %v3754_v0, %v5908_v55  ;;  %v2578_v4 = vmul.f32 %v3754_v0, %v5910_v3  ;;  %3244 = vmatprep.subr.bf16.mxu1 %v3243_v21  ;;  %v2747_v32 = vpop.permute.xlu0 %2746  ;;  %s3794_s13 = scalar_lea.vmem %s3793_s28, 2048  ;;  %p3795_p10 = scmp.lt.s32.totalorder %s5344_s20, %s3793_s28 }
 0x42d   : > { %3246 = vmatpush1.bf16.xpose.msra.mxu1 %v3245_v9  ;;  %p3796_p2 = scmp.lt.s32.totalorder %s3794_s13, %s3788_s23 }
 0x42e   : > { %v3307_v35 = vpack.c.bf16 %v2579_v51, %v2577_v1  ;;  %v3309_v29 = vpack.c.bf16 %v2578_v4, %v2576_v13 }
 0x42f   : > { %p3797_p4 = por %p3796_p2, %p3795_p10 }
 0x430   : > { %3308 = vmatprep.subr.bf16.mxu0 %v3307_v35  ;;  %v2841_v55 = vpop.permute.xlu0 %2840 }
 0x431   : > { %3310 = vmatpush1.bf16.xpose.msra.mxu0 %v3309_v29  ;;  %v2846_v29 = vpop.permute.xlu1 %2845  ;;  %p3798_p5 = pnand %p3797_p4, %p3791_p7 }
 0x434   : > { %2645 = vmatmul.mubr.f32.vlgmr.msra.gmra.mrb[68].mxu1 %v764_v40  ;;  %v2851_v12 = vpop.permute.xlu0 %2850 }
 0x435   : > { %2650 = vmatprep.mubr.f32.mxu1 %v772_v48 }
 0x438   : > { %2651 = vmatmul.mubr.f32.gmra.mrb[70].mxu1 %v770_v27  ;;  %2722 = vmatmul.mubr.f32.vlgmr.msra.gmra.mrb[76].mxu0 %v776_v63 }
 0x439   : > { %2727 = vmatprep.mubr.f32.mxu0 %v784_v23  ;;  %2929 = vmatprep.mubr.f32.mxu1 %v5917_v53 }
 0x43c   : > { %2728 = vmatmul.mubr.f32.gmra.mrb[78].mxu0 %v782_v15 }
 0x43d   : > { %2816 = vmatprep.mubr.f32.mxu0 %v5917_v53 }
 0x507   : > { %v2646_v16 = vpop.f32.mrb[68].mxu1 }
 0x508   : > { %v2648_v30 = vpop.f32.mrb[69].mxu1  ;;  %v2734_v14 = vmax.f32 %v2646_v16, 0.0 }
 0x509   : > { %v2735_v22 = vmax.f32 %v2648_v30, 0.0 }
 0x50b   : > { %v2652_v57 = vpop.f32.mrb[70].mxu1  ;;  %v2723_v33 = vpop.f32.mrb[76].mxu0 }
 0x50c   : > { %v2736_v60 = vmax.f32 %v2652_v57, 0.0  ;;  %v2654_v52 = vpop.f32.mrb[71].mxu1  ;;  %v2725_v17 = vpop.f32.mrb[77].mxu0  ;;  %v2738_v31 = vmax.f32 %v2723_v33, 0.0 }
 0x50d   : > { %v2737_v41 = vmax.f32 %v2654_v52, 0.0  ;;  %v2739_v5 = vmax.f32 %v2725_v17, 0.0 }
 0x50e   : > { %v3313_v44 = vpack.c.bf16 %v2736_v60, %v2734_v14 }
 0x50f   : > { %v3311_v8 = vpack.c.bf16 %v2737_v41, %v2735_v22  ;;  %v2729_v50 = vpop.f32.mrb[78].mxu0 }
 0x510   : > { %v2740_v36 = vmax.f32 %v2729_v50, 0.0  ;;  %v2731_v47 = vpop.f32.mrb[79].mxu0 }
 0x511   : > { %v2741_v7 = vmax.f32 %v2731_v47, 0.0  ;;  %3312 = vmatprep.subr.bf16.mxu0 %v3311_v8 }
 0x512   : > { %v3317_v42 = vpack.c.bf16 %v2740_v36, %v2738_v31  ;;  %3314 = vmatpush1.bf16.msra.mxu0 %v3313_v44 }
 0x513   : > { %v3315_v25 = vpack.c.bf16 %v2741_v7, %v2739_v5 }
 0x515   : > { %3316 = vmatprep.subr.bf16.mxu0 %v3315_v25 }
 0x516   : > { %3318 = vmatpush1.bf16.msra.mxu0 %v3317_v42 }
 0x519   : > { %3154 = vmatmul.mubr.msk.f32.vlgmr.msra.gmra.mrb[80].mxu0 %vm573_vm1, %v2742_v10 }
 0x5ec   : > { %v2818_v49 = vpop.f32.mrb[80].mxu0 }
 0x5ed   : > { %v2819_v54 = vadd.f32 %v2818_v49, %v2747_v32  ;;  %v2820_v62 = vpop.f32.mrb[81].mxu0 }
 0x5ee   : > { %v2821_v28 = vadd.f32 %v2820_v62, %v2747_v32 }
 0x5ef   : > { %v2823_v37 = vadd.f32 %v3756_v39, %v2819_v54 }
 0x5f0   : > { %v2824_v19 = vadd.f32 %v3755_v24, %v2821_v28 }
 0x5f2   : > { %2865 = vmatprep.subr.mxu1 %v2824_v19 }
 0x5f3   : > { %2866 = vmatpush1.msra.mxu1 %v2823_v37 }
 0x5f4   : > { %3155 = vmatmul.mubr.msk.f32.vlgmr.msra.gmra.mrb[72].mxu1 %vm475_vm0, %v2825_v58 }
 0x5f5   : > { %2935 = vmatprep.mubr.f32.mxu1 %v5917_v53 }
 0x5f8   : > { %3156 = vmatmul.mubr.msk.f32.gmra.mrb[74].mxu1 %vm475_vm0, %v2826_v18 }
 0x5f9   : > { %2941 = vmatprep.mubr.f32.mxu1 %v5917_v53 }
 0x5fc   : > { %3157 = vmatmul.mubr.msk.f32.gmra.mrb[76].mxu1 %vm475_vm0, %v2827_v43 }
 0x5fd   : > { %2947 = vmatprep.mubr.f32.mxu1 %v5917_v53 }
 0x600   : > { %3158 = vmatmul.mubr.msk.f32.gmra.mrb[78].mxu1 %vm475_vm0, %v2828_v38 }
 0x6c7   : > { %v2931_v0 = vpop.f32.mrb[72].mxu1 }
 0x6c8   : > { %v2932_v21 = vadd.f32 %v2931_v0, %v2836_v56  ;;  %v2933_v9 = vpop.f32.mrb[73].mxu1 }
 0x6c9   : > { %v2934_v11 = vadd.f32 %v2933_v9, %v2836_v56 }
 0x6ca   : > { %v2954_v1 = vmax.f32 %v2932_v21, 0.0 }
 0x6cb   : > { %v2955_v51 = vmax.f32 %v2934_v11, 0.0  ;;  %v2937_v46 = vpop.f32.mrb[74].mxu1 }
 0x6cc   : > { %2962 = vst [vmem:[%s5335_s30] sm:$0xff] %v2954_v1  ;;  %v2938_v13 = vadd.f32 %v2937_v46, %v2841_v55  ;;  %v2939_v3 = vpop.f32.mrb[75].mxu1 }
 0x6cd   : > { %2963 = vst [vmem:[%s5335_s30 + $0x8] sm:$0xff] %v2955_v51  ;;  %v2940_v4 = vadd.f32 %v2939_v3, %v2841_v55 }
 0x6ce   : > { %v2956_v35 = vmax.f32 %v2938_v13, 0.0 }
 0x6cf   : > { %v2957_v45 = vmax.f32 %v2940_v4, 0.0  ;;  %v2943_v6 = vpop.f32.mrb[76].mxu1 }
 0x6d0   : > { %2964 = vst [vmem:[%s5335_s30 + $0x10] sm:$0xff] %v2956_v35  ;;  %v2944_v34 = vadd.f32 %v2943_v6, %v2846_v29  ;;  %v2945_v40 = vpop.f32.mrb[77].mxu1 }
 0x6d1   : > { %2965 = vst [vmem:[%s5335_s30 + $0x18] sm:$0xff] %v2957_v45  ;;  %v2946_v2 = vadd.f32 %v2945_v40, %v2846_v29 }
 0x6d2   : > { %v2958_v48 = vmax.f32 %v2944_v34, 0.0 }
 0x6d3   : > { %v2959_v61 = vmax.f32 %v2946_v2, 0.0  ;;  %v2949_v63 = vpop.f32.mrb[78].mxu1 }
 0x6d4   : > { %2966 = vst [vmem:[%s5335_s30 + $0x20] sm:$0xff] %v2958_v48  ;;  %v2950_v20 = vadd.f32 %v2949_v63, %v2851_v12  ;;  %v2951_v27 = vpop.f32.mrb[79].mxu1 }
 0x6d5   : > { %2967 = vst [vmem:[%s5335_s30 + $0x28] sm:$0xff] %v2959_v61  ;;  %v2952_v59 = vadd.f32 %v2951_v27, %v2851_v12 }
 0x6d6   : > { %v2960_v23 = vmax.f32 %v2950_v20, 0.0 }
 0x6d7   : > { %v2961_v53 = vmax.f32 %v2952_v59, 0.0 }
 0x6d8   : > { %2968 = vst [vmem:[%s5335_s30 + $0x30] sm:$0xff] %v2960_v23 }
 0x6d9   : > { %2969 = vst [vmem:[%s5335_s30 + $0x38] sm:$0xff] %v2961_v53 }
 0x6da   : > { %3801 = shalt.err (!%p3798_p5)
}
 0x6db   : > { %s3802_s21 = scalar_lea.hbm %s5350_s19, 1024  ;;  %s3806_s17 = scalar_lea.hbm %s5408_s12, 2048 }
 0x6dc   : > { %p3803_p8 = scmp.ne.s32.totalorder %s5350_s19, %s3802_s21  ;;  %p3807_p1 = scmp.lt.u32.totalorder %s5350_s19, %s5408_s12 }
 0x6dd   : > { %p3808_p3 = scmp.lt.u32.totalorder %s3806_s17, %s3802_s21  ;;  %p3810_p6 = scmp.lt.u32.totalorder %s3802_s21, %s5350_s19 }
 0x6de   : > { %p3804_p9 = pnand %p3803_p8, %p5919_p12 }
 0x6df   : > { %p3809_p11 = por %p3808_p3, %p3807_p1 }
 0x6e0   : > { %p3805_p0 = pneg %p3804_p9 }
 0x6e1   : > { %p3811_p13 = por %p3810_p6, %p3809_p11 }
 0x6e3   : > { %p3812_p7 = pnand %p3811_p13, %p3805_p0 }
 0x6e5   : > { %3815 = shalt.err (!%p3812_p7)
}
 0x6e6   : > { %s3860_s23 = smov 256   ;;  %s3861_s26 = smov 16  }
 0x6e7   : > { %3321 = dma.vmem_to_hbm [thread:$0]  (%p5919_p12), %s5344_s20, 1024, %s5350_s19, %s2971_s25, %s3860_s23, %s3860_s23, %s3861_s26  }
 0x6e8 PF: > { %s5920_s28 = sld [smem:[#allocation8_spill]]  ;;  %p5921_p10 = scmp.ne.s32.totalorder %s5582_s16, 0 }
 0x6e9   : > { %p5922_p2 = scmp.ge.s32.totalorder %s3854_s24, 2 }
 0x6eb   : > { %p3328_p4 = pnand %p5922_p2, %p5921_p10 }
 0x6ee   : > { %s2999_s13 = sand.u32 1, %s5920_s28  }
 0x6ef   : > { %s3000_s21 = scalar_lea.sflag [#allocation4], %s2999_s13 }
 0x6f0   : > { %3837 = dma.done.wait (!%p3328_p4), %s3000_s21, 1024  }
 0x6f1   : > { %3839 = vsyncadd (!%p3328_p4), %s3000_s21, 4294966272  ;;  %s5923_s24 = sld [smem:[#allocation10_spill]]  ;;  %s5924_s27 = sld [smem:[#allocation9_spill]] }
 0x6f2   : > { %s5925_s23 = sld [smem:[#allocation11_spill]]  ;;  %s5926_s21 = smov %s3846_s22 }
 0x6f7   : > { %p25_p5 = scmp.ge.s32.totalorder %s5923_s24, 4   ;;  %s5927_s22 = smov %s5924_s27 }
 0x6f9   :  { %27 = sbr.rel (!%p25_p5) target bundleno = 5 (0x5), region = 116 }
 0x700   :  { %3005 = vsyncpa [#allocation3], 1 }
 0x701   :  { %3007 = vsyncpa [#allocation3 + $0x1], 1 }
 0x702   :  { %3008 = vsyncpa [#allocation4], 1 }
 0x703   :  { %3010 = vsyncpa [#allocation4 + $0x1], 1 }

</bundles_post_ra>
